<compile_context>
chip_gen: v7x
topology: tpu7x:2x2x1
jax: 0.10.0
libtpu: 0.0.40
codegen_flags: <defaults>
</compile_context>

<pallas_src>
import jax
import jax.numpy as jnp
from jax.experimental import pallas as pl
from jax.experimental.pallas import tpu as pltpu


# ---------------------------------------------------------------------------
# Fused Pallas kernel (entire BottleneckCSP forward for one batch element)
# ---------------------------------------------------------------------------
def _make_bcsp_kernel(H, W, c_, n_bottleneck, shortcut):
    HW = H * W

    def kernel(x_ref,                                 # (1, H*W, c1)   bf16
               w1_ref, s1_ref, b1_ref,                # cv1 weight + folded BN
               w2_ref,                                # cv2 raw 1x1 conv
               w3_ref,                                # cv3 raw 1x1 conv
               wm1_ref, sm1_ref, bm1_ref,             # bottleneck cv1 (stacked over n)
               wm2_ref, sm2_ref, bm2_ref,             # bottleneck cv2 3x3, im2col-reshaped
               sbn_ref, bbn_ref,                      # BN applied to cat(y1, y2)
               w4_ref, s4_ref, b4_ref,                # cv4 weight + folded BN
               o_ref,                                 # (1, H*W, c2)   f32
               pad_ref):                              # VMEM scratch (H+2, W+2, c_) f32
        f32 = jnp.float32
        bf16 = jnp.bfloat16
        silu = jax.nn.silu

        def mm(a, w):
            # bf16 MXU matmul with f32 accumulation.
            return jnp.dot(a.astype(bf16), w.astype(bf16),
                           preferred_element_type=f32)

        xf = x_ref[0]                                           # (HW, c1) bf16

        # --- cv1: 1x1 conv + BN + SiLU ------------------------------------
        a = silu(mm(xf, w1_ref[...]) * s1_ref[...] + b1_ref[...])   # (HW, c_) f32

        # --- bottleneck chain ----------------------------------------------
        pad_ref[...] = jnp.zeros_like(pad_ref)                  # zero halo once
        b = a
        for i in range(n_bottleneck):                           # static unroll
            # inner cv1 (1x1) + BN + SiLU
            t = silu(mm(b, wm1_ref[i]) * sm1_ref[i] + bm1_ref[i])   # (HW, c_)
            # inner cv2: 3x3 stride-1 pad-1 conv as a single im2col matmul.
            pad_ref[1:H + 1, 1:W + 1, :] = t.reshape(H, W, c_)
            cols = [pad_ref[dy:dy + H, dx:dx + W, :]            # 9 shifted views
                    for dy in range(3) for dx in range(3)]
            patches = jnp.concatenate(cols, axis=-1)            # (H, W, 9*c_)
            patches = patches.reshape(HW, 9 * c_)               # (HW, 9*c_)
            u = silu(mm(patches, wm2_ref[i]) * sm2_ref[i] + bm2_ref[i])
            b = b + u if shortcut else u

        # --- y1 / y2, BN + SiLU on concat, cv4 -------------------------------
        y1 = mm(b, w3_ref[...])                                 # (HW, c_)
        y2 = mm(xf, w2_ref[...])                                # (HW, c_)
        cat = jnp.concatenate([y1, y2], axis=-1)                # (HW, 2*c_)
        z = silu(cat * sbn_ref[...] + bbn_ref[...])
        out = silu(mm(z, w4_ref[...]) * s4_ref[...] + b4_ref[...])   # (HW, c2)
        o_ref[0, :, :] = out

    return kernel


# ---------------------------------------------------------------------------
# Wrapper
# ---------------------------------------------------------------------------
def _bn_fold(gamma, beta, mean, var, eps=1e-5):
    scale = gamma / jnp.sqrt(var + eps)
    bias = beta - mean * scale
    return scale.astype(jnp.float32), bias.astype(jnp.float32)


def bottleneck_csp_forward(x_nchw, params, n=1, shortcut=True):
    """x_nchw: (N, c1, H, W) float32. Returns (N, c2, H, W) float32."""
    N, c1, H, W = x_nchw.shape
    c_ = params["w_cv1"].shape[-1]
    c2 = params["w_cv4"].shape[-1]
    HW = H * W
    bf16 = jnp.bfloat16

    # NCHW -> NHWC -> flat (H*W, C); bf16 halves input HBM traffic.
    xf = jnp.transpose(x_nchw, (0, 2, 3, 1)).reshape(N, HW, c1).astype(bf16)

    # Fold every eval-mode BatchNorm into per-channel scale/bias (f32).
    s1, b1 = _bn_fold(params["g1"], params["be1"], params["m1"], params["v1"])
    sm1, bm1 = _bn_fold(params["gm1"], params["bem1"], params["mm1"], params["vm1"])
    sm2, bm2 = _bn_fold(params["gm2"], params["bem2"], params["mm2"], params["vm2"])
    sbn, bbn = _bn_fold(params["g_bn"], params["be_bn"], params["m_bn"], params["v_bn"])
    s4, b4 = _bn_fold(params["g4"], params["be4"], params["m4"], params["v4"])

    w1 = params["w_cv1"].astype(bf16)                       # (c1, c_)
    w2 = params["w_cv2"].astype(bf16)                       # (c1, c_)
    w3 = params["w_cv3"].astype(bf16)                       # (c_, c_)
    wm1 = params["wm1"].astype(bf16)                        # (n, c_, c_)
    wm2 = params["wm2"].reshape(n, 9 * c_, c_).astype(bf16)  # im2col weight layout
    w4 = params["w_cv4"].astype(bf16)                       # (2*c_, c2)

    s1 = s1.reshape(1, c_); b1 = b1.reshape(1, c_)
    sm1 = sm1.reshape(n, 1, c_); bm1 = bm1.reshape(n, 1, c_)
    sm2 = sm2.reshape(n, 1, c_); bm2 = bm2.reshape(n, 1, c_)
    sbn = sbn.reshape(1, 2 * c_); bbn = bbn.reshape(1, 2 * c_)
    s4 = s4.reshape(1, c2); b4 = b4.reshape(1, c2)

    kernel = _make_bcsp_kernel(H, W, c_, n, shortcut)

    def full(arr):
        nd = arr.ndim
        return pl.BlockSpec(arr.shape, lambda i, _nd=nd: (0,) * _nd)

    out_flat = pl.pallas_call(
        kernel,
        out_shape=jax.ShapeDtypeStruct((N, HW, c2), jnp.float32),
        grid=(N,),
        in_specs=[
            pl.BlockSpec((1, HW, c1), lambda i: (i, 0, 0)),
            full(w1), full(s1), full(b1),
            full(w2), full(w3),
            full(wm1), full(sm1), full(bm1),
            full(wm2), full(sm2), full(bm2),
            full(sbn), full(bbn),
            full(w4), full(s4), full(b4),
        ],
        out_specs=pl.BlockSpec((1, HW, c2), lambda i: (i, 0, 0)),
        scratch_shapes=[pltpu.VMEM((H + 2, W + 2, c_), jnp.float32)],
        compiler_params=pltpu.CompilerParams(
            dimension_semantics=("parallel",)),
    )(xf, w1, s1, b1, w2, w3, wm1, sm1, bm1, wm2, sm2, bm2, sbn, bbn, w4, s4, b4)

    out = out_flat.reshape(N, H, W, c2)
    return jnp.transpose(out, (0, 3, 1, 2))                 # -> NCHW


# ---------------------------------------------------------------------------
# Pure-JAX reference (f32) for correctness checking
# ---------------------------------------------------------------------------
def bottleneck_csp_reference(x_nchw, params, n=1, shortcut=True, eps=1e-5):
    x = jnp.transpose(x_nchw, (0, 2, 3, 1)).astype(jnp.float32)   # NHWC

    def conv1x1(t, w):
        return jnp.einsum("nhwc,cd->nhwd", t, w)

    def bn(t, g, be, m, v):
        return (t - m) * (g / jnp.sqrt(v + eps)) + be

    silu = jax.nn.silu
    p = params

    a = silu(bn(conv1x1(x, p["w_cv1"]), p["g1"], p["be1"], p["m1"], p["v1"]))
    b = a
    for i in range(n):
        t = silu(bn(conv1x1(b, p["wm1"][i]),
                    p["gm1"][i], p["bem1"][i], p["mm1"][i], p["vm1"][i]))
        u = jax.lax.conv_general_dilated(
            t, p["wm2"][i], window_strides=(1, 1), padding="SAME",
            dimension_numbers=("NHWC", "HWIO", "NHWC"))
        u = silu(bn(u, p["gm2"][i], p["bem2"][i], p["mm2"][i], p["vm2"][i]))
        b = b + u if shortcut else u
    y1 = conv1x1(b, p["w_cv3"])
    y2 = conv1x1(x, p["w_cv2"])
    cat = jnp.concatenate([y1, y2], axis=-1)
    z = silu(bn(cat, p["g_bn"], p["be_bn"], p["m_bn"], p["v_bn"]))
    out = silu(bn(conv1x1(z, p["w_cv4"]), p["g4"], p["be4"], p["m4"], p["v4"]))
    return jnp.transpose(out, (0, 3, 1, 2))


# ---------------------------------------------------------------------------
# Deterministic synthetic parameters + smoke test
# ---------------------------------------------------------------------------
def make_params(key, c1, c2, n, e=0.5):
    c_ = int(c2 * e)
    ks = iter(jax.random.split(key, 16))

    def bn_p(k, shape):
        k1, k2, k3, k4 = jax.random.split(k, 4)
        g = jax.random.uniform(k1, shape, jnp.float32, 0.5, 1.5)
        be = 0.1 * jax.random.normal(k2, shape, jnp.float32)
        m = 0.1 * jax.random.normal(k3, shape, jnp.float32)
        v = jax.random.uniform(k4, shape, jnp.float32, 0.5, 1.5)
        return g, be, m, v

    p = {}
    p["w_cv1"] = 0.1 * jax.random.normal(next(ks), (c1, c_), jnp.float32)
    p["w_cv2"] = 0.1 * jax.random.normal(next(ks), (c1, c_), jnp.float32)
    p["w_cv3"] = 0.1 * jax.random.normal(next(ks), (c_, c_), jnp.float32)
    p["w_cv4"] = 0.1 * jax.random.normal(next(ks), (2 * c_, c2), jnp.float32)
    p["wm1"] = 0.1 * jax.random.normal(next(ks), (n, c_, c_), jnp.float32)
    p["wm2"] = 0.1 * jax.random.normal(next(ks), (n, 3, 3, c_, c_), jnp.float32)
    p["g1"], p["be1"], p["m1"], p["v1"] = bn_p(next(ks), (c_,))
    p["gm1"], p["bem1"], p["mm1"], p["vm1"] = bn_p(next(ks), (n, c_))
    p["gm2"], p["bem2"], p["mm2"], p["vm2"] = bn_p(next(ks), (n, c_))
    p["g_bn"], p["be_bn"], p["m_bn"], p["v_bn"] = bn_p(next(ks), (2 * c_,))
    p["g4"], p["be4"], p["m4"], p["v4"] = bn_p(next(ks), (c2,))
    return p


if __name__ == "__main__":
    key = jax.random.PRNGKey(0)
    k_params, k_x = jax.random.split(key)

    N, C1, C2, H, W = 2, 4, 8, 16, 16
    n_bottleneck = 1
    shortcut = True

    params = make_params(k_params, C1, C2, n_bottleneck)
    x = jax.random.normal(k_x, (N, C1, H, W), jnp.float32)

    out = bottleneck_csp_forward(x, params, n=n_bottleneck, shortcut=shortcut)
    out = jax.block_until_ready(out)

    ref = bottleneck_csp_reference(x, params, n=n_bottleneck, shortcut=shortcut)

    assert out.shape == (N, C2, H, W), (out.shape, (N, C2, H, W))
    assert out.dtype == jnp.float32
    assert bool(jnp.all(jnp.isfinite(out)))
    max_err = float(jnp.max(jnp.abs(out - ref)))
    assert max_err < 5e-2, f"max abs error vs reference too large: {max_err}"

    print("KERNEL_OK")
</pallas_src>

<mosaic_0001>
module attributes {stable_mosaic.version = 11 : i64} {
  func.func @kernel(%arg0: i32, %arg1: memref<1x256x4xbf16, #tpu.memory_space<vmem>>, %arg2: memref<4x4xbf16, #tpu.memory_space<vmem>>, %arg3: memref<1x4xf32, #tpu.memory_space<vmem>>, %arg4: memref<1x4xf32, #tpu.memory_space<vmem>>, %arg5: memref<4x4xbf16, #tpu.memory_space<vmem>>, %arg6: memref<4x4xbf16, #tpu.memory_space<vmem>>, %arg7: memref<1x4x4xbf16, #tpu.memory_space<vmem>>, %arg8: memref<1x1x4xf32, #tpu.memory_space<vmem>>, %arg9: memref<1x1x4xf32, #tpu.memory_space<vmem>>, %arg10: memref<1x36x4xbf16, #tpu.memory_space<vmem>>, %arg11: memref<1x1x4xf32, #tpu.memory_space<vmem>>, %arg12: memref<1x1x4xf32, #tpu.memory_space<vmem>>, %arg13: memref<1x8xf32, #tpu.memory_space<vmem>>, %arg14: memref<1x8xf32, #tpu.memory_space<vmem>>, %arg15: memref<8x8xbf16, #tpu.memory_space<vmem>>, %arg16: memref<1x8xf32, #tpu.memory_space<vmem>>, %arg17: memref<1x8xf32, #tpu.memory_space<vmem>>, %arg18: memref<1x256x8xf32, #tpu.memory_space<vmem>>, %arg19: memref<18x18x4xf32, #tpu.memory_space<vmem>>) attributes {dimension_semantics = [#tpu.dimension_semantics<parallel>], iteration_bounds = array<i64: 2>, scalar_prefetch = 0 : i64, scratch_operands = 1 : i64, tpu.core_type = #tpu.core_type<tc>, window_params = [{transform_indices = @transform_0, window_bounds = array<i64: 1, 256, 4>}, {pipeline_mode = #tpu.pipeline_mode<synchronous>, transform_indices = @transform_1, window_bounds = array<i64: 4, 4>}, {pipeline_mode = #tpu.pipeline_mode<synchronous>, transform_indices = @transform_2, window_bounds = array<i64: 1, 4>}, {pipeline_mode = #tpu.pipeline_mode<synchronous>, transform_indices = @transform_3, window_bounds = array<i64: 1, 4>}, {pipeline_mode = #tpu.pipeline_mode<synchronous>, transform_indices = @transform_4, window_bounds = array<i64: 4, 4>}, {pipeline_mode = #tpu.pipeline_mode<synchronous>, transform_indices = @transform_5, window_bounds = array<i64: 4, 4>}, {pipeline_mode = #tpu.pipeline_mode<synchronous>, transform_indices = @transform_6, window_bounds = array<i64: 1, 4, 4>}, {pipeline_mode = #tpu.pipeline_mode<synchronous>, transform_indices = @transform_7, window_bounds = array<i64: 1, 1, 4>}, {pipeline_mode = #tpu.pipeline_mode<synchronous>, transform_indices = @transform_8, window_bounds = array<i64: 1, 1, 4>}, {pipeline_mode = #tpu.pipeline_mode<synchronous>, transform_indices = @transform_9, window_bounds = array<i64: 1, 36, 4>}, {pipeline_mode = #tpu.pipeline_mode<synchronous>, transform_indices = @transform_10, window_bounds = array<i64: 1, 1, 4>}, {pipeline_mode = #tpu.pipeline_mode<synchronous>, transform_indices = @transform_11, window_bounds = array<i64: 1, 1, 4>}, {pipeline_mode = #tpu.pipeline_mode<synchronous>, transform_indices = @transform_12, window_bounds = array<i64: 1, 8>}, {pipeline_mode = #tpu.pipeline_mode<synchronous>, transform_indices = @transform_13, window_bounds = array<i64: 1, 8>}, {pipeline_mode = #tpu.pipeline_mode<synchronous>, transform_indices = @transform_14, window_bounds = array<i64: 8, 8>}, {pipeline_mode = #tpu.pipeline_mode<synchronous>, transform_indices = @transform_15, window_bounds = array<i64: 1, 8>}, {pipeline_mode = #tpu.pipeline_mode<synchronous>, transform_indices = @transform_16, window_bounds = array<i64: 1, 8>}, {transform_indices = @transform_17, window_bounds = array<i64: 1, 256, 8>}]} {
    %c0 = arith.constant 0 : index
    %c0_0 = arith.constant 0 : index
    %c0_1 = arith.constant 0 : index
    %0 = vector.load %arg1[%c0, %c0_0, %c0_1] : memref<1x256x4xbf16, #tpu.memory_space<vmem>>, vector<1x256x4xbf16>
    %1 = vector.shape_cast %0 : vector<1x256x4xbf16> to vector<256x4xbf16>
    %c0_2 = arith.constant 0 : index
    %c0_3 = arith.constant 0 : index
    %2 = vector.load %arg2[%c0_2, %c0_3] : memref<4x4xbf16, #tpu.memory_space<vmem>>, vector<4x4xbf16>
    %cst = arith.constant dense<0.000000e+00> : vector<256x4xf32>
    %3 = tpu.matmul %1, %2, %cst {dimension_numbers = #tpu.dot_dimension_numbers<[1], [0], [0], [1], [0, 0, 1, 1], [], []>} : vector<256x4xbf16>, vector<4x4xbf16>, vector<256x4xf32> -> vector<256x4xf32>
    %c0_4 = arith.constant 0 : index
    %c0_5 = arith.constant 0 : index
    %4 = vector.load %arg3[%c0_4, %c0_5] : memref<1x4xf32, #tpu.memory_space<vmem>>, vector<1x4xf32>
    %5 = vector.broadcast %4 : vector<1x4xf32> to vector<256x4xf32>
    %6 = arith.mulf %3, %5 : vector<256x4xf32>
    %c0_6 = arith.constant 0 : index
    %c0_7 = arith.constant 0 : index
    %7 = vector.load %arg4[%c0_6, %c0_7] : memref<1x4xf32, #tpu.memory_space<vmem>>, vector<1x4xf32>
    %8 = vector.broadcast %7 : vector<1x4xf32> to vector<256x4xf32>
    %9 = arith.addf %6, %8 : vector<256x4xf32>
    %10 = arith.negf %9 : vector<256x4xf32>
    %11 = math.exp %10 : vector<256x4xf32>
    %cst_8 = arith.constant 1.000000e+00 : f32
    %12 = vector.broadcast %cst_8 : f32 to vector<256x4xf32>
    %13 = arith.addf %12, %11 : vector<256x4xf32>
    %14 = arith.divf %12, %13 : vector<256x4xf32>
    %15 = arith.mulf %9, %14 : vector<256x4xf32>
    %cst_9 = arith.constant 0.000000e+00 : f32
    %16 = vector.broadcast %cst_9 : f32 to vector<18x18x4xf32>
    %c0_10 = arith.constant 0 : index
    %c0_11 = arith.constant 0 : index
    %c0_12 = arith.constant 0 : index
    %17 = vector.load %arg19[%c0_10, %c0_11, %c0_12] : memref<18x18x4xf32, #tpu.memory_space<vmem>>, vector<18x18x4xf32>
    tpu.vector_store %arg19[%c0_10, %c0_11, %c0_12], %16 {strides = array<i32>} : memref<18x18x4xf32, #tpu.memory_space<vmem>>, vector<18x18x4xf32>,
    %c0_13 = arith.constant 0 : index
    %c0_14 = arith.constant 0 : index
    %c0_15 = arith.constant 0 : index
    %18 = vector.load %arg7[%c0_13, %c0_14, %c0_15] : memref<1x4x4xbf16, #tpu.memory_space<vmem>>, vector<1x4x4xbf16>
    %19 = vector.shape_cast %18 : vector<1x4x4xbf16> to vector<4x4xbf16>
    %20 = arith.truncf %15 : vector<256x4xf32> to vector<256x4xbf16>
    %cst_16 = arith.constant dense<0.000000e+00> : vector<256x4xf32>
    %21 = tpu.matmul %20, %19, %cst_16 {dimension_numbers = #tpu.dot_dimension_numbers<[1], [0], [0], [1], [0, 0, 1, 1], [], []>} : vector<256x4xbf16>, vector<4x4xbf16>, vector<256x4xf32> -> vector<256x4xf32>
    %c0_17 = arith.constant 0 : index
    %c0_18 = arith.constant 0 : index
    %c0_19 = arith.constant 0 : index
    %22 = vector.load %arg8[%c0_17, %c0_18, %c0_19] : memref<1x1x4xf32, #tpu.memory_space<vmem>>, vector<1x1x4xf32>
    %23 = vector.shape_cast %22 : vector<1x1x4xf32> to vector<1x4xf32>
    %24 = vector.broadcast %23 : vector<1x4xf32> to vector<256x4xf32>
    %25 = arith.mulf %21, %24 : vector<256x4xf32>
    %c0_20 = arith.constant 0 : index
    %c0_21 = arith.constant 0 : index
    %c0_22 = arith.constant 0 : index
    %26 = vector.load %arg9[%c0_20, %c0_21, %c0_22] : memref<1x1x4xf32, #tpu.memory_space<vmem>>, vector<1x1x4xf32>
    %27 = vector.shape_cast %26 : vector<1x1x4xf32> to vector<1x4xf32>
    %28 = vector.broadcast %27 : vector<1x4xf32> to vector<256x4xf32>
    %29 = arith.addf %25, %28 : vector<256x4xf32>
    %30 = arith.negf %29 : vector<256x4xf32>
    %31 = math.exp %30 : vector<256x4xf32>
    %cst_23 = arith.constant 1.000000e+00 : f32
    %32 = vector.broadcast %cst_23 : f32 to vector<256x4xf32>
    %33 = arith.addf %32, %31 : vector<256x4xf32>
    %34 = arith.divf %32, %33 : vector<256x4xf32>
    %35 = arith.mulf %29, %34 : vector<256x4xf32>
    %36 = vector.shape_cast %35 : vector<256x4xf32> to vector<16x16x4xf32>
    %c1 = arith.constant 1 : index
    %c1_24 = arith.constant 1 : index
    %c0_25 = arith.constant 0 : index
    %37 = vector.load %arg19[%c1, %c1_24, %c0_25] : memref<18x18x4xf32, #tpu.memory_space<vmem>>, vector<16x16x4xf32>
    tpu.vector_store %arg19[%c1, %c1_24, %c0_25], %36 {strides = array<i32>} : memref<18x18x4xf32, #tpu.memory_space<vmem>>, vector<16x16x4xf32>,
    %c0_26 = arith.constant 0 : index
    %c0_27 = arith.constant 0 : index
    %c0_28 = arith.constant 0 : index
    %38 = vector.load %arg19[%c0_26, %c0_27, %c0_28] : memref<18x18x4xf32, #tpu.memory_space<vmem>>, vector<16x16x4xf32>
    %c0_29 = arith.constant 0 : index
    %c1_30 = arith.constant 1 : index
    %c0_31 = arith.constant 0 : index
    %39 = vector.load %arg19[%c0_29, %c1_30, %c0_31] : memref<18x18x4xf32, #tpu.memory_space<vmem>>, vector<16x16x4xf32>
    %c0_32 = arith.constant 0 : index
    %c2 = arith.constant 2 : index
    %c0_33 = arith.constant 0 : index
    %40 = vector.load %arg19[%c0_32, %c2, %c0_33] : memref<18x18x4xf32, #tpu.memory_space<vmem>>, vector<16x16x4xf32>
    %c1_34 = arith.constant 1 : index
    %c0_35 = arith.constant 0 : index
    %c0_36 = arith.constant 0 : index
    %41 = vector.load %arg19[%c1_34, %c0_35, %c0_36] : memref<18x18x4xf32, #tpu.memory_space<vmem>>, vector<16x16x4xf32>
    %c1_37 = arith.constant 1 : index
    %c1_38 = arith.constant 1 : index
    %c0_39 = arith.constant 0 : index
    %42 = vector.load %arg19[%c1_37, %c1_38, %c0_39] : memref<18x18x4xf32, #tpu.memory_space<vmem>>, vector<16x16x4xf32>
    %c1_40 = arith.constant 1 : index
    %c2_41 = arith.constant 2 : index
    %c0_42 = arith.constant 0 : index
    %43 = vector.load %arg19[%c1_40, %c2_41, %c0_42] : memref<18x18x4xf32, #tpu.memory_space<vmem>>, vector<16x16x4xf32>
    %c2_43 = arith.constant 2 : index
    %c0_44 = arith.constant 0 : index
    %c0_45 = arith.constant 0 : index
    %44 = vector.load %arg19[%c2_43, %c0_44, %c0_45] : memref<18x18x4xf32, #tpu.memory_space<vmem>>, vector<16x16x4xf32>
    %c2_46 = arith.constant 2 : index
    %c1_47 = arith.constant 1 : index
    %c0_48 = arith.constant 0 : index
    %45 = vector.load %arg19[%c2_46, %c1_47, %c0_48] : memref<18x18x4xf32, #tpu.memory_space<vmem>>, vector<16x16x4xf32>
    %c2_49 = arith.constant 2 : index
    %c2_50 = arith.constant 2 : index
    %c0_51 = arith.constant 0 : index
    %46 = vector.load %arg19[%c2_49, %c2_50, %c0_51] : memref<18x18x4xf32, #tpu.memory_space<vmem>>, vector<16x16x4xf32>
    %47 = tpu.concatenate %38, %39, %40, %41, %42, %43, %44, %45, %46 in 2 : vector<16x16x4xf32>, vector<16x16x4xf32>, vector<16x16x4xf32>, vector<16x16x4xf32>, vector<16x16x4xf32>, vector<16x16x4xf32>, vector<16x16x4xf32>, vector<16x16x4xf32>, vector<16x16x4xf32> -> vector<16x16x36xf32>
    %48 = vector.shape_cast %47 : vector<16x16x36xf32> to vector<256x36xf32>
    %c0_52 = arith.constant 0 : index
    %c0_53 = arith.constant 0 : index
    %c0_54 = arith.constant 0 : index
    %49 = vector.load %arg10[%c0_52, %c0_53, %c0_54] : memref<1x36x4xbf16, #tpu.memory_space<vmem>>, vector<1x36x4xbf16>
    %50 = vector.shape_cast %49 : vector<1x36x4xbf16> to vector<36x4xbf16>
    %51 = arith.truncf %48 : vector<256x36xf32> to vector<256x36xbf16>
    %cst_55 = arith.constant dense<0.000000e+00> : vector<256x4xf32>
    %52 = tpu.matmul %51, %50, %cst_55 {dimension_numbers = #tpu.dot_dimension_numbers<[1], [0], [0], [1], [0, 0, 1, 1], [], []>} : vector<256x36xbf16>, vector<36x4xbf16>, vector<256x4xf32> -> vector<256x4xf32>
    %c0_56 = arith.constant 0 : index
    %c0_57 = arith.constant 0 : index
    %c0_58 = arith.constant 0 : index
    %53 = vector.load %arg11[%c0_56, %c0_57, %c0_58] : memref<1x1x4xf32, #tpu.memory_space<vmem>>, vector<1x1x4xf32>
    %54 = vector.shape_cast %53 : vector<1x1x4xf32> to vector<1x4xf32>
    %55 = vector.broadcast %54 : vector<1x4xf32> to vector<256x4xf32>
    %56 = arith.mulf %52, %55 : vector<256x4xf32>
    %c0_59 = arith.constant 0 : index
    %c0_60 = arith.constant 0 : index
    %c0_61 = arith.constant 0 : index
    %57 = vector.load %arg12[%c0_59, %c0_60, %c0_61] : memref<1x1x4xf32, #tpu.memory_space<vmem>>, vector<1x1x4xf32>
    %58 = vector.shape_cast %57 : vector<1x1x4xf32> to vector<1x4xf32>
    %59 = vector.broadcast %58 : vector<1x4xf32> to vector<256x4xf32>
    %60 = arith.addf %56, %59 : vector<256x4xf32>
    %61 = arith.negf %60 : vector<256x4xf32>
    %62 = math.exp %61 : vector<256x4xf32>
    %cst_62 = arith.constant 1.000000e+00 : f32
    %63 = vector.broadcast %cst_62 : f32 to vector<256x4xf32>
    %64 = arith.addf %63, %62 : vector<256x4xf32>
    %65 = arith.divf %63, %64 : vector<256x4xf32>
    %66 = arith.mulf %60, %65 : vector<256x4xf32>
    %67 = arith.addf %15, %66 : vector<256x4xf32>
    %c0_63 = arith.constant 0 : index
    %c0_64 = arith.constant 0 : index
    %68 = vector.load %arg6[%c0_63, %c0_64] : memref<4x4xbf16, #tpu.memory_space<vmem>>, vector<4x4xbf16>
    %69 = arith.truncf %67 : vector<256x4xf32> to vector<256x4xbf16>
    %cst_65 = arith.constant dense<0.000000e+00> : vector<256x4xf32>
    %70 = tpu.matmul %69, %68, %cst_65 {dimension_numbers = #tpu.dot_dimension_numbers<[1], [0], [0], [1], [0, 0, 1, 1], [], []>} : vector<256x4xbf16>, vector<4x4xbf16>, vector<256x4xf32> -> vector<256x4xf32>
    %c0_66 = arith.constant 0 : index
    %c0_67 = arith.constant 0 : index
    %71 = vector.load %arg5[%c0_66, %c0_67] : memref<4x4xbf16, #tpu.memory_space<vmem>>, vector<4x4xbf16>
    %cst_68 = arith.constant dense<0.000000e+00> : vector<256x4xf32>
    %72 = tpu.matmul %1, %71, %cst_68 {dimension_numbers = #tpu.dot_dimension_numbers<[1], [0], [0], [1], [0, 0, 1, 1], [], []>} : vector<256x4xbf16>, vector<4x4xbf16>, vector<256x4xf32> -> vector<256x4xf32>
    %73 = tpu.concatenate %70, %72 in 1 : vector<256x4xf32>, vector<256x4xf32> -> vector<256x8xf32>
    %c0_69 = arith.constant 0 : index
    %c0_70 = arith.constant 0 : index
    %74 = vector.load %arg13[%c0_69, %c0_70] : memref<1x8xf32, #tpu.memory_space<vmem>>, vector<1x8xf32>
    %75 = vector.broadcast %74 : vector<1x8xf32> to vector<256x8xf32>
    %76 = arith.mulf %73, %75 : vector<256x8xf32>
    %c0_71 = arith.constant 0 : index
    %c0_72 = arith.constant 0 : index
    %77 = vector.load %arg14[%c0_71, %c0_72] : memref<1x8xf32, #tpu.memory_space<vmem>>, vector<1x8xf32>
    %78 = vector.broadcast %77 : vector<1x8xf32> to vector<256x8xf32>
    %79 = arith.addf %76, %78 : vector<256x8xf32>
    %80 = arith.negf %79 : vector<256x8xf32>
    %81 = math.exp %80 : vector<256x8xf32>
    %cst_73 = arith.constant 1.000000e+00 : f32
    %82 = vector.broadcast %cst_73 : f32 to vector<256x8xf32>
    %83 = arith.addf %82, %81 : vector<256x8xf32>
    %84 = arith.divf %82, %83 : vector<256x8xf32>
    %85 = arith.mulf %79, %84 : vector<256x8xf32>
    %c0_74 = arith.constant 0 : index
    %c0_75 = arith.constant 0 : index
    %86 = vector.load %arg15[%c0_74, %c0_75] : memref<8x8xbf16, #tpu.memory_space<vmem>>, vector<8x8xbf16>
    %87 = arith.truncf %85 : vector<256x8xf32> to vector<256x8xbf16>
    %cst_76 = arith.constant dense<0.000000e+00> : vector<256x8xf32>
    %88 = tpu.matmul %87, %86, %cst_76 {dimension_numbers = #tpu.dot_dimension_numbers<[1], [0], [0], [1], [0, 0, 1, 1], [], []>} : vector<256x8xbf16>, vector<8x8xbf16>, vector<256x8xf32> -> vector<256x8xf32>
    %c0_77 = arith.constant 0 : index
    %c0_78 = arith.constant 0 : index
    %89 = vector.load %arg16[%c0_77, %c0_78] : memref<1x8xf32, #tpu.memory_space<vmem>>, vector<1x8xf32>
    %90 = vector.broadcast %89 : vector<1x8xf32> to vector<256x8xf32>
    %91 = arith.mulf %88, %90 : vector<256x8xf32>
    %c0_79 = arith.constant 0 : index
    %c0_80 = arith.constant 0 : index
    %92 = vector.load %arg17[%c0_79, %c0_80] : memref<1x8xf32, #tpu.memory_space<vmem>>, vector<1x8xf32>
    %93 = vector.broadcast %92 : vector<1x8xf32> to vector<256x8xf32>
    %94 = arith.addf %91, %93 : vector<256x8xf32>
    %95 = arith.negf %94 : vector<256x8xf32>
    %96 = math.exp %95 : vector<256x8xf32>
    %cst_81 = arith.constant 1.000000e+00 : f32
    %97 = vector.broadcast %cst_81 : f32 to vector<256x8xf32>
    %98 = arith.addf %97, %96 : vector<256x8xf32>
    %99 = arith.divf %97, %98 : vector<256x8xf32>
    %100 = arith.mulf %94, %99 : vector<256x8xf32>
    %c0_82 = arith.constant 0 : index
    %c0_83 = arith.constant 0 : index
    %c0_84 = arith.constant 0 : index
    %101 = vector.load %arg18[%c0_82, %c0_83, %c0_84] : memref<1x256x8xf32, #tpu.memory_space<vmem>>, vector<1x256x8xf32>
    %102 = vector.shape_cast %101 : vector<1x256x8xf32> to vector<256x8xf32>
    %103 = vector.shape_cast %100 : vector<256x8xf32> to vector<1x256x8xf32>
    tpu.vector_store %arg18[%c0_82, %c0_83, %c0_84], %103 {strides = array<i32>} : memref<1x256x8xf32, #tpu.memory_space<vmem>>, vector<1x256x8xf32>,
    return
  }
  func.func @transform_0(%arg0: i32) -> (i32, i32, i32) {
    %c0_i32 = arith.constant 0 : i32
    %c0_i32_0 = arith.constant 0 : i32
    %c0_i32_1 = arith.constant 0 : i32
    return %arg0, %c0_i32, %c0_i32_0 : i32, i32, i32
  }
  func.func @transform_1(%arg0: i32) -> (i32, i32) {
    %c0_i32 = arith.constant 0 : i32
    %c0_i32_0 = arith.constant 0 : i32
    %c0_i32_1 = arith.constant 0 : i32
    return %c0_i32, %c0_i32_0 : i32, i32
  }
  func.func @transform_2(%arg0: i32) -> (i32, i32) {
    %c0_i32 = arith.constant 0 : i32
    %c0_i32_0 = arith.constant 0 : i32
    %c0_i32_1 = arith.constant 0 : i32
    return %c0_i32, %c0_i32_0 : i32, i32
  }
  func.func @transform_3(%arg0: i32) -> (i32, i32) {
    %c0_i32 = arith.constant 0 : i32
    %c0_i32_0 = arith.constant 0 : i32
    %c0_i32_1 = arith.constant 0 : i32
    return %c0_i32, %c0_i32_0 : i32, i32
  }
  func.func @transform_4(%arg0: i32) -> (i32, i32) {
    %c0_i32 = arith.constant 0 : i32
    %c0_i32_0 = arith.constant 0 : i32
    %c0_i32_1 = arith.constant 0 : i32
    return %c0_i32, %c0_i32_0 : i32, i32
  }
  func.func @transform_5(%arg0: i32) -> (i32, i32) {
    %c0_i32 = arith.constant 0 : i32
    %c0_i32_0 = arith.constant 0 : i32
    %c0_i32_1 = arith.constant 0 : i32
    return %c0_i32, %c0_i32_0 : i32, i32
  }
  func.func @transform_6(%arg0: i32) -> (i32, i32, i32) {
    %c0_i32 = arith.constant 0 : i32
    %c0_i32_0 = arith.constant 0 : i32
    %c0_i32_1 = arith.constant 0 : i32
    %c0_i32_2 = arith.constant 0 : i32
    return %c0_i32, %c0_i32_0, %c0_i32_1 : i32, i32, i32
  }
  func.func @transform_7(%arg0: i32) -> (i32, i32, i32) {
    %c0_i32 = arith.constant 0 : i32
    %c0_i32_0 = arith.constant 0 : i32
    %c0_i32_1 = arith.constant 0 : i32
    %c0_i32_2 = arith.constant 0 : i32
    return %c0_i32, %c0_i32_0, %c0_i32_1 : i32, i32, i32
  }
  func.func @transform_8(%arg0: i32) -> (i32, i32, i32) {
    %c0_i32 = arith.constant 0 : i32
    %c0_i32_0 = arith.constant 0 : i32
    %c0_i32_1 = arith.constant 0 : i32
    %c0_i32_2 = arith.constant 0 : i32
    return %c0_i32, %c0_i32_0, %c0_i32_1 : i32, i32, i32
  }
  func.func @transform_9(%arg0: i32) -> (i32, i32, i32) {
    %c0_i32 = arith.constant 0 : i32
    %c0_i32_0 = arith.constant 0 : i32
    %c0_i32_1 = arith.constant 0 : i32
    %c0_i32_2 = arith.constant 0 : i32
    return %c0_i32, %c0_i32_0, %c0_i32_1 : i32, i32, i32
  }
  func.func @transform_10(%arg0: i32) -> (i32, i32, i32) {
    %c0_i32 = arith.constant 0 : i32
    %c0_i32_0 = arith.constant 0 : i32
    %c0_i32_1 = arith.constant 0 : i32
    %c0_i32_2 = arith.constant 0 : i32
    return %c0_i32, %c0_i32_0, %c0_i32_1 : i32, i32, i32
  }
  func.func @transform_11(%arg0: i32) -> (i32, i32, i32) {
    %c0_i32 = arith.constant 0 : i32
    %c0_i32_0 = arith.constant 0 : i32
    %c0_i32_1 = arith.constant 0 : i32
    %c0_i32_2 = arith.constant 0 : i32
    return %c0_i32, %c0_i32_0, %c0_i32_1 : i32, i32, i32
  }
  func.func @transform_12(%arg0: i32) -> (i32, i32) {
    %c0_i32 = arith.constant 0 : i32
    %c0_i32_0 = arith.constant 0 : i32
    %c0_i32_1 = arith.constant 0 : i32
    return %c0_i32, %c0_i32_0 : i32, i32
  }
  func.func @transform_13(%arg0: i32) -> (i32, i32) {
    %c0_i32 = arith.constant 0 : i32
    %c0_i32_0 = arith.constant 0 : i32
    %c0_i32_1 = arith.constant 0 : i32
    return %c0_i32, %c0_i32_0 : i32, i32
  }
  func.func @transform_14(%arg0: i32) -> (i32, i32) {
    %c0_i32 = arith.constant 0 : i32
    %c0_i32_0 = arith.constant 0 : i32
    %c0_i32_1 = arith.constant 0 : i32
    return %c0_i32, %c0_i32_0 : i32, i32
  }
  func.func @transform_15(%arg0: i32) -> (i32, i32) {
    %c0_i32 = arith.constant 0 : i32
    %c0_i32_0 = arith.constant 0 : i32
    %c0_i32_1 = arith.constant 0 : i32
    return %c0_i32, %c0_i32_0 : i32, i32
  }
  func.func @transform_16(%arg0: i32) -> (i32, i32) {
    %c0_i32 = arith.constant 0 : i32
    %c0_i32_0 = arith.constant 0 : i32
    %c0_i32_1 = arith.constant 0 : i32
    return %c0_i32, %c0_i32_0 : i32, i32
  }
  func.func @transform_17(%arg0: i32) -> (i32, i32, i32) {
    %c0_i32 = arith.constant 0 : i32
    %c0_i32_0 = arith.constant 0 : i32
    %c0_i32_1 = arith.constant 0 : i32
    return %arg0, %c0_i32, %c0_i32_0 : i32, i32, i32
  }
}

</mosaic_0001>

<bundles_post_ra>
// kernel: tpu_custom_call.1
= control target key start
LH: loop header
LB: loop body
LE: loop exit
PB: predicated region body
PF: predicated region fallthrough
CT: control target
= control target key end

     0   :  { %s7495_s24 = smov 0   ;;  %s9659_s0 = inlined_call_operand.vmem [shape: bf16[2,256,4], index: 0, kind: input, shape index: {}]   ;;  %s9660_s1 = inlined_call_operand.vmem [shape: bf16[4,4], index: 1, kind: input, shape index: {}]   ;;  %s9661_s2 = inlined_call_operand.vmem [shape: f32[1,4], index: 2, kind: input, shape index: {}]   ;;  %s9662_s3 = inlined_call_operand.vmem [shape: f32[1,4], index: 3, kind: input, shape index: {}]   ;;  %s9663_s4 = inlined_call_operand.vmem [shape: bf16[4,4], index: 4, kind: input, shape index: {}]   ;;  %s9664_s5 = inlined_call_operand.vmem [shape: bf16[4,4], index: 5, kind: input, shape index: {}]   ;;  %s9665_s6 = inlined_call_operand.vmem [shape: bf16[1,4,4], index: 6, kind: input, shape index: {}]   ;;  %s9666_s7 = inlined_call_operand.vmem [shape: f32[1,1,4], index: 7, kind: input, shape index: {}]   ;;  %s9667_s8 = inlined_call_operand.vmem [shape: f32[1,1,4], index: 8, kind: input, shape index: {}]   ;;  %s9668_s9 = inlined_call_operand.vmem [shape: bf16[1,36,4], index: 9, kind: input, shape index: {}]   ;;  %s9669_s10 = inlined_call_operand.vmem [shape: f32[1,1,4], index: 10, kind: input, shape index: {}]   ;;  %s9670_s11 = inlined_call_operand.vmem [shape: f32[1,1,4], index: 11, kind: input, shape index: {}]   ;;  %s9671_s12 = inlined_call_operand.vmem [shape: f32[1,8], index: 12, kind: input, shape index: {}]   ;;  %s9672_s13 = inlined_call_operand.vmem [shape: f32[1,8], index: 13, kind: input, shape index: {}]   ;;  %s9673_s14 = inlined_call_operand.vmem [shape: bf16[8,8], index: 14, kind: input, shape index: {}]   ;;  %s9674_s15 = inlined_call_operand.vmem [shape: f32[1,8], index: 15, kind: input, shape index: {}]   ;;  %s9675_s16 = inlined_call_operand.vmem [shape: f32[1,8], index: 16, kind: input, shape index: {}]   ;;  %s9676_s17 = inlined_call_operand.vmem [shape: f32[2,256,8], index: 17, kind: output, shape index: {}]  }
   0x1   :  { %9689 = sst [smem:[#allocation15_spill]] %s9659_s0 }
   0x2   :  { %9690 = sst [smem:[#allocation16_spill]] %s9660_s1 }
   0x3 LB: > { %s5432_s25 = sadd.s32 4294967295, %s7394_s24   ;;  %p5436_p0 = scmp.ge.s32.totalorder %s7394_s24, 1  ;;  %s7394_s24 = sphi %s7495_s24, %s27_s24  }
   0x4   : > { %p487_p1 = scmp.lt.s32.totalorder %s7394_s24, 3 }
   0x6   : > { %p488_p2 = pnand %p5436_p0, %p487_p1 }
   0x8   : > { %491 = sbr.rel (%p488_p2) target bundleno = 1653 (0x675), region = 88 }
   0xf   : > { %s9691_s28 = sld [smem:[#allocation16_spill]]  ;;  %vm712_vm0 = vcmask 1041408   ;;  %p539_p3 = scmp.lt.s32.totalorder %s5432_s25, 1  ;;  %vm663_vm1 = vcmask 31744   ;;  %v1234_v18 = vld [vmem:[%s9665_s6] sm:$0x3] }
  0x10   : > { %s9692_s18 = sld [smem:[#allocation15_spill]]  ;;  %6043 = vmatprep.subr.msk.bf16.mxu1 %vm712_vm0, %v1234_v18  ;;  %v1300_v19 = vsel %vm712_vm0, %v1234_v18, 0  ;;  %v7396_v20 = vmov 0.0   ;;  %v7628_v21 = vld [vmem:[%s9661_s2] ss:$0 sm:$0xff]  ;;  %vm1181_vm2 = vcmask 25600  }
  0x11   : > { %s9718_s25 = smov (!%p539_p3, %s5432_s25), 1  ;;  %5869 = vmatpush3.bf16.msra.mxu1 %v1300_v19  ;;  %1186 = vst.msk [vmem:[#allocation2 + $0x30] sm:$0xff] %vm663_vm1, %v7396_v20  ;;  %1187 = vst.msk [vmem:[#allocation2 + $0x38] sm:$0xff] %vm663_vm1, %v7396_v20  ;;  %v7633_v23 = vld [vmem:[%s9662_s3] ss:$0 sm:$0xff]  ;;  %s7397_s27 = smov 8  }
  0x12   : > { %s5728_s29 = sshll.u32 %s9718_s25, 7  ;;  %1179 = vst.msk [vmem:[#allocation2] sm:$0xff] %vm663_vm1, %v7396_v20  ;;  %1180 = vst.msk [vmem:[#allocation2 + $0x8] sm:$0xff] %vm663_vm1, %v7396_v20  ;;  %s7400_s20 = smov 12   ;;  %vm3143_vm3 = vcmask 64512   ;;  %vm3176_vm4 = vcmask 97280  }
  0x13   : > { %1183 = vst.msk [vmem:[#allocation2 + $0x18] sm:$0xff] %vm663_vm1, %v7396_v20  ;;  %1184 = vst.msk [vmem:[#allocation2 + $0x20] sm:$0xff] %vm663_vm1, %v7396_v20  ;;  %s7401_s21 = smov 28   ;;  %s7402_s22 = smov 16   ;;  %vm3209_vm5 = vcmask 130048   ;;  %vm3242_vm6 = vcmask 162816  }
  0x14   : > { %1189 = vst.msk [vmem:[#allocation2 + $0x48] sm:$0xff] %vm663_vm1, %v7396_v20  ;;  %1190 = vst.msk [vmem:[#allocation2 + $0x50] sm:$0xff] %vm663_vm1, %v7396_v20  ;;  %s7403_s23 = smov 32   ;;  %s7404_s26 = smov 20   ;;  %vm3275_vm7 = vcmask 195584   ;;  %vm3308_vm8 = vcmask 228352  }
  0x15   : > { %v582_v0 = vld [vmem:[%s9691_s28] sm:$0x3]  ;;  %1192 = vst.msk [vmem:[#allocation2 + $0x60] sm:$0xff] %vm663_vm1, %v7396_v20  ;;  %1193 = vst.msk [vmem:[#allocation2 + $0x68] sm:$0xff] %vm663_vm1, %v7396_v20  ;;  %s7398_s28 = smov 24   ;;  %vm3341_vm9 = vcmask 261120  }
  0x16   : > { %6042 = vmatprep.subr.msk.bf16.mxu0 %vm712_vm0, %v582_v0  ;;  %v714_v1 = vsel %vm712_vm0, %v582_v0, 0  ;;  %s7514_s19 = scalar_lea.vmem %s9692_s18, %s5728_s29  ;;  %1195 = vst.msk [vmem:[#allocation2 + $0x78] sm:$0xff] %vm663_vm1, %v7396_v20  ;;  %1196 = vst.msk [vmem:[#allocation2 + $0x80] sm:$0xff] %vm663_vm1, %v7396_v20  ;;  %s7399_s29 = smov 4   ;;  %vm3410_vm10 = vcmask 293888   ;;  %vm4878_vm11 = vcmask 1043456  }
  0x17   : > { %5835 = vmatpush3.bf16.msra.mxu0 %v714_v1  ;;  %v6705_v2 = vld [vmem:[%s7514_s19] sm:$0xff]   ;;  %v6706_v3 = vld [vmem:[%s7514_s19 + $0x8] sm:$0xff]   ;;  %v6707_v4 = vld [vmem:[%s7514_s19 + $0x10] sm:$0xff]   ;;  %1198 = vst.msk [vmem:[#allocation2 + $0x90] sm:$0xff] %vm663_vm1, %v7396_v20 }
  0x18   : > { %5836 = vmatprep.mubr.msk.bf16.mxu0 %vm663_vm1, %v6705_v2  ;;  %v6708_v5 = vld [vmem:[%s7514_s19 + $0x18] sm:$0xff]   ;;  %v6709_v6 = vld [vmem:[%s7514_s19 + $0x20] sm:$0xff]   ;;  %v6710_v7 = vld [vmem:[%s7514_s19 + $0x28] sm:$0xff]   ;;  %1199 = vst.msk [vmem:[#allocation2 + $0x98] sm:$0xff] %vm663_vm1, %v7396_v20 }
  0x19   : > { %v6711_v8 = vld [vmem:[%s7514_s19 + $0x30] sm:$0xff]   ;;  %v6712_v9 = vld [vmem:[%s7514_s19 + $0x38] sm:$0xff]   ;;  %v6713_v10 = vld [vmem:[%s7514_s19 + $0x40] sm:$0xff]   ;;  %1201 = vst.msk [vmem:[#allocation2 + $0xa8] sm:$0xff] %vm663_vm1, %v7396_v20 }
  0x1a   : > { %5837 = vmatmul.mubr.msk.bf16.vlgmr.msra.gmra.mrb[0].mxu0 %vm663_vm1, %v6706_v3  ;;  %v6714_v11 = vld [vmem:[%s7514_s19 + $0x48] sm:$0xff]   ;;  %v6715_v12 = vld [vmem:[%s7514_s19 + $0x50] sm:$0xff]   ;;  %v6716_v13 = vld [vmem:[%s7514_s19 + $0x58] sm:$0xff]   ;;  %1202 = vst.msk [vmem:[#allocation2 + $0xb0] sm:$0xff] %vm663_vm1, %v7396_v20 }
  0x1b   : > { %5840 = vmatprep.mubr.msk.bf16.mxu0 %vm663_vm1, %v6707_v4  ;;  %v6717_v14 = vld [vmem:[%s7514_s19 + $0x60] sm:$0xff]   ;;  %v6718_v15 = vld [vmem:[%s7514_s19 + $0x68] sm:$0xff]   ;;  %v6719_v16 = vld [vmem:[%s7514_s19 + $0x70] sm:$0xff]   ;;  %1204 = vst.msk [vmem:[#allocation2 + $0xc0] sm:$0xff] %vm663_vm1, %v7396_v20 }
  0x1c   : > { %v6720_v17 = vld [vmem:[%s7514_s19 + $0x78] sm:$0xff]   ;;  %1205 = vst.msk [vmem:[#allocation2 + $0xc8] sm:$0xff] %vm663_vm1, %v7396_v20  ;;  %1207 = vst.msk [vmem:[#allocation2 + $0xd8] sm:$0xff] %vm663_vm1, %v7396_v20 }
  0x1d   : > { %1208 = vst.msk [vmem:[#allocation2 + $0xe0] sm:$0xff] %vm663_vm1, %v7396_v20  ;;  %1210 = vst.msk [vmem:[#allocation2 + $0xf0] sm:$0xff] %vm663_vm1, %v7396_v20 }
  0x1e   : > { %1211 = vst.msk [vmem:[#allocation2 + $0xf8] sm:$0xff] %vm663_vm1, %v7396_v20  ;;  %1213 = vst.msk [vmem:[#allocation2 + $0x108] sm:$0xff] %vm663_vm1, %v7396_v20 }
  0x1f   : > { %1214 = vst.msk [vmem:[#allocation2 + $0x110] sm:$0xff] %vm663_vm1, %v7396_v20  ;;  %1216 = vst.msk [vmem:[#allocation2 + $0x120] sm:$0xff] %vm663_vm1, %v7396_v20 }
  0x20   : > { %1217 = vst.msk [vmem:[#allocation2 + $0x128] sm:$0xff] %vm663_vm1, %v7396_v20  ;;  %1219 = vst.msk [vmem:[#allocation2 + $0x138] sm:$0xff] %vm663_vm1, %v7396_v20 }
  0x21   : > { %1220 = vst.msk [vmem:[#allocation2 + $0x140] sm:$0xff] %vm663_vm1, %v7396_v20  ;;  %1222 = vst.msk [vmem:[#allocation2 + $0x150] sm:$0xff] %vm663_vm1, %v7396_v20 }
  0x22   : > { %5841 = vmatmul.mubr.msk.bf16.gmra.mrb[4].mxu0 %vm663_vm1, %v6708_v5  ;;  %1223 = vst.msk [vmem:[#allocation2 + $0x158] sm:$0xff] %vm663_vm1, %v7396_v20  ;;  %1225 = vst.msk [vmem:[#allocation2 + $0x168] sm:$0xff] %vm663_vm1, %v7396_v20 }
  0x23   : > { %5844 = vmatprep.mubr.msk.bf16.mxu0 %vm663_vm1, %v6709_v6  ;;  %1226 = vst.msk [vmem:[#allocation2 + $0x170] sm:$0xff] %vm663_vm1, %v7396_v20  ;;  %1228 = vst.msk [vmem:[#allocation2 + $0x180] sm:$0xff] %vm663_vm1, %v7396_v20 }
  0x24   : > { %1229 = vst.msk [vmem:[#allocation2 + $0x188] sm:$0xff] %vm663_vm1, %v7396_v20  ;;  %1231 = vst.msk [vmem:[#allocation2 + $0x198] sm:$0xff] %vm663_vm1, %v7396_v20 }
  0x25   : > { %1232 = vst.msk [vmem:[#allocation2 + $0x1a0] sm:$0xff] %vm663_vm1, %v7396_v20 }
  0x26   : > { %1188 = vst.msk [vmem:[#allocation2 + $0x40] sm:$0x3] %vm1181_vm2, %v7396_v20  ;;  %1182 = vst.msk [vmem:[#allocation2 + $0x10] sm:$0x3] %vm1181_vm2, %v7396_v20 }
  0x27   : > { %1185 = vst.msk [vmem:[#allocation2 + $0x28] sm:$0x3] %vm1181_vm2, %v7396_v20  ;;  %1191 = vst.msk [vmem:[#allocation2 + $0x58] sm:$0x3] %vm1181_vm2, %v7396_v20 }
  0x28   : > { %1194 = vst.msk [vmem:[#allocation2 + $0x70] sm:$0x3] %vm1181_vm2, %v7396_v20  ;;  %1197 = vst.msk [vmem:[#allocation2 + $0x88] sm:$0x3] %vm1181_vm2, %v7396_v20 }
  0x29   : > { %1200 = vst.msk [vmem:[#allocation2 + $0xa0] sm:$0x3] %vm1181_vm2, %v7396_v20  ;;  %1203 = vst.msk [vmem:[#allocation2 + $0xb8] sm:$0x3] %vm1181_vm2, %v7396_v20 }
  0x2a   : > { %5845 = vmatmul.mubr.msk.bf16.gmra.mrb[8].mxu0 %vm663_vm1, %v6710_v7  ;;  %1206 = vst.msk [vmem:[#allocation2 + $0xd0] sm:$0x3] %vm1181_vm2, %v7396_v20  ;;  %1209 = vst.msk [vmem:[#allocation2 + $0xe8] sm:$0x3] %vm1181_vm2, %v7396_v20 }
  0x2b   : > { %5848 = vmatprep.mubr.msk.bf16.mxu0 %vm663_vm1, %v6711_v8  ;;  %1212 = vst.msk [vmem:[#allocation2 + $0x100] sm:$0x3] %vm1181_vm2, %v7396_v20  ;;  %1215 = vst.msk [vmem:[#allocation2 + $0x118] sm:$0x3] %vm1181_vm2, %v7396_v20 }
  0x2c   : > { %1218 = vst.msk [vmem:[#allocation2 + $0x130] sm:$0x3] %vm1181_vm2, %v7396_v20  ;;  %1221 = vst.msk [vmem:[#allocation2 + $0x148] sm:$0x3] %vm1181_vm2, %v7396_v20 }
  0x2d   : > { %1224 = vst.msk [vmem:[#allocation2 + $0x160] sm:$0x3] %vm1181_vm2, %v7396_v20  ;;  %1227 = vst.msk [vmem:[#allocation2 + $0x178] sm:$0x3] %vm1181_vm2, %v7396_v20 }
  0x2e   : > { %1230 = vst.msk [vmem:[#allocation2 + $0x190] sm:$0x3] %vm1181_vm2, %v7396_v20  ;;  %1233 = vst.msk [vmem:[#allocation2 + $0x1a8] sm:$0x3] %vm1181_vm2, %v7396_v20  ;;  %v7981_v20 = vld [vmem:[%s9666_s7] ss:$0 sm:$0xff] }
  0x32   : > { %5849 = vmatmul.mubr.msk.bf16.gmra.mrb[12].mxu0 %vm663_vm1, %v6712_v9 }
  0x33   : > { %5852 = vmatprep.mubr.msk.bf16.mxu0 %vm663_vm1, %v6713_v10 }
  0x3a   : > { %5853 = vmatmul.mubr.msk.bf16.gmra.mrb[16].mxu0 %vm663_vm1, %v6714_v11 }
  0x3b   : > { %5856 = vmatprep.mubr.msk.bf16.mxu0 %vm663_vm1, %v6715_v12 }
  0x42   : > { %5857 = vmatmul.mubr.msk.bf16.gmra.mrb[20].mxu0 %vm663_vm1, %v6716_v13 }
  0x43   : > { %5860 = vmatprep.mubr.msk.bf16.mxu0 %vm663_vm1, %v6717_v14 }
  0x4a   : > { %5861 = vmatmul.mubr.msk.bf16.gmra.mrb[24].mxu0 %vm663_vm1, %v6718_v15 }
  0x4b   : > { %5864 = vmatprep.mubr.msk.bf16.mxu0 %vm663_vm1, %v6719_v16 }
  0x52   : > { %5865 = vmatmul.mubr.msk.bf16.gmra.mrb[28].mxu0 %vm663_vm1, %v6720_v17 }
  0xed   : > { %v5838_v22 = vpop.f32.mrb[0].mxu0 }
  0xee   : > { %v886_v24 = vmul.f32 %v5838_v22, %v7628_v21  ;;  %v750_v25 = vpop.f32.mrb[1].mxu0 }
  0xef   : > { %v884_v26 = vmul.f32 %v7628_v21, %v750_v25  ;;  %v5839_v27 = vpop.f32.mrb[2].mxu0 }
  0xf0   : > { %v7638_v28 = vadd.f32 %v7633_v23, %v886_v24  ;;  %v887_v29 = vmul.f32 %v5839_v27, %v7628_v21  ;;  %v753_v30 = vpop.f32.mrb[3].mxu0 }
  0xf1   : > { %v7642_v31 = vadd.f32 %v7633_v23, %v884_v26  ;;  %v885_v32 = vmul.f32 %v7628_v21, %v753_v30 }
  0xf2   : > { %v5477_v33 = vmul.f32 -1.442695, %v7638_v28  ;;  %v7647_v34 = vadd.f32 %v7633_v23, %v887_v29 }
  0xf3   : > { %v5475_v35 = vmul.f32 -1.442695, %v7642_v31  ;;  %v7651_v36 = vadd.f32 %v7633_v23, %v885_v32 }
  0xf4   : > { %6724 = vpow2.f32 %v5477_v33  ;;  %v5478_v37 = vmul.f32 -1.442695, %v7647_v34 }
  0xf5   : > { %6726 = vpow2.f32 %v5475_v35  ;;  %v5476_v38 = vmul.f32 -1.442695, %v7651_v36  ;;  %v5842_v39 = vpop.f32.mrb[4].mxu0 }
  0xf6   : > { %6728 = vpow2.f32 %v5478_v37  ;;  %v890_v40 = vmul.f32 %v5842_v39, %v7628_v21  ;;  %v766_v41 = vpop.f32.mrb[5].mxu0 }
  0xf7   : > { %6730 = vpow2.f32 %v5476_v38  ;;  %v888_v42 = vmul.f32 %v7628_v21, %v766_v41  ;;  %v5843_v43 = vpop.f32.mrb[6].mxu0 }
  0xf8   : > { %v7658_v44 = vadd.f32 %v7633_v23, %v890_v40  ;;  %v891_v45 = vmul.f32 %v5843_v43, %v7628_v21  ;;  %v769_v46 = vpop.f32.mrb[7].mxu0 }
  0xf9   : > { %v7662_v47 = vadd.f32 %v7633_v23, %v888_v42  ;;  %v889_v48 = vmul.f32 %v7628_v21, %v769_v46 }
  0xfa   : > { %v5481_v49 = vmul.f32 -1.442695, %v7658_v44  ;;  %v7667_v50 = vadd.f32 %v7633_v23, %v891_v45 }
  0xfb   : > { %v5479_v51 = vmul.f32 -1.442695, %v7662_v47  ;;  %v7671_v52 = vadd.f32 %v7633_v23, %v889_v48 }
  0xfc   : > { %6732 = vpow2.f32 %v5481_v49  ;;  %v5482_v53 = vmul.f32 -1.442695, %v7667_v50 }
  0xfd   : > { %6734 = vpow2.f32 %v5479_v51  ;;  %v5480_v54 = vmul.f32 -1.442695, %v7671_v52  ;;  %v5846_v55 = vpop.f32.mrb[8].mxu0 }
  0xfe   : > { %v6725_v56 = vpop.eup %6724  ;;  %6736 = vpow2.f32 %v5482_v53  ;;  %v894_v57 = vmul.f32 %v5846_v55, %v7628_v21  ;;  %v782_v58 = vpop.f32.mrb[9].mxu0 }
  0xff   : > { %v6727_v59 = vpop.eup %6726  ;;  %v1053_v60 = vadd.f32 1.0, %v6725_v56  ;;  %6738 = vpow2.f32 %v5480_v54  ;;  %v892_v61 = vmul.f32 %v7628_v21, %v782_v58  ;;  %v5847_v62 = vpop.f32.mrb[10].mxu0 }
 0x100   : > { %v6729_v63 = vpop.eup %6728  ;;  %v1051_v0 = vadd.f32 1.0, %v6727_v59  ;;  %v7678_v1 = vadd.f32 %v7633_v23, %v894_v57  ;;  %v895_v2 = vmul.f32 %v5847_v62, %v7628_v21  ;;  %v785_v3 = vpop.f32.mrb[11].mxu0 }
 0x101   : > { %v6731_v4 = vpop.eup %6730  ;;  %6740 = vrcp.f32 %v1053_v60  ;;  %v1054_v5 = vadd.f32 1.0, %v6729_v63  ;;  %v7682_v6 = vadd.f32 %v7633_v23, %v892_v61  ;;  %v893_v7 = vmul.f32 %v7628_v21, %v785_v3 }
 0x102   : > { %6742 = vrcp.f32 %v1051_v0  ;;  %v1052_v8 = vadd.f32 1.0, %v6731_v4  ;;  %v5485_v9 = vmul.f32 -1.442695, %v7678_v1  ;;  %v7687_v10 = vadd.f32 %v7633_v23, %v895_v2 }
 0x103   : > { %6744 = vrcp.f32 %v1054_v5  ;;  %v5483_v11 = vmul.f32 -1.442695, %v7682_v6  ;;  %v7691_v12 = vadd.f32 %v7633_v23, %v893_v7 }
 0x104   : > { %6746 = vrcp.f32 %v1052_v8  ;;  %v5486_v13 = vmul.f32 -1.442695, %v7687_v10 }
 0x105   : > { %6748 = vpow2.f32 %v5485_v9  ;;  %v5484_v14 = vmul.f32 -1.442695, %v7691_v12  ;;  %v5850_v15 = vpop.f32.mrb[12].mxu0 }
 0x106   : > { %v6733_v16 = vpop.eup %6732  ;;  %6750 = vpow2.f32 %v5483_v11  ;;  %v898_v17 = vmul.f32 %v5850_v15, %v7628_v21  ;;  %v798_v18 = vpop.f32.mrb[13].mxu0 }
 0x107   : > { %v6735_v19 = vpop.eup %6734  ;;  %v1057_v22 = vadd.f32 1.0, %v6733_v16  ;;  %6752 = vpow2.f32 %v5486_v13  ;;  %v896_v24 = vmul.f32 %v7628_v21, %v798_v18  ;;  %v5851_v25 = vpop.f32.mrb[14].mxu0 }
 0x108   : > { %v6737_v26 = vpop.eup %6736  ;;  %v1055_v27 = vadd.f32 1.0, %v6735_v19  ;;  %6754 = vpow2.f32 %v5484_v14  ;;  %v7698_v29 = vadd.f32 %v7633_v23, %v898_v17  ;;  %v899_v30 = vmul.f32 %v5851_v25, %v7628_v21  ;;  %v801_v32 = vpop.f32.mrb[15].mxu0 }
 0x109   : > { %v6739_v33 = vpop.eup %6738  ;;  %6756 = vrcp.f32 %v1057_v22  ;;  %v1058_v35 = vadd.f32 1.0, %v6737_v26  ;;  %v7702_v37 = vadd.f32 %v7633_v23, %v896_v24  ;;  %v897_v38 = vmul.f32 %v7628_v21, %v801_v32 }
 0x10a   : > { %6758 = vrcp.f32 %v1055_v27  ;;  %v1056_v39 = vadd.f32 1.0, %v6739_v33  ;;  %v5489_v40 = vmul.f32 -1.442695, %v7698_v29  ;;  %v7707_v41 = vadd.f32 %v7633_v23, %v899_v30 }
 0x10b   : > { %v6741_v42 = vpop.eup %6740  ;;  %6760 = vrcp.f32 %v1058_v35  ;;  %v5487_v43 = vmul.f32 -1.442695, %v7702_v37  ;;  %v7711_v45 = vadd.f32 %v7633_v23, %v897_v38 }
 0x10c   : > { %v6743_v46 = vpop.eup %6742  ;;  %6762 = vrcp.f32 %v1056_v39  ;;  %v5490_v48 = vmul.f32 -1.442695, %v7707_v41  ;;  %v7716_v55 = vmul.f32 %v6741_v42, %v7638_v28 }
 0x10d   : > { %v6745_v49 = vpop.eup %6744  ;;  %6764 = vpow2.f32 %v5489_v40  ;;  %v5488_v51 = vmul.f32 -1.442695, %v7711_v45  ;;  %v5854_v53 = vpop.f32.mrb[16].mxu0  ;;  %v7723_v60 = vmul.f32 %v6743_v46, %v7642_v31 }
 0x10e   : > { %v6747_v54 = vpop.eup %6746  ;;  %v7719_v56 = vmul.f32 %v6745_v49, %v7647_v34  ;;  %6766 = vpow2.f32 %v5487_v43  ;;  %v902_v57 = vmul.f32 %v5854_v53, %v7628_v21  ;;  %v814_v58 = vpop.f32.mrb[17].mxu0 }
 0x10f   : > { %v6749_v59 = vpop.eup %6748  ;;  %6768 = vpow2.f32 %v5490_v48  ;;  %v7726_v61 = vmul.f32 %v6747_v54, %v7651_v36  ;;  %v900_v62 = vmul.f32 %v7628_v21, %v814_v58  ;;  %v5855_v63 = vpop.f32.mrb[18].mxu0 }
 0x110   : > { %v6751_v28 = vpop.eup %6750  ;;  %v1236_v34 = vpack.c.bf16 %v7719_v56, %v7716_v55  ;;  %v1061_v0 = vadd.f32 1.0, %v6749_v59  ;;  %6770 = vpow2.f32 %v5488_v51  ;;  %v7732_v2 = vadd.f32 %v7633_v23, %v902_v57  ;;  %v817_v3 = vpop.f32.mrb[19].mxu0 }
 0x111   : > { %v6753_v4 = vpop.eup %6752  ;;  %v1059_v5 = vadd.f32 1.0, %v6751_v28  ;;  %v1235_v31 = vpack.c.bf16 %v7726_v61, %v7723_v60  ;;  %v7737_v36 = vadd.f32 %v7633_v23, %v900_v62  ;;  %v903_v7 = vmul.f32 %v5855_v63, %v7628_v21 }
 0x112   : > { %v6755_v8 = vpop.eup %6754  ;;  %6772 = vrcp.f32 %v1061_v0  ;;  %v1062_v9 = vadd.f32 1.0, %v6753_v4  ;;  %v5493_v11 = vmul.f32 -1.442695, %v7732_v2  ;;  %v901_v13 = vmul.f32 %v7628_v21, %v817_v3 }
 0x113   : > { %v6757_v14 = vpop.eup %6756  ;;  %6774 = vrcp.f32 %v1059_v5  ;;  %v1060_v15 = vadd.f32 1.0, %v6755_v8  ;;  %5870 = vmatprep.mubr.msk.bf16.mxu1 %vm663_vm1, %v1235_v31  ;;  %v5491_v16 = vmul.f32 -1.442695, %v7737_v36  ;;  %v7745_v17 = vadd.f32 %v7633_v23, %v903_v7 }
 0x114   : > { %v6759_v18 = vpop.eup %6758  ;;  %6776 = vrcp.f32 %v1062_v9  ;;  %5871 = vmatmul.mubr.msk.bf16.vlgmr.msra.gmra.mrb[0].mxu1 %vm663_vm1, %v1236_v34  ;;  %v7749_v19 = vadd.f32 %v7633_v23, %v901_v13  ;;  %v7752_v24 = vmul.f32 %v6757_v14, %v7658_v44 }
 0x115   : > { %v6761_v22 = vpop.eup %6760  ;;  %6778 = vrcp.f32 %v1060_v15  ;;  %v5494_v25 = vmul.f32 -1.442695, %v7745_v17  ;;  %v5858_v26 = vpop.f32.mrb[20].mxu0  ;;  %v7761_v39 = vmul.f32 %v6759_v18, %v7662_v47 }
 0x116   : > { %v6763_v27 = vpop.eup %6762  ;;  %v7756_v30 = vmul.f32 %v6761_v22, %v7667_v50  ;;  %6780 = vpow2.f32 %v5493_v11  ;;  %v5492_v32 = vmul.f32 -1.442695, %v7749_v19  ;;  %v906_v33 = vmul.f32 %v5858_v26, %v7628_v21  ;;  %v830_v35 = vpop.f32.mrb[21].mxu0 }
 0x117   : > { %v6765_v38 = vpop.eup %6764  ;;  %v7764_v44 = vmul.f32 %v6763_v27, %v7671_v52  ;;  %6782 = vpow2.f32 %v5491_v16  ;;  %v904_v40 = vmul.f32 %v7628_v21, %v830_v35  ;;  %v5859_v42 = vpop.f32.mrb[22].mxu0 }
 0x118   : > { %v6767_v43 = vpop.eup %6766  ;;  %v1238_v50 = vpack.c.bf16 %v7756_v30, %v7752_v24  ;;  %v1065_v46 = vadd.f32 1.0, %v6765_v38  ;;  %6784 = vpow2.f32 %v5494_v25  ;;  %v7770_v48 = vadd.f32 %v7633_v23, %v906_v33  ;;  %v833_v49 = vpop.f32.mrb[23].mxu0 }
 0x119   : > { %v6769_v51 = vpop.eup %6768  ;;  %v1237_v47 = vpack.c.bf16 %v7764_v44, %v7761_v39  ;;  %v1063_v52 = vadd.f32 1.0, %v6767_v43  ;;  %6786 = vpow2.f32 %v5492_v32  ;;  %v7775_v53 = vadd.f32 %v7633_v23, %v904_v40 }
 0x11a   : > { %v6771_v54 = vpop.eup %6770  ;;  %6788 = vrcp.f32 %v1065_v46  ;;  %v1066_v57 = vadd.f32 1.0, %v6769_v51  ;;  %v5497_v58 = vmul.f32 -1.442695, %v7770_v48  ;;  %v907_v59 = vmul.f32 %v5859_v42, %v7628_v21 }
 0x11b   : > { %6790 = vrcp.f32 %v1063_v52  ;;  %v1064_v62 = vadd.f32 1.0, %v6771_v54  ;;  %5874 = vmatprep.mubr.msk.bf16.mxu1 %vm663_vm1, %v1237_v47  ;;  %v5495_v63 = vmul.f32 -1.442695, %v7775_v53  ;;  %v905_v28 = vmul.f32 %v7628_v21, %v833_v49 }
 0x11c   : > { %v6773_v34 = vpop.eup %6772  ;;  %6792 = vrcp.f32 %v1066_v57  ;;  %5875 = vmatmul.mubr.msk.bf16.gmra.mrb[4].mxu1 %vm663_vm1, %v1238_v50  ;;  %v7784_v0 = vadd.f32 %v7633_v23, %v907_v59 }
 0x11d   : > { %v6775_v3 = vpop.eup %6774  ;;  %v7787_v4 = vmul.f32 %v6773_v34, %v7678_v1  ;;  %6794 = vrcp.f32 %v1064_v62  ;;  %v7790_v5 = vadd.f32 %v7633_v23, %v905_v28  ;;  %v5862_v31 = vpop.f32.mrb[24].mxu0 }
 0x11e   : > { %v6777_v7 = vpop.eup %6776  ;;  %v7793_v8 = vmul.f32 %v6775_v3, %v7682_v6  ;;  %6796 = vpow2.f32 %v5497_v58  ;;  %v5498_v9 = vmul.f32 -1.442695, %v7784_v0  ;;  %v910_v11 = vmul.f32 %v5862_v31, %v7628_v21  ;;  %v846_v13 = vpop.f32.mrb[25].mxu0 }
 0x11f   : > { %v6779_v14 = vpop.eup %6778  ;;  %v7798_v15 = vmul.f32 %v6777_v7, %v7687_v10  ;;  %6798 = vpow2.f32 %v5495_v63  ;;  %v5496_v1 = vmul.f32 -1.442695, %v7790_v5  ;;  %v908_v16 = vmul.f32 %v7628_v21, %v846_v13  ;;  %v5863_v18 = vpop.f32.mrb[26].mxu0 }
 0x120   : > { %v6781_v22 = vpop.eup %6780  ;;  %v7803_v6 = vmul.f32 %v6779_v14, %v7691_v12  ;;  %6800 = vpow2.f32 %v5498_v9  ;;  %v7806_v25 = vadd.f32 %v7633_v23, %v910_v11  ;;  %v911_v26 = vmul.f32 %v5863_v18, %v7628_v21  ;;  %v849_v27 = vpop.f32.mrb[27].mxu0 }
 0x121   : > { %v6783_v32 = vpop.eup %6782  ;;  %v1240_v10 = vpack.c.bf16 %v7798_v15, %v7787_v4  ;;  %v1069_v33 = vadd.f32 1.0, %v6781_v22  ;;  %6802 = vpow2.f32 %v5496_v1  ;;  %v7812_v35 = vadd.f32 %v7633_v23, %v908_v16 }
 0x122   : > { %v6785_v38 = vpop.eup %6784  ;;  %v1239_v12 = vpack.c.bf16 %v7803_v6, %v7793_v8  ;;  %v1067_v40 = vadd.f32 1.0, %v6783_v32  ;;  %v7817_v42 = vadd.f32 %v7633_v23, %v911_v26  ;;  %v5501_v46 = vmul.f32 -1.442695, %v7806_v25 }
 0x123   : > { %v6787_v43 = vpop.eup %6786  ;;  %6804 = vrcp.f32 %v1069_v33  ;;  %v1070_v50 = vadd.f32 1.0, %v6785_v38  ;;  %v909_v49 = vmul.f32 %v7628_v21, %v849_v27  ;;  %v5499_v52 = vmul.f32 -1.442695, %v7812_v35 }
 0x124   : > { %v6789_v51 = vpop.eup %6788  ;;  %5878 = vmatprep.mubr.msk.bf16.mxu1 %vm663_vm1, %v1239_v12  ;;  %6806 = vrcp.f32 %v1067_v40  ;;  %v1068_v47 = vadd.f32 1.0, %v6787_v43  ;;  %v5502_v58 = vmul.f32 -1.442695, %v7817_v42 }
 0x125   : > { %v6791_v54 = vpop.eup %6790  ;;  %v7824_v57 = vmul.f32 %v6789_v51, %v7698_v29  ;;  %5879 = vmatmul.mubr.msk.bf16.gmra.mrb[8].mxu1 %vm663_vm1, %v1240_v10  ;;  %6808 = vrcp.f32 %v1070_v50  ;;  %v7829_v59 = vadd.f32 %v7633_v23, %v909_v49  ;;  %v5866_v62 = vpop.f32.mrb[28].mxu0 }
 0x126   : > { %v6793_v63 = vpop.eup %6792  ;;  %v7832_v28 = vmul.f32 %v6791_v54, %v7702_v37  ;;  %6810 = vrcp.f32 %v1068_v47  ;;  %v914_v34 = vmul.f32 %v5866_v62, %v7628_v21  ;;  %v862_v3 = vpop.f32.mrb[29].mxu0 }
 0x127   : > { %v6795_v31 = vpop.eup %6794  ;;  %v7836_v29 = vmul.f32 %v6793_v63, %v7707_v41  ;;  %6812 = vpow2.f32 %v5501_v46  ;;  %v5500_v7 = vmul.f32 -1.442695, %v7829_v59  ;;  %v912_v9 = vmul.f32 %v7628_v21, %v862_v3  ;;  %v5867_v11 = vpop.f32.mrb[30].mxu0 }
 0x128   : > { %v6797_v13 = vpop.eup %6796  ;;  %v7841_v14 = vmul.f32 %v6795_v31, %v7711_v45  ;;  %6814 = vpow2.f32 %v5499_v52  ;;  %v7844_v37 = vadd.f32 %v7633_v23, %v914_v34  ;;  %v915_v1 = vmul.f32 %v5867_v11, %v7628_v21  ;;  %v865_v16 = vpop.f32.mrb[31].mxu0 }
 0x129   : > { %v6799_v18 = vpop.eup %6798  ;;  %v1242_v41 = vpack.c.bf16 %v7836_v29, %v7824_v57  ;;  %v1073_v22 = vadd.f32 1.0, %v6797_v13  ;;  %6816 = vpow2.f32 %v5502_v58  ;;  %v7850_v26 = vadd.f32 %v7633_v23, %v912_v9 }
 0x12a   : > { %v6801_v27 = vpop.eup %6800  ;;  %v1241_v45 = vpack.c.bf16 %v7841_v14, %v7832_v28  ;;  %v1071_v32 = vadd.f32 1.0, %v6799_v18  ;;  %6818 = vpow2.f32 %v5500_v7  ;;  %v5505_v38 = vmul.f32 -1.442695, %v7844_v37 }
 0x12b   : > { %v6803_v10 = vpop.eup %6802  ;;  %6820 = vrcp.f32 %v1073_v22  ;;  %v1074_v33 = vadd.f32 1.0, %v6801_v27  ;;  %v7856_v12 = vadd.f32 %v7633_v23, %v915_v1  ;;  %v5503_v43 = vmul.f32 -1.442695, %v7850_v26 }
 0x12c   : > { %5882 = vmatprep.mubr.msk.bf16.mxu1 %vm663_vm1, %v1241_v45  ;;  %6822 = vrcp.f32 %v1071_v32  ;;  %v1072_v40 = vadd.f32 1.0, %v6803_v10  ;;  %v913_v50 = vmul.f32 %v7628_v21, %v865_v16 }
 0x12d   : > { %v6805_v46 = vpop.eup %6804  ;;  %5883 = vmatmul.mubr.msk.bf16.gmra.mrb[12].mxu1 %vm663_vm1, %v1242_v41  ;;  %6824 = vrcp.f32 %v1074_v33  ;;  %v5506_v49 = vmul.f32 -1.442695, %v7856_v12 }
 0x12e   : > { %v6807_v51 = vpop.eup %6806  ;;  %v7864_v47 = vmul.f32 %v6805_v46, %v7732_v2  ;;  %6826 = vrcp.f32 %v1072_v40  ;;  %v7867_v52 = vadd.f32 %v7633_v23, %v913_v50 }
 0x12f   : > { %v6809_v54 = vpop.eup %6808  ;;  %v7870_v58 = vmul.f32 %v6807_v51, %v7737_v36  ;;  %6828 = vpow2.f32 %v5505_v38 }
 0x130   : > { %v6811_v21 = vpop.eup %6810  ;;  %v7873_v62 = vmul.f32 %v6809_v54, %v7745_v17  ;;  %6830 = vpow2.f32 %v5503_v43  ;;  %v5504_v63 = vmul.f32 -1.442695, %v7867_v52 }
 0x131   : > { %v6813_v34 = vpop.eup %6812  ;;  %v7877_v2 = vmul.f32 %v6811_v21, %v7749_v19  ;;  %6832 = vpow2.f32 %v5506_v49 }
 0x132   : > { %v6815_v3 = vpop.eup %6814  ;;  %v1244_v23 = vpack.c.bf16 %v7873_v62, %v7864_v47  ;;  %v1077_v31 = vadd.f32 1.0, %v6813_v34  ;;  %6834 = vpow2.f32 %v5504_v63 }
 0x133   : > { %v6817_v36 = vpop.eup %6816  ;;  %v1243_v7 = vpack.c.bf16 %v7877_v2, %v7870_v58  ;;  %v1075_v17 = vadd.f32 1.0, %v6815_v3 }
 0x134   : > { %v6819_v9 = vpop.eup %6818  ;;  %6836 = vrcp.f32 %v1077_v31  ;;  %v1078_v11 = vadd.f32 1.0, %v6817_v36 }
 0x135   : > { %v6821_v13 = vpop.eup %6820  ;;  %5886 = vmatprep.mubr.msk.bf16.mxu1 %vm663_vm1, %v1243_v7  ;;  %6838 = vrcp.f32 %v1075_v17  ;;  %v1076_v19 = vadd.f32 1.0, %v6819_v9 }
 0x136   : > { %v6823_v1 = vpop.eup %6822  ;;  %v7885_v16 = vmul.f32 %v6821_v13, %v7770_v48  ;;  %5887 = vmatmul.mubr.msk.bf16.gmra.mrb[16].mxu1 %vm663_vm1, %v1244_v23  ;;  %6840 = vrcp.f32 %v1078_v11  ;;  %v2021_v11 = vld [vmem:[#allocation2 + $0x198] sm:$0xff]  ;;  %v2022_v13 = vld [vmem:[#allocation2 + $0x1a0] sm:$0xff] }
 0x137   : > { %v6825_v18 = vpop.eup %6824  ;;  %v7889_v41 = vmul.f32 %v6823_v1, %v7775_v53  ;;  %6842 = vrcp.f32 %v1076_v19  ;;  %v1830_v19 = vld [vmem:[#allocation2 + $0x1] sm:$0xff]  ;;  %v6075_v1 = vpack.i.bf16 %v2022_v13, %v2021_v11 }
 0x138   : > { %9693 = vst [vmem:[#allocation3_spill] sm:$0xff] %v7885_v16  ;;  %v6827_v22 = vpop.eup %6826  ;;  %v7892_v27 = vmul.f32 %v6825_v18, %v7784_v0  ;;  %v1831_v18 = vld [vmem:[#allocation2 + $0x9] sm:$0xff] }
 0x139   : > { %9694 = vst [vmem:[#allocation4_spill] sm:$0xff] %v7889_v41  ;;  %v6829_v45 = vpop.eup %6828  ;;  %v7895_v32 = vmul.f32 %v6827_v22, %v7790_v5  ;;  %v6065_v22 = vpack.i.bf16 %v1831_v18, %v1830_v19 }
 0x13a   : > { %9695 = vst [vmem:[#allocation5_spill] sm:$0xff] %v7892_v27  ;;  %v6831_v10 = vpop.eup %6830  ;;  %v1246_v48 = vpack.c.bf16 %v7892_v27, %v7885_v16  ;;  %v1081_v33 = vadd.f32 1.0, %v6829_v45  ;;  %v2086_v27 = vld [vmem:[#allocation2 + $0x1a2] sm:$0xff] }
 0x13b   : > { %9696 = vst [vmem:[#allocation6_spill] sm:$0xff] %v7895_v32  ;;  %v6833_v38 = vpop.eup %6832  ;;  %v1245_v40 = vpack.c.bf16 %v7895_v32, %v7889_v41  ;;  %v1079_v53 = vadd.f32 1.0, %v6831_v10  ;;  %6066 = vrot.lane.b32.xlu0 %v6065_v22, %s7399_s29  ;;  %v7986_v10 = vld [vmem:[%s9667_s8] ss:$0 sm:$0xff] }
 0x13c   : > { %v6835_v43 = vpop.eup %6834  ;;  %6844 = vrcp.f32 %v1081_v33  ;;  %v1082_v50 = vadd.f32 1.0, %v6833_v38 }
 0x13d   : > { %5890 = vmatprep.mubr.msk.bf16.mxu1 %vm663_vm1, %v1245_v40  ;;  %6846 = vrcp.f32 %v1079_v53  ;;  %v1080_v0 = vadd.f32 1.0, %v6835_v43 }
 0x13e   : > { %v6837_v46 = vpop.eup %6836  ;;  %5891 = vmatmul.mubr.msk.bf16.gmra.mrb[20].mxu1 %vm663_vm1, %v1246_v48  ;;  %6848 = vrcp.f32 %v1082_v50 }
 0x13f   : > { %v6839_v5 = vpop.eup %6838  ;;  %v7904_v49 = vmul.f32 %v6837_v46, %v7806_v25  ;;  %6850 = vrcp.f32 %v1080_v0 }
 0x140   : > { %v6841_v51 = vpop.eup %6840  ;;  %v7907_v54 = vmul.f32 %v6839_v5, %v7812_v35 }
 0x141   : > { %9697 = vst [vmem:[#allocation7_spill] sm:$0xff] %v7904_v49  ;;  %v6843_v21 = vpop.eup %6842  ;;  %v7910_v63 = vmul.f32 %v6841_v51, %v7817_v42 }
 0x142   : > { %9698 = vst [vmem:[#allocation8_spill] sm:$0xff] %v7907_v54  ;;  %v7913_v34 = vmul.f32 %v6843_v21, %v7829_v59 }
 0x143   : > { %9699 = vst [vmem:[#allocation9_spill] sm:$0xff] %v7910_v63  ;;  %v1248_v3 = vpack.c.bf16 %v7910_v63, %v7904_v49 }
 0x144   : > { %9700 = vst [vmem:[#allocation10_spill] sm:$0xff] %v7913_v34  ;;  %v1247_v23 = vpack.c.bf16 %v7913_v34, %v7907_v54 }
 0x146   : > { %v6845_v25 = vpop.eup %6844  ;;  %5894 = vmatprep.mubr.msk.bf16.mxu1 %vm663_vm1, %v1247_v23 }
 0x147   : > { %v6847_v31 = vpop.eup %6846  ;;  %v7921_v35 = vmul.f32 %v6845_v25, %v7844_v37  ;;  %5895 = vmatmul.mubr.msk.bf16.gmra.mrb[24].mxu1 %vm663_vm1, %v1248_v3 }
 0x148   : > { %v6849_v42 = vpop.eup %6848  ;;  %v7925_v36 = vmul.f32 %v6847_v31, %v7850_v26  ;;  %v1862_v26 = vld [vmem:[#allocation2 + $0x2] sm:$0xff] }
 0x149   : > { %9701 = vst [vmem:[#allocation11_spill] sm:$0xff] %v7921_v35  ;;  %v6851_v59 = vpop.eup %6850  ;;  %v7928_v7 = vmul.f32 %v6849_v42, %v7856_v12  ;;  %v1863_v12 = vld [vmem:[#allocation2 + $0xa] sm:$0xff] }
 0x14a   : > { %9702 = vst [vmem:[#allocation12_spill] sm:$0xff] %v7925_v36  ;;  %v7931_v17 = vmul.f32 %v6851_v59, %v7867_v52  ;;  %v6070_v52 = vpack.i.bf16 %v1863_v12, %v1862_v26 }
 0x14b   : > { %9703 = vst [vmem:[#allocation13_spill] sm:$0xff] %v7928_v7  ;;  %v1250_v9 = vpack.c.bf16 %v7928_v7, %v7921_v35 }
 0x14c   : > { %9704 = vst [vmem:[#allocation14_spill] sm:$0xff] %v7931_v17  ;;  %v1249_v37 = vpack.c.bf16 %v7931_v17, %v7925_v36  ;;  %6071 = vrot.lane.b32.xlu1 %v6070_v52, %s7397_s27 }
 0x14e   : > { %5898 = vmatprep.mubr.msk.bf16.mxu1 %vm663_vm1, %v1249_v37 }
 0x14f   : > { %5899 = vmatmul.mubr.msk.bf16.gmra.mrb[28].mxu1 %vm663_vm1, %v1250_v9 }
 0x150   : > { %6076 = vrot.lane.b32.xlu1 %v6075_v1, %s7398_s28 }
 0x1e7   : > { %v5872_v45 = vpop.f32.mrb[0].mxu1 }
 0x1e8   : > { %v1472_v48 = vmul.f32 %v5872_v45, %v7981_v20  ;;  %v1336_v33 = vpop.f32.mrb[1].mxu1 }
 0x1e9   : > { %v1470_v38 = vmul.f32 %v7981_v20, %v1336_v33  ;;  %v5873_v40 = vpop.f32.mrb[2].mxu1 }
 0x1ea   : > { %v7991_v53 = vadd.f32 %v7986_v10, %v1472_v48  ;;  %v1473_v43 = vmul.f32 %v5873_v40, %v7981_v20  ;;  %v1339_v50 = vpop.f32.mrb[3].mxu1 }
 0x1eb   : > { %v7995_v0 = vadd.f32 %v7986_v10, %v1470_v38  ;;  %v1471_v46 = vmul.f32 %v7981_v20, %v1339_v50 }
 0x1ec   : > { %v5527_v5 = vmul.f32 -1.442695, %v7991_v53  ;;  %v8000_v51 = vadd.f32 %v7986_v10, %v1473_v43 }
 0x1ed   : > { %v5525_v21 = vmul.f32 -1.442695, %v7995_v0  ;;  %v8004_v3 = vadd.f32 %v7986_v10, %v1471_v46 }
 0x1ee   : > { %6852 = vpow2.f32 %v5527_v5  ;;  %v5528_v23 = vmul.f32 -1.442695, %v8000_v51 }
 0x1ef   : > { %6854 = vpow2.f32 %v5525_v21  ;;  %v5526_v25 = vmul.f32 -1.442695, %v8004_v3  ;;  %v5876_v31 = vpop.f32.mrb[4].mxu1 }
 0x1f0   : > { %6856 = vpow2.f32 %v5528_v23  ;;  %v1476_v42 = vmul.f32 %v5876_v31, %v7981_v20  ;;  %v1352_v59 = vpop.f32.mrb[5].mxu1 }
 0x1f1   : > { %6858 = vpow2.f32 %v5526_v25  ;;  %v1474_v9 = vmul.f32 %v7981_v20, %v1352_v59  ;;  %v5877_v37 = vpop.f32.mrb[6].mxu1 }
 0x1f2   : > { %v8011_v26 = vadd.f32 %v7986_v10, %v1476_v42  ;;  %v1477_v12 = vmul.f32 %v5877_v37, %v7981_v20  ;;  %v1355_v52 = vpop.f32.mrb[7].mxu1 }
 0x1f3   : > { %v8015_v11 = vadd.f32 %v7986_v10, %v1474_v9  ;;  %v1475_v13 = vmul.f32 %v7981_v20, %v1355_v52 }
 0x1f4   : > { %v5531_v19 = vmul.f32 -1.442695, %v8011_v26  ;;  %v8020_v1 = vadd.f32 %v7986_v10, %v1477_v12 }
 0x1f5   : > { %v5529_v18 = vmul.f32 -1.442695, %v8015_v11  ;;  %v8024_v22 = vadd.f32 %v7986_v10, %v1475_v13 }
 0x1f6   : > { %6860 = vpow2.f32 %v5531_v19  ;;  %v5532_v45 = vmul.f32 -1.442695, %v8020_v1 }
 0x1f7   : > { %6862 = vpow2.f32 %v5529_v18  ;;  %v5530_v48 = vmul.f32 -1.442695, %v8024_v22 }
 0x1f8   : > { %v6853_v33 = vpop.eup %6852  ;;  %6864 = vpow2.f32 %v5532_v45  ;;  %v5880_v38 = vpop.f32.mrb[8].mxu1 }
 0x1f9   : > { %v6855_v40 = vpop.eup %6854  ;;  %v1639_v43 = vadd.f32 1.0, %v6853_v33  ;;  %6866 = vpow2.f32 %v5530_v48  ;;  %v1480_v50 = vmul.f32 %v5880_v38, %v7981_v20  ;;  %v1368_v46 = vpop.f32.mrb[9].mxu1 }
 0x1fa   : > { %v6857_v5 = vpop.eup %6856  ;;  %v1637_v21 = vadd.f32 1.0, %v6855_v40  ;;  %v1478_v23 = vmul.f32 %v7981_v20, %v1368_v46  ;;  %v5881_v25 = vpop.f32.mrb[10].mxu1 }
 0x1fb   : > { %v6859_v31 = vpop.eup %6858  ;;  %6868 = vrcp.f32 %v1639_v43  ;;  %v1640_v42 = vadd.f32 1.0, %v6857_v5  ;;  %v8031_v59 = vadd.f32 %v7986_v10, %v1480_v50  ;;  %v1481_v9 = vmul.f32 %v5881_v25, %v7981_v20  ;;  %v1371_v37 = vpop.f32.mrb[11].mxu1 }
 0x1fc   : > { %6870 = vrcp.f32 %v1637_v21  ;;  %v1638_v12 = vadd.f32 1.0, %v6859_v31  ;;  %v8035_v52 = vadd.f32 %v7986_v10, %v1478_v23  ;;  %v1479_v13 = vmul.f32 %v7981_v20, %v1371_v37 }
 0x1fd   : > { %6872 = vrcp.f32 %v1640_v42  ;;  %v5535_v19 = vmul.f32 -1.442695, %v8031_v59  ;;  %v8040_v18 = vadd.f32 %v7986_v10, %v1481_v9 }
 0x1fe   : > { %6874 = vrcp.f32 %v1638_v12  ;;  %v5533_v45 = vmul.f32 -1.442695, %v8035_v52  ;;  %v8044_v48 = vadd.f32 %v7986_v10, %v1479_v13 }
 0x1ff   : > { %6876 = vpow2.f32 %v5535_v19  ;;  %v5536_v33 = vmul.f32 -1.442695, %v8040_v18 }
 0x200   : > { %v6861_v38 = vpop.eup %6860  ;;  %6878 = vpow2.f32 %v5533_v45  ;;  %v5534_v40 = vmul.f32 -1.442695, %v8044_v48  ;;  %v5884_v43 = vpop.f32.mrb[12].mxu1 }
 0x201   : > { %v6863_v50 = vpop.eup %6862  ;;  %v1643_v46 = vadd.f32 1.0, %v6861_v38  ;;  %6880 = vpow2.f32 %v5536_v33  ;;  %v1484_v5 = vmul.f32 %v5884_v43, %v7981_v20  ;;  %v1384_v21 = vpop.f32.mrb[13].mxu1 }
 0x202   : > { %v6865_v23 = vpop.eup %6864  ;;  %v1641_v25 = vadd.f32 1.0, %v6863_v50  ;;  %6882 = vpow2.f32 %v5534_v40  ;;  %v1482_v31 = vmul.f32 %v7981_v20, %v1384_v21  ;;  %v5885_v42 = vpop.f32.mrb[14].mxu1 }
 0x203   : > { %v6867_v9 = vpop.eup %6866  ;;  %6884 = vrcp.f32 %v1643_v46  ;;  %v1644_v37 = vadd.f32 1.0, %v6865_v23  ;;  %v8051_v12 = vadd.f32 %v7986_v10, %v1484_v5  ;;  %v1485_v13 = vmul.f32 %v5885_v42, %v7981_v20  ;;  %v1387_v19 = vpop.f32.mrb[15].mxu1 }
 0x204   : > { %6886 = vrcp.f32 %v1641_v25  ;;  %v1642_v45 = vadd.f32 1.0, %v6867_v9  ;;  %v8055_v33 = vadd.f32 %v7986_v10, %v1482_v31  ;;  %v1483_v38 = vmul.f32 %v7981_v20, %v1387_v19 }
 0x205   : > { %v6869_v40 = vpop.eup %6868  ;;  %6888 = vrcp.f32 %v1644_v37  ;;  %v5539_v43 = vmul.f32 -1.442695, %v8051_v12  ;;  %v8060_v50 = vadd.f32 %v7986_v10, %v1485_v13 }
 0x206   : > { %v6871_v46 = vpop.eup %6870  ;;  %v1735_v5 = vmul.f32 %v6869_v40, %v7991_v53  ;;  %6890 = vrcp.f32 %v1642_v45  ;;  %v5537_v21 = vmul.f32 -1.442695, %v8055_v33  ;;  %v8065_v23 = vadd.f32 %v7986_v10, %v1483_v38 }
 0x207   : > { %v6873_v25 = vpop.eup %6872  ;;  %v1733_v31 = vmul.f32 %v6871_v46, %v7995_v0  ;;  %6892 = vpow2.f32 %v5539_v43  ;;  %v5540_v42 = vmul.f32 -1.442695, %v8060_v50 }
 0x208   : > { %v6875_v9 = vpop.eup %6874  ;;  %1768 = vst.msk [vmem:[#allocation2 + $0x31] sm:$0xff] %vm663_vm1, %v1735_v5  ;;  %v1736_v37 = vmul.f32 %v6873_v25, %v8000_v51  ;;  %6894 = vpow2.f32 %v5537_v21  ;;  %v5538_v53 = vmul.f32 -1.442695, %v8065_v23 }
 0x209   : > { %v6877_v13 = vpop.eup %6876  ;;  %1766 = vst.msk [vmem:[#allocation2 + $0x19] sm:$0xff] %vm663_vm1, %v1733_v31  ;;  %v1734_v19 = vmul.f32 %v6875_v9, %v8004_v3  ;;  %6896 = vpow2.f32 %v5540_v42  ;;  %v5888_v45 = vpop.f32.mrb[16].mxu1 }
 0x20a   : > { %v6879_v38 = vpop.eup %6878  ;;  %1769 = vst.msk [vmem:[#allocation2 + $0x39] sm:$0xff] %vm663_vm1, %v1736_v37  ;;  %v1647_v0 = vadd.f32 1.0, %v6877_v13  ;;  %6898 = vpow2.f32 %v5538_v53  ;;  %v1488_v40 = vmul.f32 %v5888_v45, %v7981_v20  ;;  %v1400_v43 = vpop.f32.mrb[17].mxu1 }
 0x20b   : > { %v6881_v46 = vpop.eup %6880  ;;  %1767 = vst.msk [vmem:[#allocation2 + $0x21] sm:$0xff] %vm663_vm1, %v1734_v19  ;;  %v1645_v51 = vadd.f32 1.0, %v6879_v38  ;;  %v1486_v5 = vmul.f32 %v7981_v20, %v1400_v43  ;;  %v5889_v21 = vpop.f32.mrb[18].mxu1 }
 0x20c   : > { %v6883_v25 = vpop.eup %6882  ;;  %6900 = vrcp.f32 %v1647_v0  ;;  %v1648_v3 = vadd.f32 1.0, %v6881_v46  ;;  %v8079_v31 = vadd.f32 %v7986_v10, %v1488_v40  ;;  %v1489_v42 = vmul.f32 %v5889_v21, %v7981_v20  ;;  %v1403_v9 = vpop.f32.mrb[19].mxu1 }
 0x20d   : > { %v6885_v37 = vpop.eup %6884  ;;  %6902 = vrcp.f32 %v1645_v51  ;;  %v1646_v53 = vadd.f32 1.0, %v6883_v25  ;;  %v8083_v13 = vadd.f32 %v7986_v10, %v1486_v5  ;;  %v1487_v19 = vmul.f32 %v7981_v20, %v1403_v9 }
 0x20e   : > { %v6887_v45 = vpop.eup %6886  ;;  %v1739_v38 = vmul.f32 %v6885_v37, %v8011_v26  ;;  %6904 = vrcp.f32 %v1648_v3  ;;  %v5543_v0 = vmul.f32 -1.442695, %v8079_v31  ;;  %v8089_v40 = vadd.f32 %v7986_v10, %v1489_v42 }
 0x20f   : > { %v6889_v43 = vpop.eup %6888  ;;  %v1737_v46 = vmul.f32 %v6887_v45, %v8015_v11  ;;  %6906 = vrcp.f32 %v1646_v53  ;;  %v5541_v51 = vmul.f32 -1.442695, %v8083_v13  ;;  %v8094_v5 = vadd.f32 %v7986_v10, %v1487_v19  ;;  %v1991_v11 = vld [vmem:[#allocation2 + $0x30] sm:$0xff] }
 0x210   : > { %v6891_v21 = vpop.eup %6890  ;;  %1772 = vst.msk [vmem:[#allocation2 + $0x61] sm:$0xff] %vm663_vm1, %v1739_v38  ;;  %v1740_v26 = vmul.f32 %v6889_v43, %v8020_v1  ;;  %6908 = vpow2.f32 %v5543_v0  ;;  %v5544_v25 = vmul.f32 -1.442695, %v8089_v40 }
 0x211   : > { %v6893_v3 = vpop.eup %6892  ;;  %1770 = vst.msk [vmem:[#allocation2 + $0x49] sm:$0xff] %vm663_vm1, %v1737_v46  ;;  %v1738_v42 = vmul.f32 %v6891_v21, %v8024_v22  ;;  %v1992_v9 = vld [vmem:[#allocation2 + $0x38] sm:$0xff]  ;;  %6910 = vpow2.f32 %v5541_v51  ;;  %v5542_v37 = vmul.f32 -1.442695, %v8094_v5  ;;  %v5892_v53 = vpop.f32.mrb[20].mxu1 }
 0x212   : > { %v6895_v19 = vpop.eup %6894  ;;  %1773 = vst.msk [vmem:[#allocation2 + $0x69] sm:$0xff] %vm663_vm1, %v1740_v26  ;;  %v1651_v45 = vadd.f32 1.0, %v6893_v3  ;;  %v6095_v38 = vpack.i.bf16 %v1992_v9, %v1991_v11  ;;  %6912 = vpow2.f32 %v5544_v25  ;;  %v1416_v1 = vpop.f32.mrb[21].mxu1  ;;  %v2024_v46 = vld [vmem:[#allocation2 + $0x39] sm:$0xff]  ;;  %v2023_v25 = vld [vmem:[#allocation2 + $0x31] sm:$0xff]  ;;  %v1492_v11 = vmul.f32 %v5892_v53, %v7981_v20  ;;  %v1833_v34 = vld [vmem:[#allocation2 + $0x21] sm:$0xff] }
 0x213   : > { %v6897_v0 = vpop.eup %6896  ;;  %1771 = vst.msk [vmem:[#allocation2 + $0x51] sm:$0xff] %vm663_vm1, %v1738_v42  ;;  %v1649_v43 = vadd.f32 1.0, %v6895_v19  ;;  %6914 = vpow2.f32 %v5542_v37  ;;  %v5893_v22 = vpop.f32.mrb[22].mxu1  ;;  %v1490_v42 = vmul.f32 %v7981_v20, %v1416_v1  ;;  %v8108_v37 = vpack.i.bf16 %v2024_v46, %v2023_v25  ;;  %v1864_v46 = vld [vmem:[#allocation2 + $0x1a] sm:$0xff] }
 0x214   : > { %v6899_v21 = vpop.eup %6898  ;;  %6916 = vrcp.f32 %v1651_v45  ;;  %v1652_v51 = vadd.f32 1.0, %v6897_v0  ;;  %6096 = vrot.lane.b32.xlu0 %v6095_v38, %s7398_s28  ;;  %6081 = vrot.lane.b32.xlu1 %v6095_v38, %s7400_s20  ;;  %v1419_v26 = vpop.f32.mrb[23].mxu1  ;;  %v1493_v19 = vmul.f32 %v5893_v22, %v7981_v20  ;;  %v2055_v38 = vld [vmem:[#allocation2 + $0x32] sm:$0xff]  ;;  %v1865_v22 = vld [vmem:[#allocation2 + $0x22] sm:$0xff] }
 0x215   : > { %6918 = vrcp.f32 %v1649_v43  ;;  %v1650_v3 = vadd.f32 1.0, %v6899_v21  ;;  %v1491_v45 = vmul.f32 %v7981_v20, %v1419_v26  ;;  %v2056_v43 = vld [vmem:[#allocation2 + $0x3a] sm:$0xff]  ;;  %v8114_v21 = vadd.f32 %v7986_v10, %v1492_v11 }
 0x216   : > { %v6901_v9 = vpop.eup %6900  ;;  %6920 = vrcp.f32 %v1652_v51  ;;  %v8125_v51 = vadd.f32 %v7986_v10, %v1493_v19  ;;  %v8136_v19 = vpack.i.bf16 %v1865_v22, %v1864_v46 }
 0x217   : > { %v6903_v0 = vpop.eup %6902  ;;  %v1743_v17 = vmul.f32 %v6901_v9, %v8031_v59  ;;  %6922 = vrcp.f32 %v1650_v3  ;;  %v8122_v59 = vadd.f32 %v7986_v10, %v1490_v42  ;;  %v5547_v3 = vmul.f32 -1.442695, %v8114_v21 }
 0x218   : > { %v6905_v53 = vpop.eup %6904  ;;  %v1741_v1 = vmul.f32 %v6903_v0, %v8035_v52  ;;  %6101 = vrot.lane.b32.xlu0 %v8108_v37, %s7401_s21  ;;  %6086 = vrot.lane.b32.xlu1 %v8108_v37, %s7402_s22  ;;  %v8131_v25 = vadd.f32 %v7986_v10, %v1491_v45  ;;  %v6105_v42 = vpack.i.bf16 %v2056_v43, %v2055_v38  ;;  %v5548_v38 = vmul.f32 -1.442695, %v8125_v51 }
 0x219   : > { %v6907_v26 = vpop.eup %6906  ;;  %1776 = vst.msk [vmem:[#allocation2 + $0x91] sm:$0xff] %vm663_vm1, %v1743_v17  ;;  %v1744_v52 = vmul.f32 %v6905_v53, %v8040_v18  ;;  %6924 = vpow2.f32 %v5547_v3 }
 0x21a   : > { %v6909_v11 = vpop.eup %6908  ;;  %1774 = vst.msk [vmem:[#allocation2 + $0x79] sm:$0xff] %vm663_vm1, %v1741_v1  ;;  %v1742_v9 = vmul.f32 %v6907_v26, %v8044_v48  ;;  %v5896_v0 = vpop.f32.mrb[24].mxu1  ;;  %v5545_v48 = vmul.f32 -1.442695, %v8122_v59  ;;  %v5546_v46 = vmul.f32 -1.442695, %v8131_v25 }
 0x21b   : > { %v6911_v36 = vpop.eup %6910  ;;  %1777 = vst.msk [vmem:[#allocation2 + $0x99] sm:$0xff] %vm663_vm1, %v1744_v52  ;;  %v1655_v17 = vadd.f32 1.0, %v6909_v11  ;;  %v1432_v7 = vpop.f32.mrb[25].mxu1  ;;  %v1496_v22 = vmul.f32 %v5896_v0, %v7981_v20 }
 0x21c   : > { %v6913_v18 = vpop.eup %6912  ;;  %1775 = vst.msk [vmem:[#allocation2 + $0x81] sm:$0xff] %vm663_vm1, %v1742_v9  ;;  %6106 = vrot.lane.b32.xlu0 %v6105_v42, %s7403_s23  ;;  %6091 = vrot.lane.b32.xlu1 %v6105_v42, %s7404_s26  ;;  %v1653_v45 = vadd.f32 1.0, %v6911_v36  ;;  %v5897_v43 = vpop.f32.mrb[26].mxu1  ;;  %v1494_v9 = vmul.f32 %v7981_v20, %v1432_v7 }
 0x21d   : > { %v6915_v53 = vpop.eup %6914  ;;  %6926 = vrcp.f32 %v1655_v17  ;;  %v1656_v1 = vadd.f32 1.0, %v6913_v18  ;;  %v1435_v26 = vpop.f32.mrb[27].mxu1  ;;  %v1497_v36 = vmul.f32 %v5897_v43, %v7981_v20  ;;  %v8149_v17 = vadd.f32 %v7986_v10, %v1496_v22 }
 0x21e   : > { %v6917_v52 = vpop.eup %6916  ;;  %6928 = vrcp.f32 %v1653_v45  ;;  %v1654_v11 = vadd.f32 1.0, %v6915_v53  ;;  %v1495_v18 = vmul.f32 %v7981_v20, %v1435_v26  ;;  %v8157_v7 = vadd.f32 %v7986_v10, %v1494_v9  ;;  %v1832_v53 = vld [vmem:[#allocation2 + $0x19] sm:$0xff]  ;;  %v1901_v26 = vld [vmem:[#allocation2 + $0x68] sm:$0xff] }
 0x21f   : > { %v6919_v3 = vpop.eup %6918  ;;  %v1747_v35 = vmul.f32 %v6917_v52, %v8051_v12  ;;  %6930 = vrcp.f32 %v1656_v1  ;;  %v8160_v12 = vadd.f32 %v7986_v10, %v1497_v36  ;;  %v8164_v1 = vld [vmem:[#allocation2 + $0x20] sm:$0xff]  ;;  %v6120_v22 = vpack.i.bf16 %v1833_v34, %v1832_v53  ;;  %v1933_v53 = vld [vmem:[#allocation2 + $0x69] sm:$0xff] }
 0x220   : > { %v6921_v54 = vpop.eup %6920  ;;  %v1745_v0 = vmul.f32 %v6919_v3, %v8055_v33  ;;  %6116 = vrot.lane.b32.xlu0 %v6105_v42, %s7397_s27  ;;  %6111 = vrot.lane.b32.xlu1 %v8108_v37, %s7399_s29  ;;  %6932 = vrcp.f32 %v1654_v11  ;;  %v5551_v33 = vmul.f32 -1.442695, %v8149_v17  ;;  %v8168_v37 = vadd.f32 %v7986_v10, %v1495_v18 }
 0x221   : > { %v6923_v45 = vpop.eup %6922  ;;  %1780 = vst.msk [vmem:[#allocation2 + $0xc1] sm:$0xff] %vm663_vm1, %v1747_v35  ;;  %v1748_v43 = vmul.f32 %v6921_v54, %v8060_v50  ;;  %6934 = vpow2.f32 %v5545_v48  ;;  %v5549_v35 = vmul.f32 -1.442695, %v8157_v7  ;;  %v8174_v54 = vld [vmem:[#allocation2 + $0x18] sm:$0xff]  ;;  %v5552_v50 = vmul.f32 -1.442695, %v8160_v12 }
 0x222   : > { %1778 = vst.msk [vmem:[#allocation2 + $0xa9] sm:$0xff] %vm663_vm1, %v1745_v0  ;;  %v1746_v42 = vmul.f32 %v6923_v45, %v8065_v23  ;;  %6936 = vpow2.f32 %v5548_v38  ;;  %v5900_v52 = vpop.f32.mrb[28].mxu1  ;;  %v6130_v34 = vpack.i.bf16 %v8164_v1, %v8174_v54  ;;  %v1900_v23 = vld [vmem:[#allocation2 + $0x60] sm:$0xff] }
 0x223   : > { %1781 = vst.msk [vmem:[#allocation2 + $0xc9] sm:$0xff] %vm663_vm1, %v1748_v43  ;;  %6938 = vpow2.f32 %v5546_v46  ;;  %v1448_v48 = vpop.f32.mrb[29].mxu1  ;;  %v8183_v11 = vpack.i.bf16 %v1901_v26, %v1900_v23  ;;  %v5550_v46 = vmul.f32 -1.442695, %v8168_v37  ;;  %v1500_v9 = vmul.f32 %v5900_v52, %v7981_v20  ;;  %v6925_v3 = vpop.eup %6924  ;;  %v1932_v23 = vld [vmem:[#allocation2 + $0x61] sm:$0xff] }
 0x224   : > { %1779 = vst.msk [vmem:[#allocation2 + $0xb1] sm:$0xff] %vm663_vm1, %v1746_v42  ;;  %6126 = vrot.lane.b32.xlu1 %v8136_v19, %s7397_s27  ;;  %6121 = vrot.lane.b32.xlu0 %v6120_v22, %s7399_s29  ;;  %6940 = vpow2.f32 %v5551_v33  ;;  %v5901_v38 = vpop.f32.mrb[30].mxu1  ;;  %v1498_v18 = vmul.f32 %v7981_v20, %v1448_v48  ;;  %v1659_v33 = vadd.f32 1.0, %v6925_v3 }
 0x225   : > { %6942 = vpow2.f32 %v5549_v35  ;;  %v1451_v36 = vpop.f32.mrb[31].mxu1  ;;  %v1501_v0 = vmul.f32 %v5901_v38, %v7981_v20  ;;  %v8191_v42 = vadd.f32 %v7986_v10, %v1500_v9  ;;  %v6150_v9 = vpack.i.bf16 %v1933_v53, %v1932_v23 }
 0x226   : > { %6944 = vpow2.f32 %v5552_v50  ;;  %v1499_v45 = vmul.f32 %v7981_v20, %v1451_v36  ;;  %v8198_v52 = vadd.f32 %v7986_v10, %v1498_v18  ;;  %v1964_v18 = vld [vmem:[#allocation2 + $0x62] sm:$0xff] }
 0x227   : > { %v6927_v43 = vpop.eup %6926  ;;  %6946 = vpow2.f32 %v5550_v46  ;;  %v8201_v20 = vadd.f32 %v7986_v10, %v1501_v0  ;;  %v5555_v38 = vmul.f32 -1.442695, %v8191_v42  ;;  %v1965_v0 = vld [vmem:[#allocation2 + $0x6a] sm:$0xff] }
 0x228   : > { %v6929_v26 = vpop.eup %6928  ;;  %v1751_v35 = vmul.f32 %v6927_v43, %v8079_v31  ;;  %6131 = vrot.lane.b32.xlu0 %v6130_v34, %s7400_s20  ;;  %6146 = vrot.lane.b32.xlu1 %v8183_v11, %s7400_s20  ;;  %6948 = vrcp.f32 %v1659_v33  ;;  %v8206_v31 = vadd.f32 %v7986_v10, %v1499_v45  ;;  %v5553_v36 = vmul.f32 -1.442695, %v8198_v52 }
 0x229   : > { %v6931_v50 = vpop.eup %6930  ;;  %v1749_v48 = vmul.f32 %v6929_v26, %v8083_v13  ;;  %6950 = vpow2.f32 %v5555_v38  ;;  %v8217_v33 = vpack.i.bf16 %v1965_v0, %v1964_v18  ;;  %v8234_v0 = vld [vmem:[#allocation2 + $0x48] sm:$0xff] }
 0x22a   : > { %v6933_v34 = vpop.eup %6932  ;;  %1784 = vst.msk [vmem:[#allocation2 + $0xf1] sm:$0xff] %vm663_vm1, %v1751_v35  ;;  %v1752_v46 = vmul.f32 %v6931_v50, %v8089_v40  ;;  %6952 = vpow2.f32 %v5553_v36  ;;  %v5554_v36 = vmul.f32 -1.442695, %v8206_v31 }
 0x22b   : > { %v6935_v3 = vpop.eup %6934  ;;  %1782 = vst.msk [vmem:[#allocation2 + $0xd9] sm:$0xff] %vm663_vm1, %v1749_v48  ;;  %v1750_v13 = vmul.f32 %v6933_v34, %v8094_v5  ;;  %v6721_v48 = vld [vmem:[%s9668_s9] sm:$0xff]   ;;  %v5556_v34 = vmul.f32 -1.442695, %v8201_v20 }
 0x22c   : > { %v6937_v43 = vpop.eup %6936  ;;  %1785 = vst.msk [vmem:[#allocation2 + $0xf9] sm:$0xff] %vm663_vm1, %v1752_v46  ;;  %6136 = vrot.lane.b32.xlu0 %v6120_v22, %s7402_s22  ;;  %6151 = vrot.lane.b32.xlu1 %v6150_v9, %s7402_s22  ;;  %v1657_v10 = vadd.f32 1.0, %v6935_v3  ;;  %v8228_v3 = vld [vmem:[#allocation2 + $0x50] sm:$0xff] }
 0x22d   : > { %v6939_v40 = vpop.eup %6938  ;;  %1783 = vst.msk [vmem:[#allocation2 + $0xe1] sm:$0xff] %vm663_vm1, %v1750_v13  ;;  %v1660_v45 = vadd.f32 1.0, %v6937_v43  ;;  %5902 = vmatprep.subr.bf16.mxu0 %v6721_v48  ;;  %v6722_v43 = vld [vmem:[%s9668_s9 + $0x8] sm:$0xff]  }
 0x22e   : > { %v6941_v53 = vpop.eup %6940  ;;  %6954 = vrcp.f32 %v1657_v10  ;;  %v1658_v5 = vadd.f32 1.0, %v6939_v40  ;;  %5903 = vmatpush3.bf16.msra.mxu0 %v6721_v48  ;;  %v8241_v10 = vpack.i.bf16 %v8228_v3, %v8234_v0 }
 0x22f   : > { %v6943_v26 = vpop.eup %6942  ;;  %6956 = vrcp.f32 %v1660_v45  ;;  %v1663_v35 = vadd.f32 1.0, %v6941_v53  ;;  %v2026_v45 = vld [vmem:[#allocation2 + $0x51] sm:$0xff]  ;;  %5904 = vmatprep.subr.bf16.mxu0 %v6722_v43 }
 0x230   : > { %v6945_v50 = vpop.eup %6944  ;;  %6141 = vrot.lane.b32.xlu0 %v8136_v19, %s7404_s26  ;;  %6156 = vrot.lane.b32.xlu1 %v8217_v33, %s7404_s26  ;;  %6958 = vrcp.f32 %v1658_v5  ;;  %v1661_v22 = vadd.f32 1.0, %v6943_v26  ;;  %v6723_v5 = vld [vmem:[%s9668_s9 + $0x10] ss:$0 sps:$4 sm:$0x33]  }
 0x231   : > { %v6947_v23 = vpop.eup %6946  ;;  %6960 = vrcp.f32 %v1663_v35  ;;  %v1664_v38 = vadd.f32 1.0, %v6945_v50  ;;  %v2025_v35 = vld [vmem:[#allocation2 + $0x49] sm:$0xff] }
 0x232   : > { %6962 = vrcp.f32 %v1661_v22  ;;  %v1662_v46 = vadd.f32 1.0, %v6947_v23  ;;  %v6949_v19 = vpop.eup %6948  ;;  %5905 = vmatpush3.bf16.msra.mxu0 %v6722_v43  ;;  %v6190_v48 = vpack.i.bf16 %v2026_v45, %v2025_v35  ;;  %v2058_v43 = vld [vmem:[#allocation2 + $0x52] sm:$0xff] }
 0x233   : > { %6964 = vrcp.f32 %v1664_v38  ;;  %v1755_v13 = vmul.f32 %v6949_v19, %v8114_v21  ;;  %v6951_v18 = vpop.eup %6950  ;;  %6044 = vmatprep.subr.msk.bf16.mxu0 %vm712_vm0, %v6723_v5  ;;  %v1937_v35 = vld [vmem:[#allocation2 + $0x99] sm:$0xff] }
 0x234   : > { %6161 = vrot.lane.b32.xlu0 %v8183_v11, %s7398_s28  ;;  %6176 = vrot.lane.b32.xlu1 %v6150_v9, %s7399_s29  ;;  %6966 = vrcp.f32 %v1662_v46  ;;  %v1667_v11 = vadd.f32 1.0, %v6951_v18  ;;  %v6953_v40 = vpop.eup %6952  ;;  %v2057_v18 = vld [vmem:[#allocation2 + $0x4a] sm:$0xff] }
 0x235   : > { %6968 = vpow2.f32 %v5556_v34  ;;  %1788 = vst.msk [vmem:[#allocation2 + $0x121] sm:$0xff] %vm663_vm1, %v1755_v13  ;;  %v1665_v53 = vadd.f32 1.0, %v6953_v40  ;;  %v6195_v45 = vpack.i.bf16 %v2058_v43, %v2057_v18  ;;  %v1909_v18 = vld [vmem:[#allocation2 + $0xc8] sm:$0xff] }
 0x236   : > { %6970 = vpow2.f32 %v5554_v36 }
 0x237   : > { %6972 = vrcp.f32 %v1667_v11 }
 0x238   : > { %v6955_v21 = vpop.eup %6954  ;;  %6166 = vrot.lane.b32.xlu0 %v6150_v9, %s7401_s21  ;;  %6186 = vrot.lane.b32.xlu1 %v8241_v10, %s7398_s28  ;;  %6974 = vrcp.f32 %v1665_v53  ;;  %v3460_v9 = vsel %vm712_vm0, %v6723_v5, 0 }
 0x239   : > { %v6957_v26 = vpop.eup %6956  ;;  %v1753_v50 = vmul.f32 %v6955_v21, %v8122_v59  ;;  %5907 = vmatpush3.bf16.msra.mxu0 %v3460_v9  ;;  %v1905_v21 = vld [vmem:[#allocation2 + $0x98] sm:$0xff] }
 0x23a   : > { %v6959_v22 = vpop.eup %6958  ;;  %v1756_v23 = vmul.f32 %v6957_v26, %v8125_v51 }
 0x23b   : > { %v6961_v38 = vpop.eup %6960  ;;  %1786 = vst.msk [vmem:[#allocation2 + $0x109] sm:$0xff] %vm663_vm1, %v1753_v50  ;;  %v1754_v34 = vmul.f32 %v6959_v22, %v8131_v25  ;;  %v1968_v22 = vld [vmem:[#allocation2 + $0x92] sm:$0xff] }
 0x23c   : > { %v6963_v46 = vpop.eup %6962  ;;  %6171 = vrot.lane.b32.xlu0 %v8217_v33, %s7403_s23  ;;  %6191 = vrot.lane.b32.xlu1 %v6190_v48, %s7401_s21  ;;  %1789 = vst.msk [vmem:[#allocation2 + $0x129] sm:$0xff] %vm663_vm1, %v1756_v23  ;;  %v1759_v59 = vmul.f32 %v6961_v38, %v8149_v17  ;;  %v1969_v23 = vld [vmem:[#allocation2 + $0x9a] sm:$0xff] }
 0x23d   : > { %v6965_v51 = vpop.eup %6964  ;;  %1787 = vst.msk [vmem:[#allocation2 + $0x111] sm:$0xff] %vm663_vm1, %v1754_v34  ;;  %v1757_v36 = vmul.f32 %v6963_v46, %v8157_v7  ;;  %v6235_v34 = vpack.i.bf16 %v1969_v23, %v1968_v22  ;;  %v6067_v23 = vpop.permute.xlu0 %6066 }
 0x23e   : > { %v6967_v19 = vpop.eup %6966  ;;  %1792 = vst.msk [vmem:[#allocation2 + $0x151] sm:$0xff] %vm663_vm1, %v1759_v59  ;;  %v1760_v25 = vmul.f32 %v6965_v51, %v8160_v12  ;;  %v2030_v51 = vld [vmem:[#allocation2 + $0x81] sm:$0xff] }
 0x23f   : > { %v6969_v13 = vpop.eup %6968  ;;  %1790 = vst.msk [vmem:[#allocation2 + $0x139] sm:$0xff] %vm663_vm1, %v1757_v36  ;;  %v1758_v11 = vmul.f32 %v6967_v19, %v8168_v37  ;;  %v2061_v36 = vld [vmem:[#allocation2 + $0x7a] sm:$0xff]  ;;  %v2062_v19 = vld [vmem:[#allocation2 + $0x82] sm:$0xff] }
 0x240   : > { %v6971_v40 = vpop.eup %6970  ;;  %6181 = vrot.lane.b32.xlu0 %v8217_v33, %s7397_s27  ;;  %6201 = vrot.lane.b32.xlu1 %v6190_v48, %s7399_s29  ;;  %1793 = vst.msk [vmem:[#allocation2 + $0x159] sm:$0xff] %vm663_vm1, %v1760_v25  ;;  %v1668_v17 = vadd.f32 1.0, %v6969_v13  ;;  %v1904_v33 = vld [vmem:[#allocation2 + $0x90] sm:$0xff]  ;;  %v6275_v25 = vpack.i.bf16 %v2062_v19, %v2061_v36  ;;  %v1908_v13 = vld [vmem:[#allocation2 + $0xc0] sm:$0xff] }
 0x241   : > { %1791 = vst.msk [vmem:[#allocation2 + $0x141] sm:$0xff] %vm663_vm1, %v1758_v11  ;;  %v1666_v7 = vadd.f32 1.0, %v6971_v40  ;;  %v6973_v12 = vpop.eup %6972  ;;  %v6225_v26 = vpack.i.bf16 %v1905_v21, %v1904_v33  ;;  %v6305_v43 = vpack.i.bf16 %v1909_v18, %v1908_v13  ;;  %v1940_v11 = vld [vmem:[#allocation2 + $0xc1] sm:$0xff]  ;;  %v1941_v40 = vld [vmem:[#allocation2 + $0xc9] sm:$0xff]  ;;  %v1976_v36 = vld [vmem:[#allocation2 + $0xf2] sm:$0xff] }
 0x242   : > { %6976 = vrcp.f32 %v1668_v17  ;;  %v1763_v53 = vmul.f32 %v6973_v12, %v8191_v42  ;;  %v6975_v37 = vpop.eup %6974  ;;  %v1936_v42 = vld [vmem:[#allocation2 + $0x91] sm:$0xff]  ;;  %v6310_v17 = vpack.i.bf16 %v1941_v40, %v1940_v11  ;;  %v2001_v21 = vld [vmem:[#allocation2 + $0xa8] sm:$0xff]  ;;  %v1977_v19 = vld [vmem:[#allocation2 + $0xfa] sm:$0xff] }
 0x243   : > { %6978 = vrcp.f32 %v1666_v7  ;;  %v1761_v5 = vmul.f32 %v6975_v37, %v8198_v52  ;;  %v6230_v50 = vpack.i.bf16 %v1937_v35, %v1936_v42  ;;  %v1972_v7 = vld [vmem:[#allocation2 + $0xc2] sm:$0xff]  ;;  %v1973_v12 = vld [vmem:[#allocation2 + $0xca] sm:$0xff]  ;;  %v8309_v35 = vpop.permute.xlu1 %6071  ;;  %v6395_v18 = vpack.i.bf16 %v1977_v19, %v1976_v36  ;;  %v2005_v40 = vld [vmem:[#allocation2 + $0xd8] sm:$0xff] }
 0x244   : > { %6196 = vrot.lane.b32.xlu0 %v6195_v45, %s7403_s23  ;;  %6206 = vrot.lane.b32.xlu1 %v6195_v45, %s7397_s27  ;;  %1796 = vst.msk [vmem:[#allocation2 + $0x181] sm:$0xff] %vm663_vm1, %v1763_v53  ;;  %v2002_v53 = vld [vmem:[#allocation2 + $0xb0] sm:$0xff] }
 0x245   : > { %1794 = vst.msk [vmem:[#allocation2 + $0x169] sm:$0xff] %vm663_vm1, %v1761_v5  ;;  %v6345_v37 = vpack.i.bf16 %v2002_v53, %v2001_v21  ;;  %v2033_v33 = vld [vmem:[#allocation2 + $0xa9] sm:$0xff]  ;;  %v2034_v5 = vld [vmem:[#allocation2 + $0xb1] sm:$0xff]  ;;  %v2037_v21 = vld [vmem:[#allocation2 + $0xd9] sm:$0xff] }
 0x246   : > { %v2065_v42 = vld [vmem:[#allocation2 + $0xaa] sm:$0xff]  ;;  %v2038_v53 = vld [vmem:[#allocation2 + $0xe1] sm:$0xff] }
 0x247   : > { %v8315_v22 = vpop.permute.xlu1 %6076 }
 0x248   : > { %6211 = vrot.lane.b32.xlu0 %v8241_v10, %s7400_s20  ;;  %6226 = vrot.lane.b32.xlu1 %v6225_v26, %s7400_s20  ;;  %v1998_v10 = vld [vmem:[#allocation2 + $0x80] sm:$0xff] }
 0x24c   : > { %v6977_v9 = vpop.eup %6976  ;;  %6216 = vrot.lane.b32.xlu0 %v6190_v48, %s7402_s22  ;;  %6231 = vrot.lane.b32.xlu1 %v6230_v50, %s7402_s22  ;;  %v1997_v48 = vld [vmem:[#allocation2 + $0x78] sm:$0xff] }
 0x24d   : > { %v6979_v38 = vpop.eup %6978  ;;  %v1764_v52 = vmul.f32 %v6977_v9, %v8201_v20  ;;  %v6265_v59 = vpack.i.bf16 %v1998_v10, %v1997_v48  ;;  %v2029_v20 = vld [vmem:[#allocation2 + $0x79] sm:$0xff]  ;;  %v1944_v48 = vld [vmem:[#allocation2 + $0xf1] sm:$0xff] }
 0x24e   : > { %v1762_v46 = vmul.f32 %v6979_v38, %v8206_v31  ;;  %v6270_v31 = vpack.i.bf16 %v2030_v51, %v2029_v20  ;;  %v1912_v38 = vld [vmem:[#allocation2 + $0xf0] sm:$0xff] }
 0x24f   : > { %1797 = vst.msk [vmem:[#allocation2 + $0x189] sm:$0xff] %vm663_vm1, %v1764_v52  ;;  %v1913_v52 = vld [vmem:[#allocation2 + $0xf8] sm:$0xff] }
 0x250   : > { %6221 = vrot.lane.b32.xlu0 %v6195_v45, %s7404_s26  ;;  %6236 = vrot.lane.b32.xlu1 %v6235_v34, %s7404_s26  ;;  %1795 = vst.msk [vmem:[#allocation2 + $0x171] sm:$0xff] %vm663_vm1, %v1762_v46  ;;  %v6315_v45 = vpack.i.bf16 %v1973_v12, %v1972_v7  ;;  %v6385_v10 = vpack.i.bf16 %v1913_v52, %v1912_v38  ;;  %v6074_v38 = vunpack.i.h.bf16 %v8309_v35  ;;  %v6073_v52 = vunpack.i.l.bf16 %v8309_v35 }
 0x254   : > { %6241 = vrot.lane.b32.xlu0 %v6225_v26, %s7398_s28  ;;  %6256 = vrot.lane.b32.xlu1 %v6230_v50, %s7399_s29  ;;  %v6350_v26 = vpack.i.bf16 %v2034_v5, %v2033_v33  ;;  %v6068_v33 = vunpack.i.l.bf16 %v6067_v23  ;;  %v1799_v5 = vld [vmem:[#allocation2 + $0x8] sm:$0xff] }
 0x258   : > { %6246 = vrot.lane.b32.xlu0 %v6230_v50, %s7401_s21  ;;  %6266 = vrot.lane.b32.xlu1 %v6265_v59, %s7398_s28  ;;  %v2066_v50 = vld [vmem:[#allocation2 + $0xb2] sm:$0xff] }
 0x259   : > { %v6355_v9 = vpack.i.bf16 %v2066_v50, %v2065_v42 }
 0x25c   : > { %6251 = vrot.lane.b32.xlu0 %v6235_v34, %s7403_s23  ;;  %6271 = vrot.lane.b32.xlu1 %v6270_v31, %s7401_s21 }
 0x260   : > { %6261 = vrot.lane.b32.xlu0 %v6235_v34, %s7397_s27  ;;  %6281 = vrot.lane.b32.xlu1 %v6270_v31, %s7399_s29 }
 0x264   : > { %6276 = vrot.lane.b32.xlu0 %v6275_v25, %s7403_s23  ;;  %6286 = vrot.lane.b32.xlu1 %v6275_v25, %s7397_s27 }
 0x268   : > { %6291 = vrot.lane.b32.xlu0 %v6265_v59, %s7400_s20  ;;  %6306 = vrot.lane.b32.xlu1 %v6305_v43, %s7400_s20  ;;  %v1945_v59 = vld [vmem:[#allocation2 + $0xf9] sm:$0xff] }
 0x26c   : > { %6296 = vrot.lane.b32.xlu0 %v6270_v31, %s7402_s22  ;;  %6311 = vrot.lane.b32.xlu1 %v6310_v17, %s7402_s22  ;;  %v6390_v31 = vpack.i.bf16 %v1945_v59, %v1944_v48 }
 0x270   : > { %6301 = vrot.lane.b32.xlu0 %v6275_v25, %s7404_s26  ;;  %6316 = vrot.lane.b32.xlu1 %v6315_v45, %s7404_s26 }
 0x274   : > { %6321 = vrot.lane.b32.xlu0 %v6305_v43, %s7398_s28  ;;  %6336 = vrot.lane.b32.xlu1 %v6310_v17, %s7399_s29 }
 0x278   : > { %6326 = vrot.lane.b32.xlu0 %v6310_v17, %s7401_s21  ;;  %6346 = vrot.lane.b32.xlu1 %v6345_v37, %s7398_s28  ;;  %v2006_v17 = vld [vmem:[#allocation2 + $0xe0] sm:$0xff] }
 0x27c   : > { %6331 = vrot.lane.b32.xlu0 %v6315_v45, %s7403_s23  ;;  %6351 = vrot.lane.b32.xlu1 %v6350_v26, %s7401_s21 }
 0x280   : > { %6341 = vrot.lane.b32.xlu0 %v6315_v45, %s7397_s27  ;;  %6361 = vrot.lane.b32.xlu1 %v6350_v26, %s7399_s29  ;;  %v8347_v45 = vpack.i.bf16 %v2006_v17, %v2005_v40  ;;  %v2070_v40 = vld [vmem:[#allocation2 + $0xe2] sm:$0xff] }
 0x281   : > { %v1916_v17 = vld [vmem:[#allocation2 + $0x120] sm:$0xff] }
 0x284   : > { %6356 = vrot.lane.b32.xlu0 %v6355_v9, %s7403_s23  ;;  %6366 = vrot.lane.b32.xlu1 %v6355_v9, %s7397_s27 }
 0x286   : > { %v8319_v34 = vpop.permute.xlu0 %6096  ;;  %v8321_v46 = vpop.permute.xlu1 %6081 }
 0x288   : > { %6371 = vrot.lane.b32.xlu0 %v6345_v37, %s7400_s20  ;;  %6386 = vrot.lane.b32.xlu1 %v6385_v10, %s7400_s20  ;;  %v6069_v37 = vunpack.i.h.bf16 %v6067_v23 }
 0x28a   : > { %v8325_v51 = vpop.permute.xlu0 %6101  ;;  %v8327_v20 = vpop.permute.xlu1 %6086 }
 0x28c   : > { %6376 = vrot.lane.b32.xlu0 %v6350_v26, %s7402_s22  ;;  %6391 = vrot.lane.b32.xlu1 %v6390_v31, %s7402_s22  ;;  %v1798_v26 = vld [vmem:[#allocation2] sm:$0xff] }
 0x28d   : > { %v3111_v23 = vsel %vm663_vm1, %v1798_v26, %v6068_v33 }
 0x28e   : > { %v8331_v25 = vpop.permute.xlu0 %6106  ;;  %v8333_v13 = vpop.permute.xlu1 %6091  ;;  %v3144_v35 = vsel %vm3143_vm3, %v3111_v23, %v6073_v52  ;;  %v6098_v23 = vunpack.i.l.bf16 %v8319_v34 }
 0x290   : > { %6381 = vrot.lane.b32.xlu0 %v6355_v9, %s7404_s26  ;;  %6396 = vrot.lane.b32.xlu1 %v6395_v18, %s7404_s26  ;;  %v8354_v9 = vpack.i.bf16 %v2038_v53, %v2037_v21  ;;  %v1917_v21 = vld [vmem:[#allocation2 + $0x128] sm:$0xff] }
 0x291   : > { %v8372_v26 = vpack.i.bf16 %v1917_v21, %v1916_v17 }
 0x292   : > { %v8337_v43 = vpop.permute.xlu0 %6116  ;;  %v8339_v11 = vpop.permute.xlu1 %6111 }
 0x294   : > { %6401 = vrot.lane.b32.xlu0 %v6385_v10, %s7398_s28  ;;  %6416 = vrot.lane.b32.xlu1 %v6390_v31, %s7399_s29  ;;  %v3112_v10 = vsel %vm663_vm1, %v1799_v5, %v6069_v37 }
 0x295   : > { %v3145_v53 = vsel %vm3143_vm3, %v3112_v10, %v6074_v38  ;;  %v6099_v10 = vunpack.i.h.bf16 %v8319_v34 }
 0x296   : > { %v8343_v7 = vpop.permute.xlu1 %6126  ;;  %v8345_v12 = vpop.permute.xlu0 %6121 }
 0x297   : > { %v6124_v17 = vunpack.i.h.bf16 %v8345_v12  ;;  %v6123_v34 = vunpack.i.l.bf16 %v8345_v12 }
 0x298   : > { %6406 = vrot.lane.b32.xlu0 %v6390_v31, %s7401_s21  ;;  %6426 = vrot.lane.b32.xlu1 %v8347_v45, %s7398_s28  ;;  %v2069_v31 = vld [vmem:[#allocation2 + $0xda] sm:$0xff] }
 0x299   : > { %v6435_v5 = vpack.i.bf16 %v2070_v40, %v2069_v31  ;;  %v6104_v31 = vunpack.i.h.bf16 %v8325_v51 }
 0x29a   : > { %v6132_v42 = vpop.permute.xlu0 %6131  ;;  %v8352_v50 = vpop.permute.xlu1 %6146 }
 0x29b   : > { %v6134_v36 = vunpack.i.h.bf16 %v6132_v42  ;;  %v6133_v19 = vunpack.i.l.bf16 %v6132_v42 }
 0x29c   : > { %6411 = vrot.lane.b32.xlu0 %v6395_v18, %s7403_s23  ;;  %6431 = vrot.lane.b32.xlu1 %v8354_v9, %s7401_s21 }
 0x29d   : > { %v3178_v42 = vsel %vm3176_vm4, %v3145_v53, %v6134_v36  ;;  %v3177_v38 = vsel %vm3176_vm4, %v3144_v35, %v6133_v19  ;;  %v6103_v36 = vunpack.i.l.bf16 %v8325_v51  ;;  %v6109_v53 = vunpack.i.h.bf16 %v8331_v25 }
 0x29e   : > { %v6137_v48 = vpop.permute.xlu0 %6136  ;;  %v8363_v59 = vpop.permute.xlu1 %6151  ;;  %v6108_v51 = vunpack.i.l.bf16 %v8331_v25 }
 0x29f   : > { %v6139_v63 = vunpack.i.h.bf16 %v6137_v48  ;;  %v6138_v49 = vunpack.i.l.bf16 %v6137_v48 }
 0x2a0   : > { %6421 = vrot.lane.b32.xlu0 %v6395_v18, %s7397_s27  ;;  %6441 = vrot.lane.b32.xlu1 %v8354_v9, %s7399_s29 }
 0x2a1   : > { %v3210_v48 = vsel %vm3209_vm5, %v3177_v38, %v6138_v49  ;;  %v3211_v32 = vsel %vm3209_vm5, %v3178_v42, %v6139_v63  ;;  %v1949_v42 = vld [vmem:[#allocation2 + $0x129] sm:$0xff]  ;;  %v6129_v38 = vunpack.i.h.bf16 %v8343_v7 }
 0x2a2   : > { %v6142_v37 = vpop.permute.xlu0 %6141  ;;  %v8370_v33 = vpop.permute.xlu1 %6156 }
 0x2a3   : > { %v6144_v18 = vunpack.i.h.bf16 %v6142_v37  ;;  %v6143_v52 = vunpack.i.l.bf16 %v6142_v37  ;;  %v1948_v37 = vld [vmem:[#allocation2 + $0x121] sm:$0xff] }
 0x2a4   : > { %6436 = vrot.lane.b32.xlu0 %v6435_v5, %s7403_s23  ;;  %6446 = vrot.lane.b32.xlu1 %v6435_v5, %s7397_s27 }
 0x2a5   : > { %v3243_v19 = vsel %vm3242_vm6, %v3210_v48, %v6143_v52  ;;  %v3244_v40 = vsel %vm3242_vm6, %v3211_v32, %v6144_v18  ;;  %v6128_v18 = vunpack.i.l.bf16 %v8343_v7  ;;  %v1980_v7 = vld [vmem:[#allocation2 + $0x122] sm:$0xff] }
 0x2a6   : > { %v3276_v49 = vsel %vm3275_vm7, %v3243_v19, %v6098_v23  ;;  %v3277_v63 = vsel %vm3275_vm7, %v3244_v40, %v6099_v10  ;;  %v8390_v21 = vpop.permute.xlu0 %6161  ;;  %v8392_v35 = vpop.permute.xlu1 %6176  ;;  %v3114_v10 = vsel %vm663_vm1, %v8164_v1, %v6124_v17  ;;  %v1981_v19 = vld [vmem:[#allocation2 + $0x12a] sm:$0xff]  ;;  %v6084_v1 = vunpack.i.h.bf16 %v8321_v46 }
 0x2a7   : > { %v3309_v32 = vsel %vm3308_vm8, %v3276_v49, %v6103_v36  ;;  %v3310_v12 = vsel %vm3308_vm8, %v3277_v63, %v6104_v31  ;;  %v6470_v36 = vpack.i.bf16 %v1949_v42, %v1948_v37  ;;  %v3147_v49 = vsel %vm3143_vm3, %v3114_v10, %v6129_v38 }
 0x2a8   : > { %6451 = vrot.lane.b32.xlu0 %v8347_v45, %s7400_s20  ;;  %6466 = vrot.lane.b32.xlu1 %v8372_v26, %s7400_s20  ;;  %v3342_v52 = vsel %vm3341_vm9, %v3309_v32, %v6108_v51  ;;  %v3343_v25 = vsel %vm3341_vm9, %v3310_v12, %v6109_v53  ;;  %v3113_v45 = vsel %vm663_vm1, %v8174_v54, %v6123_v34  ;;  %v6083_v54 = vunpack.i.l.bf16 %v8321_v46 }
 0x2a9   : > { %v3379_v31 = vpack.c.bf16 %v3343_v25, %v3342_v52  ;;  %v3146_v40 = vsel %vm3143_vm3, %v3113_v45, %v6128_v18  ;;  %v6475_v63 = vpack.i.bf16 %v1981_v19, %v1980_v7  ;;  %v6089_v51 = vunpack.i.h.bf16 %v8327_v20  ;;  %v2009_v52 = vld [vmem:[#allocation2 + $0x108] sm:$0xff]  ;;  %v2010_v25 = vld [vmem:[#allocation2 + $0x110] sm:$0xff] }
 0x2aa   : > { %v8410_v23 = vpop.permute.xlu0 %6166  ;;  %v6187_v48 = vpop.permute.xlu1 %6186  ;;  %v3179_v53 = vsel %vm3176_vm4, %v3146_v40, %v6083_v54  ;;  %v6088_v32 = vunpack.i.l.bf16 %v8327_v20  ;;  %v6093_v45 = vunpack.i.l.bf16 %v8333_v13 }
 0x2ab   : > { %5908 = vmatprep.mubr.msk.bf16.mxu0 %vm3410_vm10, %v3379_v31  ;;  %v6189_v38 = vunpack.i.h.bf16 %v6187_v48  ;;  %v6188_v18 = vunpack.i.l.bf16 %v6187_v48  ;;  %v8443_v48 = vpack.i.bf16 %v2010_v25, %v2009_v52  ;;  %v6113_v52 = vunpack.i.l.bf16 %v8339_v11 }
 0x2ac   : > { %6456 = vrot.lane.b32.xlu0 %v8354_v9, %s7402_s22  ;;  %6471 = vrot.lane.b32.xlu1 %v6470_v36, %s7402_s22  ;;  %v3180_v9 = vsel %vm3176_vm4, %v3147_v49, %v6084_v1  ;;  %v3212_v46 = vsel %vm3209_vm5, %v3179_v53, %v6088_v32  ;;  %v2041_v53 = vld [vmem:[#allocation2 + $0x109] sm:$0xff] }
 0x2ad   : > { %v3213_v42 = vsel %vm3209_vm5, %v3180_v9, %v6089_v51  ;;  %v3245_v31 = vsel %vm3242_vm6, %v3212_v46, %v6093_v45  ;;  %v2042_v9 = vld [vmem:[#allocation2 + $0x111] sm:$0xff] }
 0x2ae   : > { %v8420_v17 = vpop.permute.xlu0 %6171  ;;  %v6192_v34 = vpop.permute.xlu1 %6191  ;;  %v8458_v25 = vpack.i.bf16 %v2042_v9, %v2041_v53 }
 0x2af   : > { %v6194_v10 = vunpack.i.h.bf16 %v6192_v34  ;;  %v6193_v20 = vunpack.i.l.bf16 %v6192_v34 }
 0x2b0   : > { %6461 = vrot.lane.b32.xlu0 %v6435_v5, %s7404_s26  ;;  %6476 = vrot.lane.b32.xlu1 %v6475_v63, %s7404_s26  ;;  %v6094_v5 = vunpack.i.h.bf16 %v8333_v13  ;;  %v3278_v13 = vsel %vm3275_vm7, %v3245_v31, %v6188_v18  ;;  %v6114_v18 = vunpack.i.h.bf16 %v8339_v11  ;;  %v7365_v11 = vld [vmem:[#allocation2 + $0x38] sm:$0xff] }
 0x2b1   : > { %v3311_v34 = vsel %vm3308_vm8, %v3278_v13, %v6193_v20  ;;  %v7364_v20 = vld [vmem:[#allocation2 + $0x30] sm:$0xff] }
 0x2b2   : > { %v8428_v12 = vpop.permute.xlu0 %6181  ;;  %v8430_v37 = vpop.permute.xlu1 %6201  ;;  %v3246_v7 = vsel %vm3242_vm6, %v3213_v42, %v6094_v5  ;;  %v6118_v5 = vunpack.i.l.bf16 %v8337_v43  ;;  %v3115_v31 = vsel %vm663_vm1, %v7364_v20, %v6113_v52  ;;  %v2073_v13 = vld [vmem:[#allocation2 + $0x10a] sm:$0xff]  ;;  %v6164_v52 = vunpack.i.h.bf16 %v8390_v21  ;;  %v1921_v20 = vld [vmem:[#allocation2 + $0x158] sm:$0xff] }
 0x2b3   : > { %v3279_v49 = vsel %vm3275_vm7, %v3246_v7, %v6189_v38  ;;  %v3116_v7 = vsel %vm663_vm1, %v7365_v11, %v6114_v18 }
 0x2b4   : > { %6481 = vrot.lane.b32.xlu0 %v8372_v26, %s7398_s28  ;;  %6496 = vrot.lane.b32.xlu1 %v6470_v36, %s7399_s29  ;;  %v3312_v26 = vsel %vm3308_vm8, %v3279_v49, %v6194_v10 }
 0x2b6   : > { %v6197_v19 = vpop.permute.xlu0 %6196  ;;  %v8441_v40 = vpop.permute.xlu1 %6206 }
 0x2b7   : > { %v6199_v1 = vunpack.i.h.bf16 %v6197_v19  ;;  %v6198_v54 = vunpack.i.l.bf16 %v6197_v19 }
 0x2b8   : > { %6486 = vrot.lane.b32.xlu0 %v6470_v36, %s7401_s21  ;;  %6506 = vrot.lane.b32.xlu1 %v8443_v48, %s7398_s28  ;;  %v6119_v36 = vunpack.i.h.bf16 %v8337_v43  ;;  %v3148_v43 = vsel %vm3143_vm3, %v3115_v31, %v6118_v5 }
 0x2b9   : > { %v3344_v51 = vsel %vm3341_vm9, %v3311_v34, %v6198_v54  ;;  %v3345_v32 = vsel %vm3341_vm9, %v3312_v26, %v6199_v1  ;;  %v2074_v1 = vld [vmem:[#allocation2 + $0x112] sm:$0xff] }
 0x2ba   : > { %v3380_v46 = vpack.c.bf16 %v3345_v32, %v3344_v51  ;;  %v6212_v42 = vpop.permute.xlu0 %6211  ;;  %v8454_v38 = vpop.permute.xlu1 %6226  ;;  %v3149_v26 = vsel %vm3143_vm3, %v3116_v7, %v6119_v36  ;;  %v6515_v51 = vpack.i.bf16 %v2074_v1, %v2073_v13  ;;  %v1920_v36 = vld [vmem:[#allocation2 + $0x150] sm:$0xff]  ;;  %v6169_v7 = vunpack.i.h.bf16 %v8410_v23 }
 0x2bb   : > { %v6214_v19 = vunpack.i.h.bf16 %v6212_v42  ;;  %v6213_v49 = vunpack.i.l.bf16 %v6212_v42 }
 0x2bc   : > { %5909 = vmatmul.mubr.msk.bf16.vlgmr.msra.gmra.mrb[32].mxu0 %vm3410_vm10, %v3380_v46  ;;  %6491 = vrot.lane.b32.xlu0 %v6475_v63, %s7403_s23 }
 0x2bd   : > { %6511 = vrot.lane.b32.xlu1 %v8458_v25, %s7401_s21  ;;  %v3182_v32 = vsel %vm3176_vm4, %v3149_v26, %v6214_v19  ;;  %v3181_v46 = vsel %vm3176_vm4, %v3148_v43, %v6213_v49  ;;  %v6168_v19 = vunpack.i.l.bf16 %v8410_v23  ;;  %v6545_v43 = vpack.i.bf16 %v1921_v20, %v1920_v36 }
 0x2be   : > { %v6217_v45 = vpop.permute.xlu0 %6216  ;;  %v8466_v10 = vpop.permute.xlu1 %6231  ;;  %v6204_v26 = vunpack.i.h.bf16 %v8430_v37 }
 0x2bf   : > { %v6219_v54 = vunpack.i.h.bf16 %v6217_v45  ;;  %v6218_v34 = vunpack.i.l.bf16 %v6217_v45 }
 0x2c0   : > { %6501 = vrot.lane.b32.xlu0 %v6475_v63, %s7397_s27  ;;  %v6163_v63 = vunpack.i.l.bf16 %v8390_v21  ;;  %v3118_v20 = vsel %vm663_vm1, %v8228_v3, %v6204_v26  ;;  %v6153_v26 = vunpack.i.l.bf16 %v8363_v59 }
 0x2c1   : > { %6521 = vrot.lane.b32.xlu1 %v8458_v25, %s7399_s29  ;;  %v3214_v45 = vsel %vm3209_vm5, %v3181_v46, %v6218_v34  ;;  %v3215_v5 = vsel %vm3209_vm5, %v3182_v32, %v6219_v54  ;;  %v6174_v54 = vunpack.i.h.bf16 %v8420_v17  ;;  %v6173_v34 = vunpack.i.l.bf16 %v8420_v17  ;;  %v1952_v46 = vld [vmem:[#allocation2 + $0x151] sm:$0xff] }
 0x2c2   : > { %v6222_v53 = vpop.permute.xlu0 %6221  ;;  %v8475_v9 = vpop.permute.xlu1 %6236 }
 0x2c3   : > { %v6224_v42 = vunpack.i.h.bf16 %v6222_v53  ;;  %v6223_v18 = vunpack.i.l.bf16 %v6222_v53  ;;  %v6203_v53 = vunpack.i.l.bf16 %v8430_v37 }
 0x2c4   : > { %6516 = vrot.lane.b32.xlu0 %v6515_v51, %s7403_s23 }
 0x2c5   : > { %v3247_v31 = vsel %vm3242_vm6, %v3214_v45, %v6223_v18  ;;  %v3248_v11 = vsel %vm3242_vm6, %v3215_v5, %v6224_v42  ;;  %6526 = vrot.lane.b32.xlu1 %v6515_v51, %s7397_s27  ;;  %v1953_v42 = vld [vmem:[#allocation2 + $0x159] sm:$0xff]  ;;  %v6209_v18 = vunpack.i.h.bf16 %v8441_v40  ;;  %v3117_v36 = vsel %vm663_vm1, %v8234_v0, %v6203_v53 }
 0x2c6   : > { %v3280_v21 = vsel %vm3275_vm7, %v3247_v31, %v6163_v63  ;;  %v3281_v49 = vsel %vm3275_vm7, %v3248_v11, %v6164_v52  ;;  %v8491_v13 = vpop.permute.xlu0 %6241  ;;  %v8493_v1 = vpop.permute.xlu1 %6256  ;;  %v6208_v52 = vunpack.i.l.bf16 %v8441_v40  ;;  %v6550_v5 = vpack.i.bf16 %v1953_v42, %v1952_v46  ;;  %v1984_v40 = vld [vmem:[#allocation2 + $0x152] sm:$0xff]  ;;  %v1985_v31 = vld [vmem:[#allocation2 + $0x15a] sm:$0xff] }
 0x2c7   : > { %v3313_v23 = vsel %vm3308_vm8, %v3280_v21, %v6168_v19  ;;  %v3314_v32 = vsel %vm3308_vm8, %v3281_v49, %v6169_v7  ;;  %v3151_v7 = vsel %vm3143_vm3, %v3118_v20, %v6209_v18  ;;  %v6149_v19 = vunpack.i.h.bf16 %v8352_v50  ;;  %v8536_v18 = vld [vmem:[#allocation2 + $0x138] sm:$0xff] }
 0x2c8   : > { %6531 = vrot.lane.b32.xlu0 %v8443_v48, %s7400_s20  ;;  %v3346_v17 = vsel %vm3341_vm9, %v3313_v23, %v6173_v34  ;;  %v3347_v63 = vsel %vm3341_vm9, %v3314_v32, %v6174_v54  ;;  %v3150_v11 = vsel %vm3143_vm3, %v3117_v36, %v6208_v52  ;;  %v6148_v0 = vunpack.i.l.bf16 %v8352_v50  ;;  %v8538_v52 = vld [vmem:[#allocation2 + $0x140] sm:$0xff] }
 0x2c9   : > { %6546 = vrot.lane.b32.xlu1 %v6545_v43, %s7400_s20  ;;  %v3381_v48 = vpack.c.bf16 %v3347_v63, %v3346_v17  ;;  %v6555_v49 = vpack.i.bf16 %v1985_v31, %v1984_v40  ;;  %v6154_v34 = vunpack.i.h.bf16 %v8363_v59  ;;  %v6158_v59 = vunpack.i.l.bf16 %v8370_v33 }
 0x2ca   : > { %v8508_v37 = vpop.permute.xlu0 %6246  ;;  %v6267_v45 = vpop.permute.xlu1 %6266  ;;  %v3183_v54 = vsel %vm3176_vm4, %v3150_v11, %v6148_v0  ;;  %v8550_v40 = vpack.i.bf16 %v8538_v52, %v8536_v18  ;;  %v2045_v0 = vld [vmem:[#allocation2 + $0x139] sm:$0xff] }
 0x2cb   : > { %5912 = vmatprep.mubr.msk.bf16.mxu0 %vm3410_vm10, %v3381_v48  ;;  %v3216_v50 = vsel %vm3209_vm5, %v3183_v54, %v6153_v26  ;;  %v6269_v46 = vunpack.i.h.bf16 %v6267_v45  ;;  %v6268_v42 = vunpack.i.l.bf16 %v6267_v45 }
 0x2cc   : > { %6536 = vrot.lane.b32.xlu0 %v8458_v25, %s7402_s22  ;;  %v3184_v25 = vsel %vm3176_vm4, %v3151_v7, %v6149_v19  ;;  %v3249_v48 = vsel %vm3242_vm6, %v3216_v50, %v6158_v59 }
 0x2cd   : > { %6551 = vrot.lane.b32.xlu1 %v6550_v5, %s7402_s22  ;;  %v3217_v32 = vsel %vm3209_vm5, %v3184_v25, %v6154_v34 }
 0x2ce   : > { %v8522_v21 = vpop.permute.xlu0 %6251  ;;  %v6272_v3 = vpop.permute.xlu1 %6271 }
 0x2cf   : > { %v6274_v17 = vunpack.i.h.bf16 %v6272_v3  ;;  %v6273_v63 = vunpack.i.l.bf16 %v6272_v3  ;;  %v2046_v3 = vld [vmem:[#allocation2 + $0x141] sm:$0xff] }
 0x2d0   : > { %6541 = vrot.lane.b32.xlu0 %v6515_v51, %s7404_s26  ;;  %v6159_v51 = vunpack.i.h.bf16 %v8370_v33  ;;  %v3282_v33 = vsel %vm3275_vm7, %v3249_v48, %v6268_v42  ;;  %v6184_v42 = vunpack.i.h.bf16 %v8428_v12 }
 0x2d1   : > { %6556 = vrot.lane.b32.xlu1 %v6555_v49, %s7404_s26 }
 0x2d2   : > { %v8530_v53 = vpop.permute.xlu0 %6261  ;;  %v8532_v23 = vpop.permute.xlu1 %6281  ;;  %v3250_v36 = vsel %vm3242_vm6, %v3217_v32, %v6159_v51  ;;  %v8563_v32 = vpack.i.bf16 %v2046_v3, %v2045_v0  ;;  %v6183_v51 = vunpack.i.l.bf16 %v8428_v12 }
 0x2d3   : > { %v3283_v31 = vsel %vm3275_vm7, %v3250_v36, %v6269_v46  ;;  %v6178_v46 = vunpack.i.l.bf16 %v8392_v35  ;;  %v2077_v36 = vld [vmem:[#allocation2 + $0x13a] sm:$0xff] }
 0x2d4   : > { %6561 = vrot.lane.b32.xlu0 %v6545_v43, %s7398_s28  ;;  %v3315_v43 = vsel %vm3308_vm8, %v3282_v33, %v6273_v63  ;;  %v3316_v19 = vsel %vm3308_vm8, %v3283_v31, %v6274_v17 }
 0x2d5   : > { %6576 = vrot.lane.b32.xlu1 %v6550_v5, %s7399_s29 }
 0x2d6   : > { %v6277_v20 = vpop.permute.xlu0 %6276  ;;  %v8546_v45 = vpop.permute.xlu1 %6286 }
 0x2d7   : > { %v6279_v11 = vunpack.i.h.bf16 %v6277_v20  ;;  %v6278_v7 = vunpack.i.l.bf16 %v6277_v20  ;;  %v2078_v20 = vld [vmem:[#allocation2 + $0x142] sm:$0xff] }
 0x2d8   : > { %6566 = vrot.lane.b32.xlu0 %v6550_v5, %s7401_s21  ;;  %v6179_v5 = vunpack.i.h.bf16 %v8392_v35 }
 0x2d9   : > { %v3348_v54 = vsel %vm3341_vm9, %v3315_v43, %v6278_v7  ;;  %v3349_v25 = vsel %vm3341_vm9, %v3316_v19, %v6279_v11  ;;  %6586 = vrot.lane.b32.xlu1 %v8550_v40, %s7398_s28  ;;  %v7366_v11 = vld [vmem:[#allocation2 + $0x60] sm:$0xff]  ;;  %v7367_v7 = vld [vmem:[#allocation2 + $0x68] sm:$0xff] }
 0x2da   : > { %v6292_v34 = vpop.permute.xlu0 %6291  ;;  %v8561_v26 = vpop.permute.xlu1 %6306  ;;  %v3382_v50 = vpack.c.bf16 %v3349_v25, %v3348_v54  ;;  %v3119_v35 = vsel %vm663_vm1, %v7366_v11, %v6178_v46  ;;  %v3120_v43 = vsel %vm663_vm1, %v7367_v7, %v6179_v5  ;;  %v6595_v54 = vpack.i.bf16 %v2078_v20, %v2077_v36  ;;  %v1925_v11 = vld [vmem:[#allocation2 + $0x188] sm:$0xff] }
 0x2db   : > { %v6294_v63 = vunpack.i.h.bf16 %v6292_v34  ;;  %v6293_v48 = vunpack.i.l.bf16 %v6292_v34  ;;  %v3152_v12 = vsel %vm3143_vm3, %v3119_v35, %v6183_v51  ;;  %v3153_v19 = vsel %vm3143_vm3, %v3120_v43, %v6184_v42  ;;  %v1924_v42 = vld [vmem:[#allocation2 + $0x180] sm:$0xff] }
 0x2dc   : > { %5913 = vmatmul.mubr.msk.bf16.gmra.mrb[36].mxu0 %vm3410_vm10, %v3382_v50  ;;  %6571 = vrot.lane.b32.xlu0 %v6555_v49, %s7403_s23  ;;  %v6244_v46 = vunpack.i.h.bf16 %v8491_v13  ;;  %v6243_v5 = vunpack.i.l.bf16 %v8491_v13  ;;  %v6248_v20 = vunpack.i.l.bf16 %v8508_v37  ;;  %v6254_v7 = vunpack.i.h.bf16 %v8522_v21 }
 0x2dd   : > { %6591 = vrot.lane.b32.xlu1 %v8563_v32, %s7401_s21  ;;  %v3186_v25 = vsel %vm3176_vm4, %v3153_v19, %v6294_v63  ;;  %v6253_v43 = vunpack.i.l.bf16 %v8522_v21  ;;  %v6284_v19 = vunpack.i.h.bf16 %v8532_v23 }
 0x2de   : > { %v6297_v59 = vpop.permute.xlu0 %6296  ;;  %v8573_v17 = vpop.permute.xlu1 %6311 }
 0x2df   : > { %v6299_v31 = vunpack.i.h.bf16 %v6297_v59  ;;  %v6298_v33 = vunpack.i.l.bf16 %v6297_v59 }
 0x2e0   : > { %6581 = vrot.lane.b32.xlu0 %v6555_v49, %s7397_s27  ;;  %v3185_v49 = vsel %vm3176_vm4, %v3152_v12, %v6293_v48  ;;  %v6249_v48 = vunpack.i.h.bf16 %v8508_v37  ;;  %v6625_v12 = vpack.i.bf16 %v1925_v11, %v1924_v42  ;;  %v1809_v42 = vld [vmem:[#allocation2 + $0x80] sm:$0xff] }
 0x2e1   : > { %6601 = vrot.lane.b32.xlu1 %v8563_v32, %s7399_s29  ;;  %v3218_v59 = vsel %vm3209_vm5, %v3185_v49, %v6298_v33  ;;  %v3219_v51 = vsel %vm3209_vm5, %v3186_v25, %v6299_v31  ;;  %v1956_v49 = vld [vmem:[#allocation2 + $0x181] sm:$0xff] }
 0x2e2   : > { %v6302_v0 = vpop.permute.xlu0 %6301  ;;  %v8582_v3 = vpop.permute.xlu1 %6316 }
 0x2e3   : > { %v6304_v34 = vunpack.i.h.bf16 %v6302_v0  ;;  %v6303_v50 = vunpack.i.l.bf16 %v6302_v0  ;;  %v6283_v0 = vunpack.i.l.bf16 %v8532_v23 }
 0x2e4   : > { %6596 = vrot.lane.b32.xlu0 %v6595_v54, %s7403_s23 }
 0x2e5   : > { %v3251_v36 = vsel %vm3242_vm6, %v3218_v59, %v6303_v50  ;;  %v3252_v63 = vsel %vm3242_vm6, %v3219_v51, %v6304_v34  ;;  %6606 = vrot.lane.b32.xlu1 %v6595_v54, %s7397_s27  ;;  %v1957_v34 = vld [vmem:[#allocation2 + $0x189] sm:$0xff]  ;;  %v6289_v50 = vunpack.i.h.bf16 %v8546_v45  ;;  %v1808_v51 = vld [vmem:[#allocation2 + $0x78] sm:$0xff] }
 0x2e6   : > { %v3284_v13 = vsel %vm3275_vm7, %v3251_v36, %v6243_v5  ;;  %v3285_v33 = vsel %vm3275_vm7, %v3252_v63, %v6244_v46  ;;  %v8598_v35 = vpop.permute.xlu0 %6321  ;;  %v8600_v31 = vpop.permute.xlu1 %6336  ;;  %v6288_v46 = vunpack.i.l.bf16 %v8546_v45  ;;  %v6630_v11 = vpack.i.bf16 %v1957_v34, %v1956_v49  ;;  %v1988_v45 = vld [vmem:[#allocation2 + $0x182] sm:$0xff] }
 0x2e7   : > { %v3317_v37 = vsel %vm3308_vm8, %v3284_v13, %v6248_v20  ;;  %v3318_v25 = vsel %vm3308_vm8, %v3285_v33, %v6249_v48  ;;  %v3121_v36 = vsel %vm663_vm1, %v1808_v51, %v6283_v0  ;;  %v3122_v63 = vsel %vm663_vm1, %v1809_v42, %v6284_v19  ;;  %v1989_v48 = vld [vmem:[#allocation2 + $0x18a] sm:$0xff] }
 0x2e8   : > { %6611 = vrot.lane.b32.xlu0 %v8550_v40, %s7400_s20  ;;  %v3350_v21 = vsel %vm3341_vm9, %v3317_v37, %v6253_v43  ;;  %v3351_v5 = vsel %vm3341_vm9, %v3318_v25, %v6254_v7  ;;  %v3154_v20 = vsel %vm3143_vm3, %v3121_v36, %v6288_v46  ;;  %v3155_v13 = vsel %vm3143_vm3, %v3122_v63, %v6289_v50  ;;  %v8631_v37 = vld [vmem:[#allocation2 + $0x168] sm:$0xff]  ;;  %v2050_v36 = vld [vmem:[#allocation2 + $0x171] sm:$0xff] }
 0x2e9   : > { %6626 = vrot.lane.b32.xlu1 %v6625_v12, %s7400_s20  ;;  %v3383_v40 = vpack.c.bf16 %v3351_v5, %v3350_v21  ;;  %v6229_v33 = vunpack.i.h.bf16 %v8454_v38  ;;  %v6228_v7 = vunpack.i.l.bf16 %v8454_v38  ;;  %v8629_v0 = vpack.i.bf16 %v1989_v48, %v1988_v45  ;;  %v2049_v42 = vld [vmem:[#allocation2 + $0x169] sm:$0xff] }
 0x2ea   : > { %v8615_v23 = vpop.permute.xlu0 %6326  ;;  %v6347_v59 = vpop.permute.xlu1 %6346  ;;  %v6234_v34 = vunpack.i.h.bf16 %v8466_v10  ;;  %v6233_v50 = vunpack.i.l.bf16 %v8466_v10  ;;  %v6239_v10 = vunpack.i.h.bf16 %v8475_v9  ;;  %v6238_v63 = vunpack.i.l.bf16 %v8475_v9 }
 0x2eb   : > { %5916 = vmatprep.mubr.msk.bf16.mxu0 %vm3410_vm10, %v3383_v40  ;;  %v3187_v25 = vsel %vm3176_vm4, %v3154_v20, %v6228_v7  ;;  %v3188_v49 = vsel %vm3176_vm4, %v3155_v13, %v6229_v33  ;;  %v6349_v51 = vunpack.i.h.bf16 %v6347_v59 }
 0x2ec   : > { %6616 = vrot.lane.b32.xlu0 %v8563_v32, %s7402_s22  ;;  %v8633_v32 = vld [vmem:[#allocation2 + $0x170] sm:$0xff]  ;;  %v3220_v5 = vsel %vm3209_vm5, %v3187_v25, %v6233_v50  ;;  %v3221_v40 = vsel %vm3209_vm5, %v3188_v49, %v6234_v34 }
 0x2ed   : > { %6631 = vrot.lane.b32.xlu1 %v6630_v11, %s7402_s22  ;;  %v6650_v21 = vpack.i.bf16 %v8633_v32, %v8631_v37  ;;  %v3253_v20 = vsel %vm3242_vm6, %v3220_v5, %v6238_v63  ;;  %v3254_v13 = vsel %vm3242_vm6, %v3221_v40, %v6239_v10  ;;  %v2081_v50 = vld [vmem:[#allocation2 + $0x16a] sm:$0xff]  ;;  %v6259_v10 = vunpack.i.h.bf16 %v8493_v1 }
 0x2ee   : > { %v8627_v43 = vpop.permute.xlu0 %6331  ;;  %v6352_v19 = vpop.permute.xlu1 %6351  ;;  %v3287_v25 = vsel %vm3275_vm7, %v3254_v13, %v6349_v51  ;;  %v6258_v63 = vunpack.i.l.bf16 %v8493_v1  ;;  %v2054_v13 = vld [vmem:[#allocation2 + $0x1a1] sm:$0xff] }
 0x2ef   : > { %v6354_v45 = vunpack.i.h.bf16 %v6352_v19  ;;  %v6353_v48 = vunpack.i.l.bf16 %v6352_v19  ;;  %v2082_v19 = vld [vmem:[#allocation2 + $0x172] sm:$0xff] }
 0x2f0   : > { %6621 = vrot.lane.b32.xlu0 %v6595_v54, %s7404_s26  ;;  %v6348_v54 = vunpack.i.l.bf16 %v6347_v59  ;;  %v6655_v59 = vpack.i.bf16 %v2050_v36, %v2049_v42  ;;  %v6660_v36 = vpack.i.bf16 %v2082_v19, %v2081_v50 }
 0x2f1   : > { %6636 = vrot.lane.b32.xlu1 %v8629_v0, %s7404_s26  ;;  %v3320_v41 = vsel %vm3308_vm8, %v3287_v25, %v6354_v45 }
 0x2f2   : > { %v8642_v38 = vpop.permute.xlu0 %6341  ;;  %v8644_v46 = vpop.permute.xlu1 %6361  ;;  %v3286_v49 = vsel %vm3275_vm7, %v3253_v20, %v6348_v54  ;;  %v2053_v20 = vld [vmem:[#allocation2 + $0x199] sm:$0xff] }
 0x2f4   : > { %6641 = vrot.lane.b32.xlu0 %v6625_v12, %s7398_s28  ;;  %v3319_v12 = vsel %vm3308_vm8, %v3286_v49, %v6353_v48  ;;  %v1810_v49 = vld [vmem:[#allocation2 + $0x90] sm:$0xff] }
 0x2f5   : > { %6651 = vrot.lane.b32.xlu1 %v6650_v21, %s7398_s28  ;;  %v3123_v1 = vsel %vm663_vm1, %v1810_v49, %v6258_v63  ;;  %v6323_v49 = vunpack.i.l.bf16 %v8598_v35 }
 0x2f6   : > { %v6357_v33 = vpop.permute.xlu0 %6356  ;;  %v8656_v7 = vpop.permute.xlu1 %6366 }
 0x2f7   : > { %v6359_v34 = vunpack.i.h.bf16 %v6357_v33  ;;  %v6358_v9 = vunpack.i.l.bf16 %v6357_v33 }
 0x2f8   : > { %6646 = vrot.lane.b32.xlu0 %v6630_v11, %s7401_s21  ;;  %v6264_v11 = vunpack.i.h.bf16 %v8530_v53 }
 0x2f9   : > { %v3352_v5 = vsel %vm3341_vm9, %v3319_v12, %v6358_v9  ;;  %v3353_v40 = vsel %vm3341_vm9, %v3320_v41, %v6359_v34  ;;  %6656 = vrot.lane.b32.xlu1 %v6655_v59, %s7401_s21  ;;  %v6263_v41 = vunpack.i.l.bf16 %v8530_v53  ;;  %v1811_v34 = vld [vmem:[#allocation2 + $0x98] sm:$0xff]  ;;  %v6675_v53 = vpack.i.bf16 %v2054_v13, %v2053_v20 }
 0x2fa   : > { %v6372_v42 = vpop.permute.xlu0 %6371  ;;  %v8666_v51 = vpop.permute.xlu1 %6386  ;;  %v3384_v54 = vpack.c.bf16 %v3353_v40, %v3352_v5  ;;  %v3124_v19 = vsel %vm663_vm1, %v1811_v34, %v6259_v10  ;;  %v6324_v10 = vunpack.i.h.bf16 %v8598_v35  ;;  %v4186_v34 = vld [vmem:[%s9663_s4] sm:$0x3]  ;;  %v6328_v35 = vunpack.i.l.bf16 %v8615_v23 }
 0x2fb   : > { %v6374_v33 = vunpack.i.h.bf16 %v6372_v42  ;;  %v6373_v25 = vunpack.i.l.bf16 %v6372_v42  ;;  %v3156_v12 = vsel %vm3143_vm3, %v3123_v1, %v6263_v41  ;;  %v3157_v5 = vsel %vm3143_vm3, %v3124_v19, %v6264_v11  ;;  %v2085_v42 = vld [vmem:[#allocation2 + $0x19a] sm:$0xff]  ;;  %6046 = vmatprep.subr.msk.bf16.mxu0 %vm712_vm0, %v4186_v34 }
 0x2fc   : > { %5917 = vmatmul.mubr.msk.bf16.gmra.mrb[40].mxu0 %vm3410_vm10, %v3384_v54  ;;  %6661 = vrot.lane.b32.xlu0 %v6660_v36, %s7403_s23  ;;  %v6329_v11 = vunpack.i.h.bf16 %v8615_v23  ;;  %v6333_v19 = vunpack.i.l.bf16 %v8627_v43  ;;  %v6363_v23 = vunpack.i.l.bf16 %v8644_v46 }
 0x2fd   : > { %6666 = vrot.lane.b32.xlu1 %v6655_v59, %s7399_s29 }
 0x2fe   : > { %v6377_v45 = vpop.permute.xlu0 %6376  ;;  %v8675_v48 = vpop.permute.xlu1 %6391 }
 0x2ff   : > { %v6379_v9 = vunpack.i.h.bf16 %v6377_v45  ;;  %v6378_v50 = vunpack.i.l.bf16 %v6377_v45  ;;  %v3190_v45 = vsel %vm3176_vm4, %v3157_v5, %v6374_v33 }
 0x300   : > { %6681 = vrot.lane.b32.xlu0 %v6650_v21, %s7400_s20  ;;  %v3189_v21 = vsel %vm3176_vm4, %v3156_v12, %v6373_v25  ;;  %v6700_v25 = vpack.i.bf16 %v2086_v27, %v2085_v42  ;;  %v6334_v27 = vunpack.i.h.bf16 %v8627_v43  ;;  %v6368_v42 = vunpack.i.l.bf16 %v8656_v7 }
 0x301   : > { %6671 = vrot.lane.b32.xlu1 %v6660_v36, %s7397_s27  ;;  %v3222_v20 = vsel %vm3209_vm5, %v3189_v21, %v6378_v50  ;;  %v3223_v41 = vsel %vm3209_vm5, %v3190_v45, %v6379_v9 }
 0x302   : > { %v6382_v40 = vpop.permute.xlu0 %6381  ;;  %v8683_v54 = vpop.permute.xlu1 %6396 }
 0x303   : > { %v6384_v16 = vunpack.i.h.bf16 %v6382_v40  ;;  %v6383_v63 = vunpack.i.l.bf16 %v6382_v40  ;;  %v6369_v40 = vunpack.i.h.bf16 %v8656_v7 }
 0x304   : > { %6686 = vrot.lane.b32.xlu0 %v6655_v59, %s7402_s22 }
 0x305   : > { %v3255_v13 = vsel %vm3242_vm6, %v3222_v20, %v6383_v63  ;;  %v3256_v33 = vsel %vm3242_vm6, %v3223_v41, %v6384_v16  ;;  %6676 = vrot.lane.b32.xlu1 %v6675_v53, %s7401_s21  ;;  %v4188_v16 = vsel %vm712_vm0, %v4186_v34, 0  ;;  %v6364_v53 = vunpack.i.h.bf16 %v8644_v46 }
 0x306   : > { %v3288_v50 = vsel %vm3275_vm7, %v3255_v13, %v6323_v49  ;;  %v3289_v9 = vsel %vm3275_vm7, %v3256_v33, %v6324_v10  ;;  %v8702_v59 = vpop.permute.xlu0 %6401  ;;  %v8704_v1 = vpop.permute.xlu1 %6416  ;;  %5975 = vmatpush3.bf16.msra.mxu0 %v4188_v16  ;;  %v1812_v10 = vld [vmem:[#allocation2 + $0xa8] sm:$0xff]  ;;  %v6308_v13 = vunpack.i.l.bf16 %v8561_v26 }
 0x307   : > { %v3321_v12 = vsel %vm3308_vm8, %v3288_v50, %v6328_v35  ;;  %v3322_v5 = vsel %vm3308_vm8, %v3289_v9, %v6329_v11  ;;  %v3125_v49 = vsel %vm663_vm1, %v1812_v10, %v6363_v23  ;;  %v6309_v11 = vunpack.i.h.bf16 %v8561_v26 }
 0x308   : > { %6691 = vrot.lane.b32.xlu0 %v6660_v36, %s7404_s26  ;;  %v3354_v45 = vsel %vm3341_vm9, %v3321_v12, %v6333_v19  ;;  %v3355_v43 = vsel %vm3341_vm9, %v3322_v5, %v6334_v27  ;;  %v1813_v36 = vld [vmem:[#allocation2 + $0xb0] sm:$0xff]  ;;  %v3158_v7 = vsel %vm3143_vm3, %v3125_v49, %v6368_v42  ;;  %v6314_v50 = vunpack.i.h.bf16 %v8573_v17 }
 0x309   : > { %6701 = vrot.lane.b32.xlu1 %v6700_v25, %s7403_s23  ;;  %v3385_v46 = vpack.c.bf16 %v3355_v43, %v3354_v45  ;;  %v3126_v20 = vsel %vm663_vm1, %v1813_v36, %v6364_v53  ;;  %v3191_v34 = vsel %vm3176_vm4, %v3158_v7, %v6308_v13  ;;  %v6313_v9 = vunpack.i.l.bf16 %v8573_v17 }
 0x30a   : > { %v8720_v21 = vpop.permute.xlu0 %6406  ;;  %v6427_v63 = vpop.permute.xlu1 %6426  ;;  %v3159_v41 = vsel %vm3143_vm3, %v3126_v20, %v6369_v40  ;;  %v6319_v23 = vunpack.i.h.bf16 %v8582_v3  ;;  %v6318_v12 = vunpack.i.l.bf16 %v8582_v3 }
 0x30b   : > { %5920 = vmatprep.mubr.msk.bf16.mxu0 %vm3410_vm10, %v3385_v46  ;;  %v3192_v35 = vsel %vm3176_vm4, %v3159_v41, %v6309_v11  ;;  %v3224_v27 = vsel %vm3209_vm5, %v3191_v34, %v6313_v9  ;;  %v6429_v26 = vunpack.i.h.bf16 %v6427_v63  ;;  %v6428_v53 = vunpack.i.l.bf16 %v6427_v63 }
 0x30c   : > { %6696 = vrot.lane.b32.xlu0 %v8629_v0, %s7403_s23  ;;  %v3225_v19 = vsel %vm3209_vm5, %v3192_v35, %v6314_v50  ;;  %v3257_v42 = vsel %vm3242_vm6, %v3224_v27, %v6318_v12  ;;  %v6338_v34 = vunpack.i.l.bf16 %v8600_v31  ;;  %v6344_v35 = vunpack.i.h.bf16 %v8642_v38  ;;  %s5729_s23 = sshll.u32 %s9718_s25, 8 }
 0x30d   : > { %v3258_v17 = vsel %vm3242_vm6, %v3225_v19, %v6319_v23  ;;  %v3290_v10 = vsel %vm3275_vm7, %v3257_v42, %v6428_v53  ;;  %v6343_v50 = vunpack.i.l.bf16 %v8642_v38  ;;  %v1814_v53 = vld [vmem:[#allocation2 + $0xc0] sm:$0xff]  ;;  %v1815_v23 = vld [vmem:[#allocation2 + $0xc8] sm:$0xff]  ;;  %s9528_s18 = scalar_lea.vmem %s9676_s17, %s5729_s23 }
 0x30e   : > { %v8731_v33 = vpop.permute.xlu0 %6411  ;;  %v6432_v25 = vpop.permute.xlu1 %6431  ;;  %v3291_v46 = vsel %vm3275_vm7, %v3258_v17, %v6429_v26 }
 0x30f   : > { %v6434_v5 = vunpack.i.h.bf16 %v6432_v25  ;;  %v6433_v40 = vunpack.i.l.bf16 %v6432_v25  ;;  %v6339_v25 = vunpack.i.h.bf16 %v8600_v31 }
 0x311   : > { %v3323_v63 = vsel %vm3308_vm8, %v3290_v10, %v6433_v40  ;;  %v3324_v20 = vsel %vm3308_vm8, %v3291_v46, %v6434_v5  ;;  %v3127_v40 = vsel %vm663_vm1, %v1814_v53, %v6338_v34  ;;  %v3128_v42 = vsel %vm663_vm1, %v1815_v23, %v6339_v25 }
 0x312   : > { %v8737_v0 = vpop.permute.xlu0 %6421  ;;  %v8739_v16 = vpop.permute.xlu1 %6441  ;;  %v3160_v17 = vsel %vm3143_vm3, %v3127_v40, %v6343_v50  ;;  %v3161_v31 = vsel %vm3143_vm3, %v3128_v42, %v6344_v35  ;;  %v6414_v35 = vunpack.i.h.bf16 %v8731_v33  ;;  %v6413_v50 = vunpack.i.l.bf16 %v8731_v33 }
 0x316   : > { %v6437_v45 = vpop.permute.xlu0 %6436  ;;  %v8747_v43 = vpop.permute.xlu1 %6446 }
 0x317   : > { %v6439_v36 = vunpack.i.h.bf16 %v6437_v45  ;;  %v6438_v49 = vunpack.i.l.bf16 %v6437_v45  ;;  %v6448_v42 = vunpack.i.l.bf16 %v8747_v43 }
 0x319   : > { %v3356_v3 = vsel %vm3341_vm9, %v3323_v63, %v6438_v49  ;;  %v3357_v7 = vsel %vm3341_vm9, %v3324_v20, %v6439_v36  ;;  %v6404_v63 = vunpack.i.h.bf16 %v8702_v59  ;;  %v6403_v20 = vunpack.i.l.bf16 %v8702_v59 }
 0x31a   : > { %v3386_v41 = vpack.c.bf16 %v3357_v7, %v3356_v3  ;;  %v6452_v11 = vpop.permute.xlu0 %6451  ;;  %v8755_v13 = vpop.permute.xlu1 %6466 }
 0x31b   : > { %v6454_v27 = vunpack.i.h.bf16 %v6452_v11  ;;  %v6453_v19 = vunpack.i.l.bf16 %v6452_v11  ;;  %v6408_v11 = vunpack.i.l.bf16 %v8720_v21 }
 0x31c   : > { %5921 = vmatmul.mubr.msk.bf16.gmra.mrb[44].mxu0 %vm3410_vm10, %v3386_v41  ;;  %v6409_v41 = vunpack.i.h.bf16 %v8720_v21 }
 0x31d   : > { %v3194_v38 = vsel %vm3176_vm4, %v3161_v31, %v6454_v27  ;;  %v3193_v46 = vsel %vm3176_vm4, %v3160_v17, %v6453_v19  ;;  %v6444_v19 = vunpack.i.h.bf16 %v8739_v16  ;;  %v1817_v31 = vld [vmem:[#allocation2 + $0xe0] sm:$0xff] }
 0x31e   : > { %v6457_v9 = vpop.permute.xlu0 %6456  ;;  %v8762_v26 = vpop.permute.xlu1 %6471 }
 0x31f   : > { %v6459_v12 = vunpack.i.h.bf16 %v6457_v9  ;;  %v6458_v5 = vunpack.i.l.bf16 %v6457_v9 }
 0x321   : > { %v3226_v3 = vsel %vm3209_vm5, %v3193_v46, %v6458_v5  ;;  %v3227_v7 = vsel %vm3209_vm5, %v3194_v38, %v6459_v12  ;;  %v6443_v12 = vunpack.i.l.bf16 %v8739_v16  ;;  %v6449_v5 = vunpack.i.h.bf16 %v8747_v43  ;;  %v1816_v38 = vld [vmem:[#allocation2 + $0xd8] sm:$0xff] }
 0x322   : > { %v6462_v45 = vpop.permute.xlu0 %6461  ;;  %v8770_v49 = vpop.permute.xlu1 %6476  ;;  %v3130_v46 = vsel %vm663_vm1, %v1817_v31, %v6444_v19  ;;  %v6388_v43 = vunpack.i.l.bf16 %v8666_v51 }
 0x323   : > { %v6464_v10 = vunpack.i.h.bf16 %v6462_v45  ;;  %v6463_v36 = vunpack.i.l.bf16 %v6462_v45  ;;  %v3129_v16 = vsel %vm663_vm1, %v1816_v38, %v6443_v12 }
 0x325   : > { %v3259_v25 = vsel %vm3242_vm6, %v3226_v3, %v6463_v36  ;;  %v3260_v34 = vsel %vm3242_vm6, %v3227_v7, %v6464_v10  ;;  %v3163_v36 = vsel %vm3143_vm3, %v3130_v46, %v6449_v5 }
 0x326   : > { %v3292_v9 = vsel %vm3275_vm7, %v3259_v25, %v6403_v20  ;;  %v3293_v59 = vsel %vm3275_vm7, %v3260_v34, %v6404_v63  ;;  %v8784_v27 = vpop.permute.xlu0 %6481  ;;  %v8787_v53 = vpop.permute.xlu1 %6496  ;;  %v6389_v63 = vunpack.i.h.bf16 %v8666_v51  ;;  %v3162_v20 = vsel %vm3143_vm3, %v3129_v16, %v6448_v42 }
 0x327   : > { %v3325_v21 = vsel %vm3308_vm8, %v3292_v9, %v6408_v11  ;;  %v3326_v23 = vsel %vm3308_vm8, %v3293_v59, %v6409_v41  ;;  %v6394_v11 = vunpack.i.h.bf16 %v8675_v48  ;;  %v3195_v25 = vsel %vm3176_vm4, %v3162_v20, %v6388_v43 }
 0x328   : > { %v3358_v33 = vsel %vm3341_vm9, %v3325_v21, %v6413_v50  ;;  %v3359_v40 = vsel %vm3341_vm9, %v3326_v23, %v6414_v35  ;;  %v3196_v7 = vsel %vm3176_vm4, %v3163_v36, %v6389_v63  ;;  %v6393_v34 = vunpack.i.l.bf16 %v8675_v48 }
 0x329   : > { %v3387_v17 = vpack.c.bf16 %v3359_v40, %v3358_v33  ;;  %v3229_v35 = vsel %vm3209_vm5, %v3196_v7, %v6394_v11  ;;  %v6399_v59 = vunpack.i.h.bf16 %v8683_v54  ;;  %v6398_v23 = vunpack.i.l.bf16 %v8683_v54 }
 0x32a   : > { %v8796_v45 = vpop.permute.xlu0 %6486  ;;  %v6507_v10 = vpop.permute.xlu1 %6506  ;;  %v3228_v51 = vsel %vm3209_vm5, %v3195_v25, %v6393_v34  ;;  %v6419_v11 = vunpack.i.h.bf16 %v8704_v1  ;;  %v6418_v25 = vunpack.i.l.bf16 %v8704_v1  ;;  %v6424_v34 = vunpack.i.h.bf16 %v8737_v0 }
 0x32b   : > { %5924 = vmatprep.mubr.msk.bf16.mxu0 %vm3410_vm10, %v3387_v17  ;;  %v6509_v50 = vunpack.i.h.bf16 %v6507_v10  ;;  %v6508_v19 = vunpack.i.l.bf16 %v6507_v10  ;;  %v3262_v33 = vsel %vm3242_vm6, %v3229_v35, %v6399_v59  ;;  %v3261_v48 = vsel %vm3242_vm6, %v3228_v51, %v6398_v23  ;;  %v3957_v17 = vld [vmem:[%s9664_s5] sm:$0x3]  ;;  %v1818_v23 = vld [vmem:[#allocation2 + $0xf0] sm:$0xff] }
 0x32c   : > { %6045 = vmatprep.subr.msk.bf16.mxu1 %vm712_vm0, %v3957_v17  ;;  %v4023_v54 = vsel %vm712_vm0, %v3957_v17, 0  ;;  %v6423_v35 = vunpack.i.l.bf16 %v8737_v0 }
 0x32d   : > { %v3295_v40 = vsel %vm3275_vm7, %v3262_v33, %v6509_v50  ;;  %v3294_v31 = vsel %vm3275_vm7, %v3261_v48, %v6508_v19  ;;  %5941 = vmatpush3.bf16.msra.mxu1 %v4023_v54  ;;  %v3131_v48 = vsel %vm663_vm1, %v1818_v23, %v6418_v25 }
 0x32e   : > { %v8805_v3 = vpop.permute.xlu0 %6491 }
 0x32f   : > { %v6512_v41 = vpop.permute.xlu1 %6511 }
 0x330   : > { %v6514_v12 = vunpack.i.h.bf16 %v6512_v41  ;;  %v6513_v5 = vunpack.i.l.bf16 %v6512_v41 }
 0x332   : > { %v8812_v9 = vpop.permute.xlu0 %6501  ;;  %v3327_v16 = vsel %vm3308_vm8, %v3294_v31, %v6513_v5  ;;  %v3328_v36 = vsel %vm3308_vm8, %v3295_v40, %v6514_v12  ;;  %v1819_v12 = vld [vmem:[#allocation2 + $0xf8] sm:$0xff] }
 0x333   : > { %v8816_v21 = vpop.permute.xlu1 %6521  ;;  %v3132_v40 = vsel %vm663_vm1, %v1819_v12, %v6419_v11 }
 0x334   : > { %v3165_v1 = vsel %vm3143_vm3, %v3132_v40, %v6424_v34  ;;  %v6494_v34 = vunpack.i.h.bf16 %v8805_v3  ;;  %v6524_v12 = vunpack.i.h.bf16 %v8816_v21 }
 0x336   : > { %v6517_v42 = vpop.permute.xlu0 %6516 }
 0x337   : > { %v6519_v38 = vunpack.i.h.bf16 %v6517_v42  ;;  %v6518_v46 = vunpack.i.l.bf16 %v6517_v42  ;;  %v8826_v10 = vpop.permute.xlu1 %6526  ;;  %v3164_v42 = vsel %vm3143_vm3, %v3131_v48, %v6423_v35  ;;  %v6493_v35 = vunpack.i.l.bf16 %v8805_v3 }
 0x338   : > { %v6529_v48 = vunpack.i.h.bf16 %v8826_v10  ;;  %v6528_v40 = vunpack.i.l.bf16 %v8826_v10  ;;  %v6468_v10 = vunpack.i.l.bf16 %v8755_v13 }
 0x339   : > { %v3360_v63 = vsel %vm3341_vm9, %v3327_v16, %v6518_v46  ;;  %v3361_v20 = vsel %vm3341_vm9, %v3328_v36, %v6519_v38  ;;  %v6484_v16 = vunpack.i.h.bf16 %v8784_v27  ;;  %v6483_v36 = vunpack.i.l.bf16 %v8784_v27 }
 0x33a   : > { %v3388_v43 = vpack.c.bf16 %v3361_v20, %v3360_v63  ;;  %v6532_v7 = vpop.permute.xlu0 %6531 }
 0x33b   : > { %v8834_v41 = vpop.permute.xlu1 %6546  ;;  %v6534_v59 = vunpack.i.h.bf16 %v6532_v7  ;;  %v6533_v51 = vunpack.i.l.bf16 %v6532_v7  ;;  %v6488_v7 = vunpack.i.l.bf16 %v8796_v45 }
 0x33c   : > { %5925 = vmatmul.mubr.msk.bf16.gmra.mrb[48].mxu0 %vm3410_vm10, %v3388_v43  ;;  %v6489_v43 = vunpack.i.h.bf16 %v8796_v45 }
 0x33d   : > { %v3198_v0 = vsel %vm3176_vm4, %v3165_v1, %v6534_v59  ;;  %v3197_v31 = vsel %vm3176_vm4, %v3164_v42, %v6533_v51 }
 0x33e   : > { %v6537_v50 = vpop.permute.xlu0 %6536 }
 0x33f   : > { %v8841_v19 = vpop.permute.xlu1 %6551  ;;  %v6539_v5 = vunpack.i.h.bf16 %v6537_v50  ;;  %v6538_v33 = vunpack.i.l.bf16 %v6537_v50 }
 0x341   : > { %v3230_v63 = vsel %vm3209_vm5, %v3197_v31, %v6538_v33  ;;  %v3231_v20 = vsel %vm3209_vm5, %v3198_v0, %v6539_v5  ;;  %v6523_v5 = vunpack.i.l.bf16 %v8816_v21  ;;  %v7368_v0 = vld [vmem:[#allocation2 + $0x108] sm:$0xff] }
 0x342   : > { %v6542_v17 = vpop.permute.xlu0 %6541 }
 0x343   : > { %v6544_v38 = vunpack.i.h.bf16 %v6542_v17  ;;  %v6543_v46 = vunpack.i.l.bf16 %v6542_v17  ;;  %v8849_v54 = vpop.permute.xlu1 %6556  ;;  %v3133_v31 = vsel %vm663_vm1, %v7368_v0, %v6523_v5 }
 0x345   : > { %v3263_v11 = vsel %vm3242_vm6, %v3230_v63, %v6543_v46  ;;  %v3264_v25 = vsel %vm3242_vm6, %v3231_v20, %v6544_v38  ;;  %v7369_v38 = vld [vmem:[#allocation2 + $0x110] sm:$0xff]  ;;  %v3166_v46 = vsel %vm3143_vm3, %v3133_v31, %v6528_v40 }
 0x346   : > { %v3296_v50 = vsel %vm3275_vm7, %v3263_v11, %v6483_v36  ;;  %v3297_v27 = vsel %vm3275_vm7, %v3264_v25, %v6484_v16  ;;  %v8863_v59 = vpop.permute.xlu0 %6561  ;;  %v3134_v21 = vsel %vm663_vm1, %v7369_v38, %v6524_v12  ;;  %v6469_v36 = vunpack.i.h.bf16 %v8755_v13 }
 0x347   : > { %v8865_v51 = vpop.permute.xlu1 %6576  ;;  %v3329_v23 = vsel %vm3308_vm8, %v3296_v50, %v6488_v7  ;;  %v3330_v45 = vsel %vm3308_vm8, %v3297_v27, %v6489_v43  ;;  %v3167_v16 = vsel %vm3143_vm3, %v3134_v21, %v6529_v48  ;;  %v3199_v43 = vsel %vm3176_vm4, %v3166_v46, %v6468_v10 }
 0x348   : > { %v3362_v33 = vsel %vm3341_vm9, %v3329_v23, %v6493_v35  ;;  %v3363_v3 = vsel %vm3341_vm9, %v3330_v45, %v6494_v34  ;;  %v3200_v7 = vsel %vm3176_vm4, %v3167_v16, %v6469_v36  ;;  %v6474_v11 = vunpack.i.h.bf16 %v8762_v26 }
 0x349   : > { %v3389_v42 = vpack.c.bf16 %v3363_v3, %v3362_v33  ;;  %v6473_v25 = vunpack.i.l.bf16 %v8762_v26  ;;  %v6479_v45 = vunpack.i.h.bf16 %v8770_v49  ;;  %v6478_v12 = vunpack.i.l.bf16 %v8770_v49 }
 0x34a   : > { %v8875_v1 = vpop.permute.xlu0 %6566  ;;  %v3233_v50 = vsel %vm3209_vm5, %v3200_v7, %v6474_v11  ;;  %v6499_v16 = vunpack.i.h.bf16 %v8787_v53  ;;  %v6498_v36 = vunpack.i.l.bf16 %v8787_v53  ;;  %v6503_v7 = vunpack.i.l.bf16 %v8812_v9 }
 0x34b   : > { %v6587_v17 = vpop.permute.xlu1 %6586  ;;  %5928 = vmatprep.mubr.msk.bf16.mxu0 %vm3410_vm10, %v3389_v42  ;;  %v3232_v35 = vsel %vm3209_vm5, %v3199_v43, %v6473_v25  ;;  %v3266_v48 = vsel %vm3242_vm6, %v3233_v50, %v6479_v45  ;;  %v6504_v43 = vunpack.i.h.bf16 %v8812_v9  ;;  %v1822_v25 = vld [vmem:[#allocation2 + $0x120] sm:$0xff] }
 0x34c   : > { %v6589_v27 = vunpack.i.h.bf16 %v6587_v17  ;;  %v6588_v23 = vunpack.i.l.bf16 %v6587_v17  ;;  %v3265_v3 = vsel %vm3242_vm6, %v3232_v35, %v6478_v12  ;;  %v1823_v35 = vld [vmem:[#allocation2 + $0x128] sm:$0xff]  ;;  %v3135_v50 = vsel %vm663_vm1, %v1822_v25, %v6498_v36 }
 0x34d   : > { %v3168_v45 = vsel %vm3143_vm3, %v3135_v50, %v6503_v7 }
 0x34e   : > { %v8884_v63 = vpop.permute.xlu0 %6571  ;;  %v3299_v40 = vsel %vm3275_vm7, %v3266_v48, %v6589_v27  ;;  %v3298_v42 = vsel %vm3275_vm7, %v3265_v3, %v6588_v23  ;;  %v3136_v27 = vsel %vm663_vm1, %v1823_v35, %v6499_v16 }
 0x34f   : > { %v6592_v20 = vpop.permute.xlu1 %6591  ;;  %v3169_v53 = vsel %vm3143_vm3, %v3136_v27, %v6504_v43  ;;  %v6574_v27 = vunpack.i.h.bf16 %v8884_v63 }
 0x350   : > { %v6594_v5 = vunpack.i.h.bf16 %v6592_v20  ;;  %v6593_v33 = vunpack.i.l.bf16 %v6592_v20 }
 0x352   : > { %v8890_v34 = vpop.permute.xlu0 %6581  ;;  %v3331_v17 = vsel %vm3308_vm8, %v3298_v42, %v6593_v33  ;;  %v3332_v21 = vsel %vm3308_vm8, %v3299_v40, %v6594_v5  ;;  %v6549_v40 = vunpack.i.h.bf16 %v8834_v41  ;;  %v6548_v42 = vunpack.i.l.bf16 %v8834_v41 }
 0x353   : > { %v6602_v13 = vpop.permute.xlu1 %6601 }
 0x354   : > { %v6604_v9 = vunpack.i.h.bf16 %v6602_v13  ;;  %v6603_v3 = vunpack.i.l.bf16 %v6602_v13 }
 0x356   : > { %v6597_v26 = vpop.permute.xlu0 %6596  ;;  %v3137_v41 = vsel %vm663_vm1, %v8536_v18, %v6603_v3 }
 0x357   : > { %v6599_v0 = vunpack.i.h.bf16 %v6597_v26  ;;  %v6598_v31 = vunpack.i.l.bf16 %v6597_v26  ;;  %v6607_v38 = vpop.permute.xlu1 %6606 }
 0x359   : > { %v3364_v49 = vsel %vm3341_vm9, %v3331_v17, %v6598_v31  ;;  %v3365_v46 = vsel %vm3341_vm9, %v3332_v21, %v6599_v0  ;;  %v6609_v0 = vunpack.i.h.bf16 %v6607_v38  ;;  %v6608_v31 = vunpack.i.l.bf16 %v6607_v38 }
 0x35a   : > { %v3390_v10 = vpack.c.bf16 %v3365_v46, %v3364_v49  ;;  %v6612_v20 = vpop.permute.xlu0 %6611  ;;  %v6564_v17 = vunpack.i.h.bf16 %v8863_v59  ;;  %v6563_v21 = vunpack.i.l.bf16 %v8863_v59  ;;  %v6569_v49 = vunpack.i.h.bf16 %v8875_v1 }
 0x35b   : > { %v8908_v11 = vpop.permute.xlu1 %6626  ;;  %v6614_v12 = vunpack.i.h.bf16 %v6612_v20  ;;  %v6613_v5 = vunpack.i.l.bf16 %v6612_v20  ;;  %v6568_v46 = vunpack.i.l.bf16 %v8875_v1  ;;  %v3138_v38 = vsel %vm663_vm1, %v8538_v52, %v6604_v9 }
 0x35c   : > { %5929 = vmatmul.mubr.msk.bf16.gmra.mrb[52].mxu0 %vm3410_vm10, %v3390_v10  ;;  %v3170_v1 = vsel %vm3143_vm3, %v3137_v41, %v6608_v31  ;;  %v3171_v25 = vsel %vm3143_vm3, %v3138_v38, %v6609_v0  ;;  %v6553_v0 = vunpack.i.l.bf16 %v8841_v19  ;;  %v6583_v41 = vunpack.i.l.bf16 %v8890_v34 }
 0x35d   : > { %v3202_v36 = vsel %vm3176_vm4, %v3169_v53, %v6614_v12  ;;  %v3201_v13 = vsel %vm3176_vm4, %v3168_v45, %v6613_v5  ;;  %v3203_v9 = vsel %vm3176_vm4, %v3170_v1, %v6548_v42  ;;  %v3204_v3 = vsel %vm3176_vm4, %v3171_v25, %v6549_v40 }
 0x35e   : > { %v6617_v23 = vpop.permute.xlu0 %6616  ;;  %v6559_v40 = vunpack.i.h.bf16 %v8849_v54 }
 0x35f   : > { %v8915_v33 = vpop.permute.xlu1 %6631  ;;  %v6619_v48 = vunpack.i.h.bf16 %v6617_v23  ;;  %v6618_v26 = vunpack.i.l.bf16 %v6617_v23  ;;  %v6573_v23 = vunpack.i.l.bf16 %v8884_v63  ;;  %v6554_v63 = vunpack.i.h.bf16 %v8841_v19 }
 0x360   : > { %v6579_v19 = vunpack.i.h.bf16 %v8865_v51 }
 0x361   : > { %v3234_v59 = vsel %vm3209_vm5, %v3201_v13, %v6618_v26  ;;  %v3235_v7 = vsel %vm3209_vm5, %v3202_v36, %v6619_v48  ;;  %v6558_v36 = vunpack.i.l.bf16 %v8849_v54 }
 0x362   : > { %v6622_v16 = vpop.permute.xlu0 %6621 }
 0x363   : > { %v6624_v10 = vunpack.i.h.bf16 %v6622_v16  ;;  %v6623_v20 = vunpack.i.l.bf16 %v6622_v16  ;;  %v8925_v43 = vpop.permute.xlu1 %6636 }
 0x365   : > { %v3267_v35 = vsel %vm3242_vm6, %v3234_v59, %v6623_v20  ;;  %v3268_v50 = vsel %vm3242_vm6, %v3235_v7, %v6624_v10  ;;  %v6578_v20 = vunpack.i.l.bf16 %v8865_v51 }
 0x366   : > { %v3300_v18 = vsel %vm3275_vm7, %v3267_v35, %v6563_v21  ;;  %v3301_v52 = vsel %vm3275_vm7, %v3268_v50, %v6564_v17  ;;  %v8941_v45 = vpop.permute.xlu0 %6641  ;;  %v3236_v21 = vsel %vm3209_vm5, %v3203_v9, %v6553_v0  ;;  %v7370_v9 = vld [vmem:[#allocation2 + $0x150] sm:$0xff] }
 0x367   : > { %v6652_v53 = vpop.permute.xlu1 %6651  ;;  %v3333_v12 = vsel %vm3308_vm8, %v3300_v18, %v6568_v46  ;;  %v3334_v5 = vsel %vm3308_vm8, %v3301_v52, %v6569_v49  ;;  %v3237_v46 = vsel %vm3209_vm5, %v3204_v3, %v6554_v63  ;;  %v3269_v38 = vsel %vm3242_vm6, %v3236_v21, %v6558_v36  ;;  %v7371_v63 = vld [vmem:[#allocation2 + $0x158] sm:$0xff] }
 0x368   : > { %v3366_v48 = vsel %vm3341_vm9, %v3333_v12, %v6573_v23  ;;  %v3367_v26 = vsel %vm3341_vm9, %v3334_v5, %v6574_v27  ;;  %v6654_v49 = vunpack.i.h.bf16 %v6652_v53  ;;  %v6653_v16 = vunpack.i.l.bf16 %v6652_v53 }
 0x369   : > { %v3391_v31 = vpack.c.bf16 %v3367_v26, %v3366_v48  ;;  %v3270_v59 = vsel %vm3242_vm6, %v3237_v46, %v6559_v40  ;;  %v6079_v12 = vunpack.i.h.bf16 %v8315_v22  ;;  %v6078_v5 = vunpack.i.l.bf16 %v8315_v22 }
 0x36a   : > { %v8951_v17 = vpop.permute.xlu0 %6646  ;;  %v3303_v1 = vsel %vm3275_vm7, %v3270_v59, %v6654_v49  ;;  %v3302_v25 = vsel %vm3275_vm7, %v3269_v38, %v6653_v16  ;;  %v3139_v3 = vsel %vm663_vm1, %v7370_v9, %v6578_v20  ;;  %v3140_v0 = vsel %vm663_vm1, %v7371_v63, %v6579_v19 }
 0x36b   : > { %v6657_v42 = vpop.permute.xlu1 %6656  ;;  %5932 = vmatprep.mubr.msk.bf16.mxu0 %vm3410_vm10, %v3391_v31  ;;  %v6584_v31 = vunpack.i.h.bf16 %v8890_v34  ;;  %v3172_v21 = vsel %vm3143_vm3, %v3139_v3, %v6583_v41  ;;  %v6629_v46 = vunpack.i.h.bf16 %v8908_v11  ;;  %v6628_v16 = vunpack.i.l.bf16 %v8908_v11 }
 0x36c   : > { %v6659_v13 = vunpack.i.h.bf16 %v6657_v42  ;;  %v6658_v10 = vunpack.i.l.bf16 %v6657_v42  ;;  %v6634_v42 = vunpack.i.h.bf16 %v8915_v33  ;;  %v6633_v36 = vunpack.i.l.bf16 %v8915_v33 }
 0x36d   : > { %v6638_v59 = vunpack.i.l.bf16 %v8925_v43 }
 0x36e   : > { %v6662_v7 = vpop.permute.xlu0 %6661  ;;  %v3335_v27 = vsel %vm3308_vm8, %v3302_v25, %v6658_v10  ;;  %v3336_v23 = vsel %vm3308_vm8, %v3303_v1, %v6659_v13  ;;  %v6639_v13 = vunpack.i.h.bf16 %v8925_v43 }
 0x36f   : > { %v6664_v35 = vunpack.i.h.bf16 %v6662_v7  ;;  %v6663_v50 = vunpack.i.l.bf16 %v6662_v7  ;;  %v6667_v54 = vpop.permute.xlu1 %6666 }
 0x370   : > { %v6669_v52 = vunpack.i.h.bf16 %v6667_v54  ;;  %v6668_v53 = vunpack.i.l.bf16 %v6667_v54  ;;  %v6644_v54 = vunpack.i.h.bf16 %v8941_v45 }
 0x371   : > { %v3368_v51 = vsel %vm3341_vm9, %v3335_v27, %v6663_v50  ;;  %v3369_v18 = vsel %vm3341_vm9, %v3336_v23, %v6664_v35  ;;  %v6643_v27 = vunpack.i.l.bf16 %v8941_v45 }
 0x372   : > { %v3392_v48 = vpack.c.bf16 %v3369_v18, %v3368_v51  ;;  %v6682_v26 = vpop.permute.xlu0 %6681  ;;  %v3141_v34 = vsel %vm663_vm1, %v8631_v37, %v6668_v53  ;;  %v3142_v10 = vsel %vm663_vm1, %v8633_v32, %v6669_v52  ;;  %v3173_v37 = vsel %vm3143_vm3, %v3140_v0, %v6584_v31 }
 0x373   : > { %v6672_v49 = vpop.permute.xlu1 %6671  ;;  %v6684_v19 = vunpack.i.h.bf16 %v6682_v26  ;;  %v6683_v20 = vunpack.i.l.bf16 %v6682_v26 }
 0x374   : > { %v6674_v22 = vunpack.i.h.bf16 %v6672_v49  ;;  %v6673_v40 = vunpack.i.l.bf16 %v6672_v49  ;;  %5933 = vmatmul.mubr.msk.bf16.gmra.mrb[56].mxu0 %vm3410_vm10, %v3392_v48 }
 0x375   : > { %v3206_v51 = vsel %vm3176_vm4, %v3173_v37, %v6684_v19  ;;  %v3205_v18 = vsel %vm3176_vm4, %v3172_v21, %v6683_v20  ;;  %v7374_v37 = vld [vmem:[%s7514_s19 + $0x10] sm:$0xff]  }
 0x376   : > { %v3174_v11 = vsel %vm3143_vm3, %v3141_v34, %v6673_v40  ;;  %v3175_v41 = vsel %vm3143_vm3, %v3142_v10, %v6674_v22  ;;  %v6687_v38 = vpop.permute.xlu0 %6686  ;;  %v6649_v22 = vunpack.i.h.bf16 %v8951_v17 }
 0x377   : > { %v3207_v7 = vsel %vm3176_vm4, %v3174_v11, %v6628_v16  ;;  %v3208_v33 = vsel %vm3176_vm4, %v3175_v41, %v6629_v46  ;;  %v6688_v1 = vunpack.i.l.bf16 %v6687_v38  ;;  %v6677_v25 = vpop.permute.xlu1 %6676  ;;  %v6689_v50 = vunpack.i.h.bf16 %v6687_v38 }
 0x378   : > { %v3240_v35 = vsel %vm3209_vm5, %v3207_v7, %v6633_v36  ;;  %v3241_v32 = vsel %vm3209_vm5, %v3208_v33, %v6634_v42  ;;  %v6679_v52 = vunpack.i.h.bf16 %v6677_v25  ;;  %v6678_v53 = vunpack.i.l.bf16 %v6677_v25  ;;  %v7372_v33 = vld [vmem:[%s7514_s19] sm:$0xff]  }
 0x379   : > { %v3273_v23 = vsel %vm3242_vm6, %v3240_v35, %v6638_v59  ;;  %v3274_v43 = vsel %vm3242_vm6, %v3241_v32, %v6639_v13  ;;  %v3238_v3 = vsel %vm3209_vm5, %v3205_v18, %v6688_v1  ;;  %v3239_v45 = vsel %vm3209_vm5, %v3206_v51, %v6689_v50  ;;  %v7373_v1 = vld [vmem:[%s7514_s19 + $0x8] sm:$0xff]   ;;  %v9026_v25 = vld [vmem:[%s9669_s10] ss:$0 sm:$0xff] }
 0x37a   : > { %v6692_v9 = vpop.permute.xlu0 %6691  ;;  %v3306_v48 = vsel %vm3275_vm7, %v3273_v23, %v6078_v5  ;;  %v3307_v31 = vsel %vm3275_vm7, %v3274_v43, %v6079_v12  ;;  %v6648_v16 = vunpack.i.l.bf16 %v8951_v17  ;;  %v9033_v32 = vld [vmem:[%s9670_s11] ss:$0 sm:$0xff] }
 0x37b   : > { %v6694_v26 = vunpack.i.h.bf16 %v6692_v9  ;;  %v6693_v63 = vunpack.i.l.bf16 %v6692_v9  ;;  %v6702_v0 = vpop.permute.xlu1 %6701  ;;  %v3339_v40 = vsel %vm3308_vm8, %v3306_v48, %v6678_v53  ;;  %v3340_v12 = vsel %vm3308_vm8, %v3307_v31, %v6679_v52 }
 0x37c   : > { %v6704_v46 = vunpack.i.h.bf16 %v6702_v0  ;;  %v6703_v49 = vunpack.i.l.bf16 %v6702_v0 }
 0x37d   : > { %v3271_v21 = vsel %vm3242_vm6, %v3238_v3, %v6693_v63  ;;  %v3272_v42 = vsel %vm3242_vm6, %v3239_v45, %v6694_v26  ;;  %v7375_v63 = vld [vmem:[%s7514_s19 + $0x18] sm:$0xff]   ;;  %v7376_v45 = vld [vmem:[%s7514_s19 + $0x20] sm:$0xff]  }
 0x37e   : > { %v3304_v5 = vsel %vm3275_vm7, %v3271_v21, %v6643_v27  ;;  %v3305_v36 = vsel %vm3275_vm7, %v3272_v42, %v6644_v54  ;;  %v6697_v13 = vpop.permute.xlu0 %6696  ;;  %v3372_v20 = vsel %vm3341_vm9, %v3339_v40, %v6703_v49  ;;  %v3373_v17 = vsel %vm3341_vm9, %v3340_v12, %v6704_v46  ;;  %v7377_v46 = vld [vmem:[%s7514_s19 + $0x28] sm:$0xff]   ;;  %v7378_v49 = vld [vmem:[%s7514_s19 + $0x30] sm:$0xff]   ;;  %v7379_v12 = vld [vmem:[%s7514_s19 + $0x38] sm:$0xff]  }
 0x37f   : > { %v6699_v34 = vunpack.i.h.bf16 %v6697_v13  ;;  %v6698_v10 = vunpack.i.l.bf16 %v6697_v13  ;;  %v3337_v19 = vsel %vm3308_vm8, %v3304_v5, %v6648_v16  ;;  %v3338_v11 = vsel %vm3308_vm8, %v3305_v36, %v6649_v22 }
 0x380   : > { %v3394_v7 = vpack.c.bf16 %v3373_v17, %v3372_v20 }
 0x381   : > { %v3370_v41 = vsel %vm3341_vm9, %v3337_v19, %v6698_v10  ;;  %v3371_v38 = vsel %vm3341_vm9, %v3338_v11, %v6699_v34  ;;  %v7380_v34 = vld [vmem:[%s7514_s19 + $0x40] sm:$0xff]   ;;  %v7381_v19 = vld [vmem:[%s7514_s19 + $0x48] sm:$0xff]   ;;  %v7382_v11 = vld [vmem:[%s7514_s19 + $0x50] sm:$0xff]  }
 0x382   : > { %v3393_v59 = vpack.c.bf16 %v3371_v38, %v3370_v41 }
 0x384   : > { %5936 = vmatprep.mubr.msk.bf16.mxu0 %vm3410_vm10, %v3393_v59 }
 0x385   : > { %5937 = vmatmul.mubr.msk.bf16.gmra.mrb[60].mxu0 %vm3410_vm10, %v3394_v7 }
 0x386   : > { %5976 = vmatprep.mubr.msk.bf16.mxu0 %vm663_vm1, %v7372_v33 }
 0x38d   : > { %5977 = vmatmul.mubr.msk.bf16.vlgmr.msra.gmra.mrb[64].mxu0 %vm663_vm1, %v7373_v1 }
 0x38e   : > { %5980 = vmatprep.mubr.msk.bf16.mxu0 %vm663_vm1, %v7374_v37 }
 0x38f   : > { %v5910_v35 = vpop.f32.mrb[32].mxu0 }
 0x390   : > { %v3632_v50 = vmul.f32 %v5910_v35, %v9026_v25  ;;  %v3496_v54 = vpop.f32.mrb[33].mxu0 }
 0x391   : > { %v3630_v27 = vmul.f32 %v9026_v25, %v3496_v54  ;;  %v5911_v23 = vpop.f32.mrb[34].mxu0 }
 0x392   : > { %v3671_v43 = vadd.f32 %v9033_v32, %v3632_v50  ;;  %v3633_v51 = vmul.f32 %v5911_v23, %v9026_v25  ;;  %v3499_v18 = vpop.f32.mrb[35].mxu0 }
 0x393   : > { %v3669_v52 = vadd.f32 %v9033_v32, %v3630_v27  ;;  %v3631_v53 = vmul.f32 %v9026_v25, %v3499_v18 }
 0x394   : > { %v5580_v9 = vmul.f32 -1.442695, %v3671_v43  ;;  %v3672_v3 = vadd.f32 %v9033_v32, %v3633_v51 }
 0x395   : > { %v5578_v48 = vmul.f32 -1.442695, %v3669_v52  ;;  %v3670_v26 = vadd.f32 %v9033_v32, %v3631_v53  ;;  %5981 = vmatmul.mubr.msk.bf16.gmra.mrb[68].mxu0 %vm663_vm1, %v7375_v63 }
 0x396   : > { %6980 = vpow2.f32 %v5580_v9  ;;  %v5581_v0 = vmul.f32 -1.442695, %v3672_v3  ;;  %5984 = vmatprep.mubr.msk.bf16.mxu0 %vm663_vm1, %v7376_v45  ;;  %v7383_v45 = vld [vmem:[%s7514_s19 + $0x58] sm:$0xff]  }
 0x397   : > { %6982 = vpow2.f32 %v5578_v48  ;;  %v5579_v31 = vmul.f32 -1.442695, %v3670_v26 }
 0x398   : > { %6984 = vpow2.f32 %v5581_v0 }
 0x399   : > { %6986 = vpow2.f32 %v5579_v31 }
 0x39d   : > { %5985 = vmatmul.mubr.msk.bf16.gmra.mrb[72].mxu0 %vm663_vm1, %v7377_v46  ;;  %v7385_v46 = vld [vmem:[%s7514_s19 + $0x68] sm:$0xff]  }
 0x39e   : > { %5988 = vmatprep.mubr.msk.bf16.mxu0 %vm663_vm1, %v7378_v49  ;;  %v7386_v49 = vld [vmem:[%s7514_s19 + $0x70] sm:$0xff]  }
 0x3a0   : > { %v6981_v16 = vpop.eup %6980 }
 0x3a1   : > { %v6983_v21 = vpop.eup %6982  ;;  %v3799_v42 = vadd.f32 1.0, %v6981_v16 }
 0x3a2   : > { %v6985_v22 = vpop.eup %6984  ;;  %v3797_v40 = vadd.f32 1.0, %v6983_v21 }
 0x3a3   : > { %v6987_v5 = vpop.eup %6986  ;;  %6988 = vrcp.f32 %v3799_v42  ;;  %v3800_v36 = vadd.f32 1.0, %v6985_v22 }
 0x3a4   : > { %6990 = vrcp.f32 %v3797_v40  ;;  %v3798_v13 = vadd.f32 1.0, %v6987_v5 }
 0x3a5   : > { %6992 = vrcp.f32 %v3800_v36  ;;  %5989 = vmatmul.mubr.msk.bf16.gmra.mrb[76].mxu0 %vm663_vm1, %v7379_v12  ;;  %v7387_v12 = vld [vmem:[%s7514_s19 + $0x78] sm:$0xff]  }
 0x3a6   : > { %6994 = vrcp.f32 %v3798_v13  ;;  %5992 = vmatprep.mubr.msk.bf16.mxu0 %vm663_vm1, %v7380_v34 }
 0x3ad   : > { %v6989_v10 = vpop.eup %6988  ;;  %5993 = vmatmul.mubr.msk.bf16.gmra.mrb[80].mxu0 %vm663_vm1, %v7381_v19 }
 0x3ae   : > { %v6991_v20 = vpop.eup %6990  ;;  %v3895_v17 = vmul.f32 %v6989_v10, %v3671_v43  ;;  %5996 = vmatprep.mubr.msk.bf16.mxu0 %vm663_vm1, %v7382_v11 }
 0x3af   : > { %v6993_v41 = vpop.eup %6992  ;;  %v3893_v38 = vmul.f32 %v6991_v20, %v3669_v52  ;;  %v5914_v59 = vpop.f32.mrb[36].mxu0 }
 0x3b0   : > { %v6995_v7 = vpop.eup %6994  ;;  %v3896_v33 = vmul.f32 %v6993_v41, %v3672_v3  ;;  %v3636_v1 = vmul.f32 %v5914_v59, %v9026_v25  ;;  %v3512_v37 = vpop.f32.mrb[37].mxu0  ;;  %v3927_v27 = vadd.f32 %v3895_v17, %v7716_v55 }
 0x3b1   : > { %v3894_v35 = vmul.f32 %v6995_v7, %v3670_v26  ;;  %v3634_v50 = vmul.f32 %v9026_v25, %v3512_v37  ;;  %v5915_v54 = vpop.f32.mrb[38].mxu0  ;;  %v3925_v52 = vadd.f32 %v3893_v38, %v7723_v60 }
 0x3b2   : > { %v3928_v23 = vadd.f32 %v3896_v33, %v7719_v56  ;;  %v3675_v43 = vadd.f32 %v9033_v32, %v3636_v1  ;;  %v3637_v51 = vmul.f32 %v5915_v54, %v9026_v25  ;;  %v3515_v18 = vpop.f32.mrb[39].mxu0 }
 0x3b3   : > { %v3926_v53 = vadd.f32 %v3894_v35, %v7726_v61  ;;  %v3673_v9 = vadd.f32 %v9033_v32, %v3634_v50  ;;  %v3635_v3 = vmul.f32 %v9026_v25, %v3515_v18  ;;  %v7384_v61 = vld [vmem:[%s7514_s19 + $0x60] sm:$0xff]  }
 0x3b4   : > { %v3959_v48 = vpack.c.bf16 %v3928_v23, %v3927_v27  ;;  %v5584_v26 = vmul.f32 -1.442695, %v3675_v43  ;;  %v3676_v55 = vadd.f32 %v9033_v32, %v3637_v51 }
 0x3b5   : > { %v5582_v56 = vmul.f32 -1.442695, %v3673_v9  ;;  %v3674_v63 = vadd.f32 %v9033_v32, %v3635_v3  ;;  %v3958_v0 = vpack.c.bf16 %v3926_v53, %v3925_v52  ;;  %5997 = vmatmul.mubr.msk.bf16.gmra.mrb[84].mxu0 %vm663_vm1, %v7383_v45 }
 0x3b6   : > { %6996 = vpow2.f32 %v5584_v26  ;;  %v5585_v60 = vmul.f32 -1.442695, %v3676_v55  ;;  %6000 = vmatprep.mubr.msk.bf16.mxu0 %vm663_vm1, %v7384_v61 }
 0x3b7   : > { %6998 = vpow2.f32 %v5582_v56  ;;  %v5583_v31 = vmul.f32 -1.442695, %v3674_v63  ;;  %5942 = vmatprep.mubr.msk.bf16.mxu1 %vm663_vm1, %v3958_v0 }
 0x3b8   : > { %7000 = vpow2.f32 %v5585_v60  ;;  %5943 = vmatmul.mubr.msk.bf16.vlgmr.msra.gmra.mrb[32].mxu1 %vm663_vm1, %v3959_v48 }
 0x3b9   : > { %7002 = vpow2.f32 %v5583_v31 }
 0x3bd   : > { %6001 = vmatmul.mubr.msk.bf16.gmra.mrb[88].mxu0 %vm663_vm1, %v7385_v46 }
 0x3be   : > { %6004 = vmatprep.mubr.msk.bf16.mxu0 %vm663_vm1, %v7386_v49 }
 0x3c0   : > { %v6997_v16 = vpop.eup %6996 }
 0x3c1   : > { %v6999_v21 = vpop.eup %6998  ;;  %v3803_v42 = vadd.f32 1.0, %v6997_v16 }
 0x3c2   : > { %v7001_v22 = vpop.eup %7000  ;;  %v3801_v40 = vadd.f32 1.0, %v6999_v21 }
 0x3c3   : > { %v7003_v5 = vpop.eup %7002  ;;  %7004 = vrcp.f32 %v3803_v42  ;;  %v3804_v36 = vadd.f32 1.0, %v7001_v22 }
 0x3c4   : > { %7006 = vrcp.f32 %v3801_v40  ;;  %v3802_v13 = vadd.f32 1.0, %v7003_v5 }
 0x3c5   : > { %7008 = vrcp.f32 %v3804_v36  ;;  %6005 = vmatmul.mubr.msk.bf16.gmra.mrb[92].mxu0 %vm663_vm1, %v7387_v12 }
 0x3c6   : > { %7010 = vrcp.f32 %v3802_v13 }
 0x3cd   : > { %v7005_v34 = vpop.eup %7004 }
 0x3ce   : > { %v7007_v10 = vpop.eup %7006  ;;  %v3899_v19 = vmul.f32 %v7005_v34, %v3675_v43 }
 0x3cf   : > { %v7009_v20 = vpop.eup %7008  ;;  %v3897_v17 = vmul.f32 %v7007_v10, %v3673_v9  ;;  %v5918_v11 = vpop.f32.mrb[40].mxu0 }
 0x3d0   : > { %v7011_v41 = vpop.eup %7010  ;;  %v3900_v38 = vmul.f32 %v7009_v20, %v3676_v55  ;;  %v3640_v59 = vmul.f32 %v5918_v11, %v9026_v25  ;;  %v3528_v7 = vpop.f32.mrb[41].mxu0  ;;  %v3931_v35 = vadd.f32 %v3899_v19, %v7752_v24 }
 0x3d1   : > { %v3898_v33 = vmul.f32 %v7011_v41, %v3674_v63  ;;  %v3638_v1 = vmul.f32 %v9026_v25, %v3528_v7  ;;  %v5919_v37 = vpop.f32.mrb[42].mxu0  ;;  %v3929_v43 = vadd.f32 %v3897_v17, %v7761_v39 }
 0x3d2   : > { %v3932_v50 = vadd.f32 %v3900_v38, %v7756_v30  ;;  %v3679_v54 = vadd.f32 %v9033_v32, %v3640_v59  ;;  %v3641_v27 = vmul.f32 %v5919_v37, %v9026_v25  ;;  %v3531_v23 = vpop.f32.mrb[43].mxu0 }
 0x3d3   : > { %v3930_v51 = vadd.f32 %v3898_v33, %v7764_v44  ;;  %v3677_v18 = vadd.f32 %v9033_v32, %v3638_v1  ;;  %v3639_v52 = vmul.f32 %v9026_v25, %v3531_v23 }
 0x3d4   : > { %v5588_v53 = vmul.f32 -1.442695, %v3679_v54  ;;  %v3680_v9 = vadd.f32 %v9033_v32, %v3641_v27  ;;  %v3961_v3 = vpack.c.bf16 %v3932_v50, %v3931_v35 }
 0x3d5   : > { %v5586_v24 = vmul.f32 -1.442695, %v3677_v18  ;;  %v3678_v30 = vadd.f32 %v9033_v32, %v3639_v52  ;;  %v3960_v48 = vpack.c.bf16 %v3930_v51, %v3929_v43 }
 0x3d6   : > { %7012 = vpow2.f32 %v5588_v53  ;;  %v5589_v26 = vmul.f32 -1.442695, %v3680_v9 }
 0x3d7   : > { %7014 = vpow2.f32 %v5586_v24  ;;  %v5587_v55 = vmul.f32 -1.442695, %v3678_v30  ;;  %5946 = vmatprep.mubr.msk.bf16.mxu1 %vm663_vm1, %v3960_v48 }
 0x3d8   : > { %7016 = vpow2.f32 %v5589_v26  ;;  %5947 = vmatmul.mubr.msk.bf16.gmra.mrb[36].mxu1 %vm663_vm1, %v3961_v3 }
 0x3d9   : > { %7018 = vpow2.f32 %v5587_v55 }
 0x3e0   : > { %v7013_v39 = vpop.eup %7012 }
 0x3e1   : > { %v7015_v44 = vpop.eup %7014  ;;  %v3807_v56 = vadd.f32 1.0, %v7013_v39 }
 0x3e2   : > { %v7017_v63 = vpop.eup %7016  ;;  %v3805_v0 = vadd.f32 1.0, %v7015_v44 }
 0x3e3   : > { %v7019_v45 = vpop.eup %7018  ;;  %7020 = vrcp.f32 %v3807_v56  ;;  %v3808_v60 = vadd.f32 1.0, %v7017_v63 }
 0x3e4   : > { %7022 = vrcp.f32 %v3805_v0  ;;  %v3806_v61 = vadd.f32 1.0, %v7019_v45 }
 0x3e5   : > { %7024 = vrcp.f32 %v3808_v60 }
 0x3e6   : > { %7026 = vrcp.f32 %v3806_v61 }
 0x3ed   : > { %v7021_v31 = vpop.eup %7020 }
 0x3ee   : > { %v7023_v46 = vpop.eup %7022  ;;  %v3903_v49 = vmul.f32 %v7021_v31, %v3679_v54 }
 0x3ef   : > { %v7025_v16 = vpop.eup %7024  ;;  %v3901_v21 = vmul.f32 %v7023_v46, %v3677_v18  ;;  %v5922_v42 = vpop.f32.mrb[44].mxu0 }
 0x3f0   : > { %v7027_v22 = vpop.eup %7026  ;;  %v3904_v40 = vmul.f32 %v7025_v16, %v3680_v9  ;;  %v3644_v5 = vmul.f32 %v5922_v42, %v9026_v25  ;;  %v3544_v36 = vpop.f32.mrb[45].mxu0  ;;  %v3935_v10 = vadd.f32 %v3903_v49, %v7787_v4 }
 0x3f1   : > { %v3902_v13 = vmul.f32 %v7027_v22, %v3678_v30  ;;  %v3642_v12 = vmul.f32 %v9026_v25, %v3544_v36  ;;  %v5923_v34 = vpop.f32.mrb[46].mxu0  ;;  %v3933_v41 = vadd.f32 %v3901_v21, %v7793_v8 }
 0x3f2   : > { %v3936_v19 = vadd.f32 %v3904_v40, %v7798_v15  ;;  %v3683_v20 = vadd.f32 %v9033_v32, %v3644_v5  ;;  %v3645_v17 = vmul.f32 %v5923_v34, %v9026_v25  ;;  %v3547_v11 = vpop.f32.mrb[47].mxu0 }
 0x3f3   : > { %v3934_v38 = vadd.f32 %v3902_v13, %v7803_v6  ;;  %v3681_v59 = vadd.f32 %v9033_v32, %v3642_v12  ;;  %v3643_v7 = vmul.f32 %v9026_v25, %v3547_v11 }
 0x3f4   : > { %v5592_v33 = vmul.f32 -1.442695, %v3683_v20  ;;  %v3684_v1 = vadd.f32 %v9033_v32, %v3645_v17  ;;  %v3963_v37 = vpack.c.bf16 %v3936_v19, %v3935_v10 }
 0x3f5   : > { %v5590_v4 = vmul.f32 -1.442695, %v3681_v59  ;;  %v3682_v15 = vadd.f32 %v9033_v32, %v3643_v7  ;;  %v3962_v35 = vpack.c.bf16 %v3934_v38, %v3933_v41 }
 0x3f6   : > { %7028 = vpow2.f32 %v5592_v33  ;;  %v5593_v50 = vmul.f32 -1.442695, %v3684_v1 }
 0x3f7   : > { %7030 = vpow2.f32 %v5590_v4  ;;  %v5591_v54 = vmul.f32 -1.442695, %v3682_v15  ;;  %5950 = vmatprep.mubr.msk.bf16.mxu1 %vm663_vm1, %v3962_v35 }
 0x3f8   : > { %7032 = vpow2.f32 %v5593_v50  ;;  %5951 = vmatmul.mubr.msk.bf16.gmra.mrb[40].mxu1 %vm663_vm1, %v3963_v37 }
 0x3f9   : > { %7034 = vpow2.f32 %v5591_v54 }
 0x400   : > { %v7029_v8 = vpop.eup %7028 }
 0x401   : > { %v7031_v6 = vpop.eup %7030  ;;  %v3811_v27 = vadd.f32 1.0, %v7029_v8 }
 0x402   : > { %v7033_v23 = vpop.eup %7032  ;;  %v3809_v43 = vadd.f32 1.0, %v7031_v6 }
 0x403   : > { %v7035_v51 = vpop.eup %7034  ;;  %7036 = vrcp.f32 %v3811_v27  ;;  %v3812_v18 = vadd.f32 1.0, %v7033_v23 }
 0x404   : > { %7038 = vrcp.f32 %v3809_v43  ;;  %v3810_v52 = vadd.f32 1.0, %v7035_v51 }
 0x405   : > { %7040 = vrcp.f32 %v3812_v18 }
 0x406   : > { %7042 = vrcp.f32 %v3810_v52 }
 0x40d   : > { %v7037_v53 = vpop.eup %7036 }
 0x40e   : > { %v7039_v9 = vpop.eup %7038  ;;  %v3907_v3 = vmul.f32 %v7037_v53, %v3683_v20 }
 0x40f   : > { %v7041_v24 = vpop.eup %7040  ;;  %v3905_v30 = vmul.f32 %v7039_v9, %v3681_v59  ;;  %v5926_v48 = vpop.f32.mrb[48].mxu0 }
 0x410   : > { %v7043_v26 = vpop.eup %7042  ;;  %v3908_v55 = vmul.f32 %v7041_v24, %v3684_v1  ;;  %v3648_v39 = vmul.f32 %v5926_v48, %v9026_v25  ;;  %v3560_v44 = vpop.f32.mrb[49].mxu0  ;;  %v3939_v45 = vadd.f32 %v3907_v3, %v7824_v57 }
 0x411   : > { %v3906_v56 = vmul.f32 %v7043_v26, %v3682_v15  ;;  %v3646_v63 = vmul.f32 %v9026_v25, %v3560_v44  ;;  %v5927_v0 = vpop.f32.mrb[50].mxu0  ;;  %v3937_v49 = vadd.f32 %v3905_v30, %v7832_v28 }
 0x412   : > { %v3940_v60 = vadd.f32 %v3908_v55, %v7836_v29  ;;  %v3687_v61 = vadd.f32 %v9033_v32, %v3648_v39  ;;  %v3649_v31 = vmul.f32 %v5927_v0, %v9026_v25  ;;  %v3563_v46 = vpop.f32.mrb[51].mxu0 }
 0x413   : > { %v3938_v16 = vadd.f32 %v3906_v56, %v7841_v14  ;;  %v3685_v21 = vadd.f32 %v9033_v32, %v3646_v63  ;;  %v3647_v42 = vmul.f32 %v9026_v25, %v3563_v46 }
 0x414   : > { %v5596_v22 = vmul.f32 -1.442695, %v3687_v61  ;;  %v3688_v40 = vadd.f32 %v9033_v32, %v3649_v31  ;;  %v3965_v5 = vpack.c.bf16 %v3940_v60, %v3939_v45 }
 0x415   : > { %v5594_v57 = vmul.f32 -1.442695, %v3685_v21  ;;  %v3686_v29 = vadd.f32 %v9033_v32, %v3647_v42  ;;  %v3964_v36 = vpack.c.bf16 %v3938_v16, %v3937_v49 }
 0x416   : > { %7044 = vpow2.f32 %v5596_v22  ;;  %v5597_v13 = vmul.f32 -1.442695, %v3688_v40 }
 0x417   : > { %7046 = vpow2.f32 %v5594_v57  ;;  %v5595_v12 = vmul.f32 -1.442695, %v3686_v29  ;;  %5954 = vmatprep.mubr.msk.bf16.mxu1 %vm663_vm1, %v3964_v36 }
 0x418   : > { %7048 = vpow2.f32 %v5597_v13  ;;  %5955 = vmatmul.mubr.msk.bf16.gmra.mrb[44].mxu1 %vm663_vm1, %v3965_v5 }
 0x419   : > { %7050 = vpow2.f32 %v5595_v12 }
 0x420   : > { %v7045_v28 = vpop.eup %7044 }
 0x421   : > { %v7047_v14 = vpop.eup %7046  ;;  %v3815_v34 = vadd.f32 1.0, %v7045_v28 }
 0x422   : > { %v7049_v10 = vpop.eup %7048  ;;  %v3813_v19 = vadd.f32 1.0, %v7047_v14 }
 0x423   : > { %v7051_v20 = vpop.eup %7050  ;;  %7052 = vrcp.f32 %v3815_v34  ;;  %v3816_v17 = vadd.f32 1.0, %v7049_v10 }
 0x424   : > { %7054 = vrcp.f32 %v3813_v19  ;;  %v3814_v11 = vadd.f32 1.0, %v7051_v20 }
 0x425   : > { %7056 = vrcp.f32 %v3816_v17 }
 0x426   : > { %7058 = vrcp.f32 %v3814_v11 }
 0x42d   : > { %v7053_v41 = vpop.eup %7052 }
 0x42e   : > { %v7055_v38 = vpop.eup %7054  ;;  %v3911_v59 = vmul.f32 %v7053_v41, %v3687_v61  ;;  %v9705_v41 = vld [vmem:[#allocation3_spill] sm:$0xff] }
 0x42f   : > { %v7057_v7 = vpop.eup %7056  ;;  %v3909_v33 = vmul.f32 %v7055_v38, %v3685_v21  ;;  %v5930_v1 = vpop.f32.mrb[52].mxu0 }
 0x430   : > { %v7059_v37 = vpop.eup %7058  ;;  %v3912_v4 = vmul.f32 %v7057_v7, %v3688_v40  ;;  %v3652_v15 = vmul.f32 %v5930_v1, %v9026_v25  ;;  %v3576_v35 = vpop.f32.mrb[53].mxu0  ;;  %v3943_v6 = vadd.f32 %v3911_v59, %v7864_v47  ;;  %v9706_v59 = vld [vmem:[#allocation5_spill] sm:$0xff] }
 0x431   : > { %v3910_v50 = vmul.f32 %v7059_v37, %v3686_v29  ;;  %v3650_v54 = vmul.f32 %v9026_v25, %v3576_v35  ;;  %v5931_v8 = vpop.f32.mrb[54].mxu0  ;;  %v3941_v18 = vadd.f32 %v3909_v33, %v7870_v58  ;;  %v9707_v33 = vld [vmem:[#allocation4_spill] sm:$0xff]  ;;  %v9708_v37 = vld [vmem:[#allocation6_spill] sm:$0xff] }
 0x432   : > { %v3944_v27 = vadd.f32 %v3912_v4, %v7873_v62  ;;  %v3691_v23 = vadd.f32 %v9033_v32, %v3652_v15  ;;  %v3653_v43 = vmul.f32 %v5931_v8, %v9026_v25  ;;  %v3579_v51 = vpop.f32.mrb[55].mxu0 }
 0x433   : > { %v3942_v52 = vadd.f32 %v3910_v50, %v7877_v2  ;;  %v3689_v53 = vadd.f32 %v9033_v32, %v3650_v54  ;;  %v3651_v9 = vmul.f32 %v9026_v25, %v3579_v51 }
 0x434   : > { %v5600_v3 = vmul.f32 -1.442695, %v3691_v23  ;;  %v3692_v24 = vadd.f32 %v9033_v32, %v3653_v43  ;;  %v3967_v30 = vpack.c.bf16 %v3944_v27, %v3943_v6 }
 0x435   : > { %v5598_v47 = vmul.f32 -1.442695, %v3689_v53  ;;  %v3690_v62 = vadd.f32 %v9033_v32, %v3651_v9  ;;  %v3966_v48 = vpack.c.bf16 %v3942_v52, %v3941_v18 }
 0x436   : > { %7060 = vpow2.f32 %v5600_v3  ;;  %v5601_v26 = vmul.f32 -1.442695, %v3692_v24 }
 0x437   : > { %7062 = vpow2.f32 %v5598_v47  ;;  %v5599_v55 = vmul.f32 -1.442695, %v3690_v62  ;;  %5958 = vmatprep.mubr.msk.bf16.mxu1 %vm663_vm1, %v3966_v48 }
 0x438   : > { %7064 = vpow2.f32 %v5601_v26  ;;  %5959 = vmatmul.mubr.msk.bf16.gmra.mrb[48].mxu1 %vm663_vm1, %v3967_v30 }
 0x439   : > { %7066 = vpow2.f32 %v5599_v55 }
 0x440   : > { %v7061_v58 = vpop.eup %7060 }
 0x441   : > { %v7063_v2 = vpop.eup %7062  ;;  %v3819_v39 = vadd.f32 1.0, %v7061_v58 }
 0x442   : > { %v7065_v44 = vpop.eup %7064  ;;  %v3817_v56 = vadd.f32 1.0, %v7063_v2 }
 0x443   : > { %v7067_v63 = vpop.eup %7066  ;;  %7068 = vrcp.f32 %v3819_v39  ;;  %v3820_v0 = vadd.f32 1.0, %v7065_v44 }
 0x444   : > { %7070 = vrcp.f32 %v3817_v56  ;;  %v3818_v45 = vadd.f32 1.0, %v7067_v63 }
 0x445   : > { %7072 = vrcp.f32 %v3820_v0 }
 0x446   : > { %7074 = vrcp.f32 %v3818_v45 }
 0x447   : > { %v5934_v60 = vpop.f32.mrb[56].mxu0 }
 0x448   : > { %v3656_v61 = vmul.f32 %v5934_v60, %v9026_v25  ;;  %v3592_v31 = vpop.f32.mrb[57].mxu0 }
 0x449   : > { %v3654_v46 = vmul.f32 %v9026_v25, %v3592_v31  ;;  %v5935_v49 = vpop.f32.mrb[58].mxu0 }
 0x44a   : > { %v9142_v16 = vadd.f32 %v9033_v32, %v3656_v61  ;;  %v3657_v21 = vmul.f32 %v5935_v49, %v9026_v25  ;;  %v3595_v42 = vpop.f32.mrb[59].mxu0 }
 0x44b   : > { %v9146_v22 = vadd.f32 %v9033_v32, %v3654_v46  ;;  %v3655_v40 = vmul.f32 %v9026_v25, %v3595_v42 }
 0x44c   : > { %v5604_v5 = vmul.f32 -1.442695, %v9142_v16  ;;  %v9151_v57 = vadd.f32 %v9033_v32, %v3657_v21 }
 0x44d   : > { %v7069_v29 = vpop.eup %7068  ;;  %v5602_v36 = vmul.f32 -1.442695, %v9146_v22  ;;  %v9155_v13 = vadd.f32 %v9033_v32, %v3655_v40 }
 0x44e   : > { %v7071_v12 = vpop.eup %7070  ;;  %v3915_v28 = vmul.f32 %v7069_v29, %v3691_v23  ;;  %7076 = vpow2.f32 %v5604_v5  ;;  %v5605_v14 = vmul.f32 -1.442695, %v9151_v57 }
 0x44f   : > { %v7073_v34 = vpop.eup %7072  ;;  %v3913_v10 = vmul.f32 %v7071_v12, %v3689_v53  ;;  %7078 = vpow2.f32 %v5602_v36  ;;  %v5603_v19 = vmul.f32 -1.442695, %v9155_v13  ;;  %v9709_v36 = vld [vmem:[#allocation7_spill] sm:$0xff] }
 0x450   : > { %v7075_v20 = vpop.eup %7074  ;;  %v3916_v17 = vmul.f32 %v7073_v34, %v3692_v24  ;;  %7080 = vpow2.f32 %v5605_v14  ;;  %v3947_v38 = vadd.f32 %v3915_v28, %v9705_v41  ;;  %v9710_v28 = vld [vmem:[#allocation9_spill] sm:$0xff] }
 0x451   : > { %v3914_v11 = vmul.f32 %v7075_v20, %v3690_v62  ;;  %7082 = vpow2.f32 %v5603_v19  ;;  %v3945_v1 = vadd.f32 %v3913_v10, %v9707_v33  ;;  %v9711_v10 = vld [vmem:[#allocation8_spill] sm:$0xff] }
 0x452   : > { %v3948_v7 = vadd.f32 %v3916_v17, %v9706_v59 }
 0x453   : > { %v3946_v4 = vadd.f32 %v3914_v11, %v9708_v37 }
 0x454   : > { %v3969_v15 = vpack.c.bf16 %v3948_v7, %v3947_v38 }
 0x455   : > { %v3968_v35 = vpack.c.bf16 %v3946_v4, %v3945_v1 }
 0x457   : > { %5962 = vmatprep.mubr.msk.bf16.mxu1 %vm663_vm1, %v3968_v35 }
 0x458   : > { %v7077_v50 = vpop.eup %7076  ;;  %v5938_v54 = vpop.f32.mrb[60].mxu0  ;;  %5963 = vmatmul.mubr.msk.bf16.gmra.mrb[52].mxu1 %vm663_vm1, %v3969_v15 }
 0x459   : > { %v7079_v8 = vpop.eup %7078  ;;  %v3823_v6 = vadd.f32 1.0, %v7077_v50  ;;  %v3660_v27 = vmul.f32 %v5938_v54, %v9026_v25  ;;  %v3608_v23 = vpop.f32.mrb[61].mxu0 }
 0x45a   : > { %v7081_v43 = vpop.eup %7080  ;;  %v3821_v51 = vadd.f32 1.0, %v7079_v8  ;;  %v3658_v18 = vmul.f32 %v9026_v25, %v3608_v23  ;;  %v5939_v52 = vpop.f32.mrb[62].mxu0 }
 0x45b   : > { %v7083_v53 = vpop.eup %7082  ;;  %7084 = vrcp.f32 %v3823_v6  ;;  %v3824_v9 = vadd.f32 1.0, %v7081_v43  ;;  %v9168_v3 = vadd.f32 %v9033_v32, %v3660_v27  ;;  %v3661_v24 = vmul.f32 %v5939_v52, %v9026_v25  ;;  %v3611_v30 = vpop.f32.mrb[63].mxu0  ;;  %v9713_v52 = vld [vmem:[#allocation11_spill] sm:$0xff] }
 0x45c   : > { %7086 = vrcp.f32 %v3821_v51  ;;  %v3822_v47 = vadd.f32 1.0, %v7083_v53  ;;  %v9172_v62 = vadd.f32 %v9033_v32, %v3658_v18  ;;  %v3659_v48 = vmul.f32 %v9026_v25, %v3611_v30  ;;  %v9715_v30 = vld [vmem:[#allocation12_spill] sm:$0xff] }
 0x45d   : > { %7088 = vrcp.f32 %v3824_v9  ;;  %v5608_v26 = vmul.f32 -1.442695, %v9168_v3  ;;  %v9177_v55 = vadd.f32 %v9033_v32, %v3661_v24  ;;  %v9714_v9 = vld [vmem:[#allocation13_spill] sm:$0xff] }
 0x45e   : > { %7090 = vrcp.f32 %v3822_v47  ;;  %v5606_v58 = vmul.f32 -1.442695, %v9172_v62  ;;  %v9181_v2 = vadd.f32 %v9033_v32, %v3659_v48 }
 0x45f   : > { %7092 = vpow2.f32 %v5608_v26  ;;  %v5609_v39 = vmul.f32 -1.442695, %v9177_v55  ;;  %v4813_v26 = vld [vmem:[%s9673_s14] sm:$0xf] }
 0x460   : > { %7094 = vpow2.f32 %v5606_v58  ;;  %v5607_v44 = vmul.f32 -1.442695, %v9181_v2  ;;  %v5978_v56 = vpop.f32.mrb[64].mxu0  ;;  %6047 = vmatprep.subr.msk.bf16.mxu1 %vm4878_vm11, %v4813_v26  ;;  %v4880_v58 = vsel %vm4878_vm11, %v4813_v26, 0 }
 0x461   : > { %7096 = vpow2.f32 %v5609_v39  ;;  %v4224_v25 = vpop.f32.mrb[65].mxu0  ;;  %6009 = vmatpush3.bf16.msra.mxu1 %v4880_v58 }
 0x462   : > { %7098 = vpow2.f32 %v5607_v44  ;;  %4383 = vrot.lane.b32.xlu0 %v4224_v25, %s7399_s29  ;;  %v5979_v63 = vpop.f32.mrb[66].mxu0 }
 0x463   : > { %v4227_v0 = vpop.f32.mrb[67].mxu0 }
 0x464   : > { %4385 = vrot.lane.b32.xlu1 %v4227_v0, %s7399_s29 }
 0x465   : > { %v7085_v45 = vpop.eup %7084 }
 0x466   : > { %v7087_v60 = vpop.eup %7086  ;;  %v3919_v32 = vmul.f32 %v7085_v45, %v9142_v16  ;;  %4387 = vrot.lane.b32.xlu0 %v5978_v56, %s7399_s29 }
 0x467   : > { %v7089_v61 = vpop.eup %7088  ;;  %v3917_v31 = vmul.f32 %v7087_v60, %v9146_v22 }
 0x468   : > { %v7091_v46 = vpop.eup %7090  ;;  %v3920_v49 = vmul.f32 %v7089_v61, %v9151_v57  ;;  %4389 = vrot.lane.b32.xlu1 %v5979_v63, %s7399_s29  ;;  %v5982_v21 = vpop.f32.mrb[68].mxu0  ;;  %v3951_v12 = vadd.f32 %v3919_v32, %v9709_v36  ;;  %v9712_v57 = vld [vmem:[#allocation10_spill] sm:$0xff] }
 0x469   : > { %v7093_v42 = vpop.eup %7092  ;;  %v3918_v40 = vmul.f32 %v7091_v46, %v9155_v13  ;;  %v4240_v5 = vpop.f32.mrb[69].mxu0  ;;  %v3949_v19 = vadd.f32 %v3917_v31, %v9711_v10 }
 0x46a   : > { %v7095_v29 = vpop.eup %7094  ;;  %v3952_v16 = vadd.f32 %v3920_v49, %v9710_v28  ;;  %v3827_v14 = vadd.f32 1.0, %v7093_v42  ;;  %4391 = vrot.lane.b32.xlu0 %v4240_v5, %s7399_s29  ;;  %v5983_v34 = vpop.f32.mrb[70].mxu0 }
 0x46b   : > { %v7097_v22 = vpop.eup %7096  ;;  %v3950_v20 = vadd.f32 %v3918_v40, %v9712_v57  ;;  %v3825_v17 = vadd.f32 1.0, %v7095_v29  ;;  %v4243_v11 = vpop.f32.mrb[71].mxu0 }
 0x46c   : > { %v7099_v41 = vpop.eup %7098  ;;  %7100 = vrcp.f32 %v3827_v14  ;;  %v3828_v13 = vadd.f32 1.0, %v7097_v22  ;;  %4393 = vrot.lane.b32.xlu1 %v4243_v11, %s7399_s29  ;;  %v3971_v38 = vpack.c.bf16 %v3952_v16, %v3951_v12  ;;  %v9252_v11 = vld [vmem:[%s9672_s13] ss:$0 sm:$0xff] }
 0x46d   : > { %7102 = vrcp.f32 %v3825_v17  ;;  %v3826_v59 = vadd.f32 1.0, %v7099_v41  ;;  %v3970_v7 = vpack.c.bf16 %v3950_v20, %v3949_v19  ;;  %v9247_v20 = vld [vmem:[%s9671_s12] ss:$0 sm:$0xff] }
 0x46e   : > { %7104 = vrcp.f32 %v3828_v13  ;;  %4395 = vrot.lane.b32.xlu0 %v5982_v21, %s7399_s29 }
 0x46f   : > { %7106 = vrcp.f32 %v3826_v59  ;;  %5966 = vmatprep.mubr.msk.bf16.mxu1 %vm663_vm1, %v3970_v7 }
 0x470   : > { %5967 = vmatmul.mubr.msk.bf16.gmra.mrb[56].mxu1 %vm663_vm1, %v3971_v38  ;;  %4397 = vrot.lane.b32.xlu1 %v5983_v34, %s7399_s29  ;;  %v5986_v33 = vpop.f32.mrb[72].mxu0 }
 0x471   : > { %v4256_v1 = vpop.f32.mrb[73].mxu0 }
 0x472   : > { %4399 = vrot.lane.b32.xlu0 %v4256_v1, %s7399_s29  ;;  %v5987_v37 = vpop.f32.mrb[74].mxu0 }
 0x473   : > { %v4259_v4 = vpop.f32.mrb[75].mxu0 }
 0x474   : > { %4401 = vrot.lane.b32.xlu1 %v4259_v4, %s7399_s29 }
 0x476   : > { %v7101_v15 = vpop.eup %7100  ;;  %4403 = vrot.lane.b32.xlu0 %v5986_v33, %s7399_s29 }
 0x477   : > { %v7103_v35 = vpop.eup %7102  ;;  %v3923_v50 = vmul.f32 %v7101_v15, %v9168_v3 }
 0x478   : > { %v7105_v54 = vpop.eup %7104  ;;  %v3921_v8 = vmul.f32 %v7103_v35, %v9172_v62  ;;  %4405 = vrot.lane.b32.xlu1 %v5987_v37, %s7399_s29  ;;  %v5990_v6 = vpop.f32.mrb[76].mxu0  ;;  %v9716_v62 = vld [vmem:[#allocation14_spill] sm:$0xff] }
 0x479   : > { %v7107_v27 = vpop.eup %7106  ;;  %v3924_v23 = vmul.f32 %v7105_v54, %v9177_v55  ;;  %v4272_v43 = vpop.f32.mrb[77].mxu0  ;;  %v3955_v53 = vadd.f32 %v3923_v50, %v9713_v52 }
 0x47a   : > { %v3922_v51 = vmul.f32 %v7107_v27, %v9181_v2  ;;  %4407 = vrot.lane.b32.xlu0 %v4272_v43, %s7399_s29  ;;  %v5991_v18 = vpop.f32.mrb[78].mxu0  ;;  %v3953_v47 = vadd.f32 %v3921_v8, %v9715_v30 }
 0x47b   : > { %v3956_v24 = vadd.f32 %v3924_v23, %v9714_v9  ;;  %v4275_v3 = vpop.f32.mrb[79].mxu0 }
 0x47c   : > { %v3954_v48 = vadd.f32 %v3922_v51, %v9716_v62  ;;  %4409 = vrot.lane.b32.xlu1 %v4275_v3, %s7399_s29 }
 0x47d   : > { %v3973_v55 = vpack.c.bf16 %v3956_v24, %v3955_v53 }
 0x47e   : > { %4411 = vrot.lane.b32.xlu0 %v5990_v6, %s7399_s29  ;;  %v3972_v2 = vpack.c.bf16 %v3954_v48, %v3953_v47 }
 0x480   : > { %4413 = vrot.lane.b32.xlu1 %v5991_v18, %s7399_s29  ;;  %5970 = vmatprep.mubr.msk.bf16.mxu1 %vm663_vm1, %v3972_v2  ;;  %v5994_v39 = vpop.f32.mrb[80].mxu0 }
 0x481   : > { %5971 = vmatmul.mubr.msk.bf16.gmra.mrb[60].mxu1 %vm663_vm1, %v3973_v55  ;;  %v4288_v44 = vpop.f32.mrb[81].mxu0 }
 0x482   : > { %4415 = vrot.lane.b32.xlu0 %v4288_v44, %s7399_s29  ;;  %v5995_v56 = vpop.f32.mrb[82].mxu0 }
 0x483   : > { %v4291_v25 = vpop.f32.mrb[83].mxu0 }
 0x484   : > { %4417 = vrot.lane.b32.xlu1 %v4291_v25, %s7399_s29 }
 0x486   : > { %4419 = vrot.lane.b32.xlu0 %v5994_v39, %s7399_s29 }
 0x488   : > { %4421 = vrot.lane.b32.xlu1 %v5995_v56, %s7399_s29  ;;  %v5998_v63 = vpop.f32.mrb[84].mxu0 }
 0x489   : > { %v4304_v0 = vpop.f32.mrb[85].mxu0 }
 0x48a   : > { %4423 = vrot.lane.b32.xlu0 %v4304_v0, %s7399_s29  ;;  %v5999_v45 = vpop.f32.mrb[86].mxu0 }
 0x48b   : > { %v5944_v60 = vpop.f32.mrb[32].mxu1  ;;  %v4307_v32 = vpop.f32.mrb[87].mxu0 }
 0x48c   : > { %v4059_v61 = vpop.f32.mrb[33].mxu1  ;;  %4425 = vrot.lane.b32.xlu1 %v4307_v32, %s7399_s29 }
 0x48d   : > { %v5945_v31 = vpop.f32.mrb[34].mxu1 }
 0x48e   : > { %v4062_v46 = vpop.f32.mrb[35].mxu1  ;;  %4427 = vrot.lane.b32.xlu0 %v5998_v63, %s7399_s29 }
 0x490   : > { %4429 = vrot.lane.b32.xlu1 %v5999_v45, %s7399_s29  ;;  %v6002_v49 = vpop.f32.mrb[88].mxu0 }
 0x491   : > { %v4320_v21 = vpop.f32.mrb[89].mxu0 }
 0x492   : > { %4431 = vrot.lane.b32.xlu0 %v4320_v21, %s7399_s29  ;;  %v6003_v42 = vpop.f32.mrb[90].mxu0 }
 0x493   : > { %v4323_v40 = vpop.f32.mrb[91].mxu0 }
 0x494   : > { %4433 = vrot.lane.b32.xlu1 %v4323_v40, %s7399_s29 }
 0x496   : > { %4435 = vrot.lane.b32.xlu0 %v6002_v49, %s7399_s29 }
 0x498   : > { %4437 = vrot.lane.b32.xlu1 %v6003_v42, %s7399_s29  ;;  %v6006_v5 = vpop.f32.mrb[92].mxu0 }
 0x499   : > { %v4336_v29 = vpop.f32.mrb[93].mxu0 }
 0x49a   : > { %v6007_v36 = vpop.f32.mrb[94].mxu0  ;;  %4439 = vrot.lane.b32.xlu0 %v4336_v29, %s7399_s29 }
 0x49b   : > { %v4339_v12 = vpop.f32.mrb[95].mxu0 }
 0x49c   : > { %4441 = vrot.lane.b32.xlu1 %v4339_v12, %s7399_s29 }
 0x49e   : > { %4443 = vrot.lane.b32.xlu0 %v6006_v5, %s7399_s29 }
 0x4a0   : > { %4445 = vrot.lane.b32.xlu1 %v6007_v36, %s7399_s29 }
 0x4ab   : > { %v5948_v28 = vpop.f32.mrb[36].mxu1 }
 0x4ac   : > { %v4075_v16 = vpop.f32.mrb[37].mxu1 }
 0x4ad   : > { %v5949_v14 = vpop.f32.mrb[38].mxu1 }
 0x4ae   : > { %v4078_v34 = vpop.f32.mrb[39].mxu1 }
 0x4cb   : > { %v9240_v22 = vpop.f32.mrb[40].mxu1 }
 0x4cc   : > { %v4091_v10 = vpop.f32.mrb[41].mxu1 }
 0x4cd   : > { %v9242_v19 = vpop.f32.mrb[42].mxu1 }
 0x4ce   : > { %v4094_v57 = vpop.f32.mrb[43].mxu1 }
 0x4d4   : > { %v4384_v17 = vpop.permute.xlu0 %4383 }
 0x4d5   : > { %v4479_v41 = vsel %vm663_vm1, %v4059_v61, %v4384_v17 }
 0x4d6   : > { %v4518_v13 = vmul.f32 %v9247_v20, %v4479_v41  ;;  %v4386_v38 = vpop.permute.xlu1 %4385 }
 0x4d7   : > { %v4480_v59 = vsel %vm663_vm1, %v4062_v46, %v4386_v38 }
 0x4d8   : > { %v9258_v7 = vadd.f32 %v9252_v11, %v4518_v13  ;;  %v4519_v33 = vmul.f32 %v9247_v20, %v4480_v59  ;;  %v4388_v1 = vpop.permute.xlu0 %4387 }
 0x4d9   : > { %v4481_v37 = vsel %vm663_vm1, %v5944_v60, %v4388_v1 }
 0x4da   : > { %v5644_v4 = vmul.f32 -1.442695, %v9258_v7  ;;  %v9264_v15 = vadd.f32 %v9252_v11, %v4519_v33  ;;  %v4520_v35 = vmul.f32 %v9247_v20, %v4481_v37  ;;  %v4390_v50 = vpop.permute.xlu1 %4389 }
 0x4db   : > { %v4482_v54 = vsel %vm663_vm1, %v5945_v31, %v4390_v50 }
 0x4dc   : > { %7108 = vpow2.f32 %v5644_v4  ;;  %v5645_v8 = vmul.f32 -1.442695, %v9264_v15  ;;  %v9270_v6 = vadd.f32 %v9252_v11, %v4520_v35  ;;  %v4521_v27 = vmul.f32 %v9247_v20, %v4482_v54  ;;  %v4392_v23 = vpop.permute.xlu0 %4391 }
 0x4dd   : > { %v4483_v43 = vsel %vm663_vm1, %v4075_v16, %v4392_v23 }
 0x4de   : > { %7110 = vpow2.f32 %v5645_v8  ;;  %v5646_v51 = vmul.f32 -1.442695, %v9270_v6  ;;  %v9276_v18 = vadd.f32 %v9252_v11, %v4521_v27  ;;  %v4522_v52 = vmul.f32 %v9247_v20, %v4483_v43  ;;  %v4394_v53 = vpop.permute.xlu1 %4393 }
 0x4df   : > { %v4484_v9 = vsel %vm663_vm1, %v4078_v34, %v4394_v53 }
 0x4e0   : > { %7112 = vpow2.f32 %v5646_v51  ;;  %v5647_v24 = vmul.f32 -1.442695, %v9276_v18  ;;  %v9282_v3 = vadd.f32 %v9252_v11, %v4522_v52  ;;  %v4523_v30 = vmul.f32 %v9247_v20, %v4484_v9  ;;  %v4396_v47 = vpop.permute.xlu0 %4395 }
 0x4e1   : > { %v4485_v62 = vsel %vm663_vm1, %v5948_v28, %v4396_v47 }
 0x4e2   : > { %7114 = vpow2.f32 %v5647_v24  ;;  %v5648_v48 = vmul.f32 -1.442695, %v9282_v3  ;;  %v9288_v26 = vadd.f32 %v9252_v11, %v4523_v30  ;;  %v4524_v55 = vmul.f32 %v9247_v20, %v4485_v62  ;;  %v4398_v58 = vpop.permute.xlu1 %4397 }
 0x4e3   : > { %v4486_v2 = vsel %vm663_vm1, %v5949_v14, %v4398_v58 }
 0x4e4   : > { %7116 = vpow2.f32 %v5648_v48  ;;  %v5649_v39 = vmul.f32 -1.442695, %v9288_v26  ;;  %v9294_v44 = vadd.f32 %v9252_v11, %v4524_v55  ;;  %v4525_v56 = vmul.f32 %v9247_v20, %v4486_v2  ;;  %v4400_v25 = vpop.permute.xlu0 %4399 }
 0x4e5   : > { %v4487_v63 = vsel %vm663_vm1, %v4091_v10, %v4400_v25 }
 0x4e6   : > { %v7109_v0 = vpop.eup %7108  ;;  %7118 = vpow2.f32 %v5649_v39  ;;  %v5650_v45 = vmul.f32 -1.442695, %v9294_v44  ;;  %v9300_v60 = vadd.f32 %v9252_v11, %v4525_v56  ;;  %v4526_v32 = vmul.f32 %v9247_v20, %v4487_v63  ;;  %v4402_v61 = vpop.permute.xlu1 %4401 }
 0x4e7   : > { %v4685_v31 = vadd.f32 1.0, %v7109_v0  ;;  %v4488_v46 = vsel %vm663_vm1, %v4094_v57, %v4402_v61 }
 0x4e8   : > { %v7111_v49 = vpop.eup %7110  ;;  %7120 = vpow2.f32 %v5650_v45  ;;  %v5651_v21 = vmul.f32 -1.442695, %v9300_v60  ;;  %v9306_v42 = vadd.f32 %v9252_v11, %v4526_v32  ;;  %v4527_v40 = vmul.f32 %v9247_v20, %v4488_v46  ;;  %v4404_v5 = vpop.permute.xlu0 %4403 }
 0x4e9   : > { %7122 = vrcp.f32 %v4685_v31  ;;  %v4686_v29 = vadd.f32 1.0, %v7111_v49  ;;  %v4489_v36 = vsel %vm663_vm1, %v9240_v22, %v4404_v5 }
 0x4ea   : > { %v7113_v12 = vpop.eup %7112  ;;  %7124 = vpow2.f32 %v5651_v21  ;;  %v5652_v28 = vmul.f32 -1.442695, %v9306_v42  ;;  %v9313_v16 = vadd.f32 %v9252_v11, %v4527_v40  ;;  %v4528_v14 = vmul.f32 %v9247_v20, %v4489_v36  ;;  %v4406_v34 = vpop.permute.xlu1 %4405 }
 0x4eb   : > { %7126 = vrcp.f32 %v4686_v29  ;;  %v4687_v10 = vadd.f32 1.0, %v7113_v12  ;;  %v4490_v57 = vsel %vm663_vm1, %v9242_v19, %v4406_v34  ;;  %v5956_v17 = vpop.f32.mrb[44].mxu1 }
 0x4ec   : > { %v7115_v41 = vpop.eup %7114  ;;  %7128 = vpow2.f32 %v5652_v28  ;;  %v5653_v22 = vmul.f32 -1.442695, %v9313_v16  ;;  %v9320_v13 = vadd.f32 %v9252_v11, %v4528_v14  ;;  %v4529_v38 = vmul.f32 %v9247_v20, %v4490_v57  ;;  %v4107_v59 = vpop.f32.mrb[45].mxu1 }
 0x4ed   : > { %v4408_v33 = vpop.permute.xlu0 %4407  ;;  %7130 = vrcp.f32 %v4687_v10  ;;  %v4688_v1 = vadd.f32 1.0, %v7115_v41  ;;  %v5957_v4 = vpop.f32.mrb[46].mxu1 }
 0x4ee   : > { %v4491_v37 = vsel %vm663_vm1, %v4107_v59, %v4408_v33  ;;  %v7117_v35 = vpop.eup %7116  ;;  %7132 = vpow2.f32 %v5653_v22  ;;  %v5654_v19 = vmul.f32 -1.442695, %v9320_v13  ;;  %v9326_v50 = vadd.f32 %v9252_v11, %v4529_v38  ;;  %v4110_v8 = vpop.f32.mrb[47].mxu1 }
 0x4ef   : > { %v4530_v54 = vmul.f32 %v9247_v20, %v4491_v37  ;;  %v4410_v27 = vpop.permute.xlu1 %4409  ;;  %7134 = vrcp.f32 %v4688_v1  ;;  %v4689_v23 = vadd.f32 1.0, %v7117_v35 }
 0x4f0   : > { %v4492_v43 = vsel %vm663_vm1, %v4110_v8, %v4410_v27  ;;  %v7119_v51 = vpop.eup %7118  ;;  %7136 = vpow2.f32 %v5654_v19  ;;  %v5655_v52 = vmul.f32 -1.442695, %v9326_v50 }
 0x4f1   : > { %v9332_v53 = vadd.f32 %v9252_v11, %v4530_v54  ;;  %v4531_v9 = vmul.f32 %v9247_v20, %v4492_v43  ;;  %v4412_v24 = vpop.permute.xlu0 %4411  ;;  %7138 = vrcp.f32 %v4689_v23  ;;  %v4690_v30 = vadd.f32 1.0, %v7119_v51 }
 0x4f2   : > { %v4493_v47 = vsel %vm663_vm1, %v5956_v17, %v4412_v24  ;;  %v7121_v62 = vpop.eup %7120  ;;  %7140 = vpow2.f32 %v5655_v52 }
 0x4f3   : > { %v5656_v48 = vmul.f32 -1.442695, %v9332_v53  ;;  %v9338_v55 = vadd.f32 %v9252_v11, %v4531_v9  ;;  %v4532_v58 = vmul.f32 %v9247_v20, %v4493_v47  ;;  %v4414_v2 = vpop.permute.xlu1 %4413  ;;  %v7123_v39 = vpop.eup %7122  ;;  %7142 = vrcp.f32 %v4690_v30 }
 0x4f4   : > { %v4691_v56 = vadd.f32 1.0, %v7121_v62  ;;  %v4494_v25 = vsel %vm663_vm1, %v5957_v4, %v4414_v2  ;;  %v7125_v63 = vpop.eup %7124  ;;  %v4781_v49 = vmul.f32 %v7123_v39, %v9258_v7 }
 0x4f5   : > { %7144 = vpow2.f32 %v5656_v48  ;;  %v5657_v0 = vmul.f32 -1.442695, %v9338_v55  ;;  %v9344_v45 = vadd.f32 %v9252_v11, %v4532_v58  ;;  %v7127_v32 = vpop.eup %7126  ;;  %v4692_v61 = vadd.f32 1.0, %v7125_v63  ;;  %v4416_v51 = vpop.permute.xlu0 %4415 }
 0x4f6   : > { %7146 = vrcp.f32 %v4691_v56  ;;  %v4533_v31 = vmul.f32 %v9247_v20, %v4494_v25  ;;  %v7129_v46 = vpop.eup %7128  ;;  %v4782_v21 = vmul.f32 %v7127_v32, %v9264_v15 }
 0x4f7   : > { %7148 = vpow2.f32 %v5657_v0  ;;  %v5658_v40 = vmul.f32 -1.442695, %v9344_v45  ;;  %v7131_v5 = vpop.eup %7130  ;;  %v4693_v29 = vadd.f32 1.0, %v7129_v46  ;;  %v4418_v24 = vpop.permute.xlu1 %4417 }
 0x4f8   : > { %7150 = vrcp.f32 %v4692_v61  ;;  %v9351_v36 = vadd.f32 %v9252_v11, %v4533_v31  ;;  %v7133_v12 = vpop.eup %7132  ;;  %v4814_v28 = vpack.c.bf16 %v4782_v21, %v4781_v49  ;;  %v4783_v15 = vmul.f32 %v7131_v5, %v9270_v6 }
 0x4f9   : > { %7152 = vpow2.f32 %v5658_v40  ;;  %v7135_v14 = vpop.eup %7134  ;;  %v4694_v34 = vadd.f32 1.0, %v7133_v12  ;;  %v4420_v2 = vpop.permute.xlu0 %4419 }
 0x4fa   : > { %7154 = vrcp.f32 %v4693_v29  ;;  %v5659_v10 = vmul.f32 -1.442695, %v9351_v36  ;;  %v7137_v7 = vpop.eup %7136  ;;  %v4784_v57 = vmul.f32 %v7135_v14, %v9276_v18  ;;  %6010 = vmatprep.mubr.msk.bf16.mxu1 %vm3143_vm3, %v4814_v28 }
 0x4fb   : > { %v7139_v17 = vpop.eup %7138  ;;  %7156 = vrcp.f32 %v4694_v34  ;;  %v4695_v41 = vadd.f32 1.0, %v7137_v7 }
 0x4fc   : > { %v7141_v22 = vpop.eup %7140  ;;  %v4815_v38 = vpack.c.bf16 %v4784_v57, %v4783_v15  ;;  %7158 = vpow2.f32 %v5659_v10  ;;  %v4785_v37 = vmul.f32 %v7139_v17, %v9282_v3 }
 0x4fd   : > { %v7143_v59 = vpop.eup %7142  ;;  %7160 = vrcp.f32 %v4695_v41  ;;  %v4696_v33 = vadd.f32 1.0, %v7141_v22 }
 0x4fe   : > { %v4786_v4 = vmul.f32 %v7143_v59, %v9288_v26  ;;  %6011 = vmatmul.mubr.msk.bf16.vlgmr.msra.gmra.mrb[64].mxu1 %vm3143_vm3, %v4815_v38 }
 0x4ff   : > { %v7145_v1 = vpop.eup %7144  ;;  %7162 = vrcp.f32 %v4696_v33 }
 0x500   : > { %v7147_v6 = vpop.eup %7146  ;;  %v4697_v18 = vadd.f32 1.0, %v7145_v1  ;;  %v4816_v19 = vpack.c.bf16 %v4786_v4, %v4785_v37 }
 0x501   : > { %v7149_v35 = vpop.eup %7148  ;;  %v4787_v23 = vmul.f32 %v7147_v6, %v9294_v44 }
 0x502   : > { %v7151_v54 = vpop.eup %7150  ;;  %7164 = vrcp.f32 %v4697_v18  ;;  %v4698_v8 = vadd.f32 1.0, %v7149_v35  ;;  %6014 = vmatprep.mubr.msk.bf16.mxu1 %vm3143_vm3, %v4816_v19 }
 0x503   : > { %v7153_v27 = vpop.eup %7152  ;;  %v4788_v43 = vmul.f32 %v7151_v54, %v9300_v60 }
 0x504   : > { %v7155_v3 = vpop.eup %7154  ;;  %7166 = vrcp.f32 %v4698_v8  ;;  %v4699_v26 = vadd.f32 1.0, %v7153_v27 }
 0x505   : > { %v4817_v52 = vpack.c.bf16 %v4788_v43, %v4787_v23  ;;  %v7157_v9 = vpop.eup %7156  ;;  %v4789_v47 = vmul.f32 %v7155_v3, %v9306_v42  ;;  %v4422_v42 = vpop.permute.xlu1 %4421 }
 0x506   : > { %v7159_v30 = vpop.eup %7158  ;;  %v4790_v62 = vmul.f32 %v7157_v9, %v9313_v16  ;;  %7168 = vrcp.f32 %v4699_v26 }
 0x507   : > { %6015 = vmatmul.mubr.msk.bf16.gmra.mrb[68].mxu1 %vm3143_vm3, %v4817_v52  ;;  %v7161_v48 = vpop.eup %7160  ;;  %v4700_v44 = vadd.f32 1.0, %v7159_v30 }
 0x508   : > { %v4818_v60 = vpack.c.bf16 %v4790_v62, %v4789_v47  ;;  %v4791_v39 = vmul.f32 %v7161_v48, %v9320_v13 }
 0x509   : > { %v7163_v58 = vpop.eup %7162  ;;  %7170 = vrcp.f32 %v4700_v44 }
 0x50a   : > { %v4792_v56 = vmul.f32 %v7163_v58, %v9326_v50  ;;  %6018 = vmatprep.mubr.msk.bf16.mxu1 %vm3143_vm3, %v4818_v60 }
 0x50b   : > { %v5960_v63 = vpop.f32.mrb[48].mxu1 }
 0x50c   : > { %v7165_v25 = vpop.eup %7164  ;;  %v4497_v16 = vsel %vm663_vm1, %v5960_v63, %v4420_v2  ;;  %v4123_v0 = vpop.f32.mrb[49].mxu1  ;;  %v4819_v32 = vpack.c.bf16 %v4792_v56, %v4791_v39 }
 0x50d   : > { %v4536_v31 = vmul.f32 %v9247_v20, %v4497_v16  ;;  %v4495_v46 = vsel %vm663_vm1, %v4123_v0, %v4416_v51  ;;  %v5961_v49 = vpop.f32.mrb[50].mxu1  ;;  %v4793_v21 = vmul.f32 %v7165_v25, %v9332_v53 }
 0x50e   : > { %v7167_v61 = vpop.eup %7166  ;;  %v4534_v50 = vmul.f32 %v9247_v20, %v4495_v46  ;;  %v4498_v40 = vsel %vm663_vm1, %v5961_v49, %v4422_v42  ;;  %v4126_v5 = vpop.f32.mrb[51].mxu1 }
 0x50f   : > { %v4794_v13 = vmul.f32 %v7167_v61, %v9338_v55  ;;  %6019 = vmatmul.mubr.msk.bf16.gmra.mrb[72].mxu1 %vm3143_vm3, %v4819_v32  ;;  %v4575_v29 = vadd.f32 %v9252_v11, %v4536_v31  ;;  %v4537_v12 = vmul.f32 %v9247_v20, %v4498_v40  ;;  %v4496_v28 = vsel %vm663_vm1, %v4126_v5, %v4418_v24 }
 0x510   : > { %v4573_v14 = vadd.f32 %v9252_v11, %v4534_v50  ;;  %v4535_v34 = vmul.f32 %v9247_v20, %v4496_v28  ;;  %v7169_v10 = vpop.eup %7168 }
 0x511   : > { %v4820_v53 = vpack.c.bf16 %v4794_v13, %v4793_v21  ;;  %v5662_v55 = vmul.f32 -1.442695, %v4575_v29  ;;  %v4576_v7 = vadd.f32 %v9252_v11, %v4537_v12  ;;  %v4795_v22 = vmul.f32 %v7169_v10, %v9344_v45  ;;  %v4424_v45 = vpop.permute.xlu0 %4423 }
 0x512   : > { %v5660_v15 = vmul.f32 -1.442695, %v4573_v14  ;;  %v4574_v57 = vadd.f32 %v9252_v11, %v4535_v34 }
 0x513   : > { %6022 = vmatprep.mubr.msk.bf16.mxu1 %vm3143_vm3, %v4820_v53  ;;  %v7171_v17 = vpop.eup %7170  ;;  %7172 = vpow2.f32 %v5662_v55  ;;  %v5663_v41 = vmul.f32 -1.442695, %v4576_v7 }
 0x514   : > { %v4796_v38 = vmul.f32 %v7171_v17, %v9351_v36  ;;  %7174 = vpow2.f32 %v5660_v15  ;;  %v5661_v59 = vmul.f32 -1.442695, %v4574_v57  ;;  %v4426_v36 = vpop.permute.xlu1 %4425 }
 0x515   : > { %7176 = vpow2.f32 %v5663_v41  ;;  %v4428_v8 = vpop.permute.xlu0 %4427 }
 0x516   : > { %7178 = vpow2.f32 %v5661_v59  ;;  %v4821_v33 = vpack.c.bf16 %v4796_v38, %v4795_v22 }
 0x518   : > { %6023 = vmatmul.mubr.msk.bf16.gmra.mrb[76].mxu1 %vm3143_vm3, %v4821_v33  ;;  %v4430_v3 = vpop.permute.xlu1 %4429 }
 0x519   : > { %v4432_v50 = vpop.permute.xlu0 %4431 }
 0x51c   : > { %v4434_v5 = vpop.permute.xlu1 %4433 }
 0x51d   : > { %v7173_v1 = vpop.eup %7172  ;;  %v4436_v55 = vpop.permute.xlu0 %4435 }
 0x51e   : > { %v7175_v37 = vpop.eup %7174  ;;  %v4703_v4 = vadd.f32 1.0, %v7173_v1 }
 0x51f   : > { %v7177_v6 = vpop.eup %7176  ;;  %v4701_v18 = vadd.f32 1.0, %v7175_v37 }
 0x520   : > { %v7179_v35 = vpop.eup %7178  ;;  %7180 = vrcp.f32 %v4703_v4  ;;  %v4704_v19 = vadd.f32 1.0, %v7177_v6  ;;  %v4438_v15 = vpop.permute.xlu1 %4437 }
 0x521   : > { %7182 = vrcp.f32 %v4701_v18  ;;  %v4702_v54 = vadd.f32 1.0, %v7179_v35 }
 0x522   : > { %7184 = vrcp.f32 %v4704_v19 }
 0x523   : > { %7186 = vrcp.f32 %v4702_v54 }
 0x52a   : > { %v7181_v27 = vpop.eup %7180 }
 0x52b   : > { %v7183_v23 = vpop.eup %7182  ;;  %v5964_v43 = vpop.f32.mrb[52].mxu1  ;;  %v4799_v24 = vmul.f32 %v7181_v27, %v4575_v29 }
 0x52c   : > { %v7185_v26 = vpop.eup %7184  ;;  %v4501_v51 = vsel %vm663_vm1, %v5964_v43, %v4428_v8  ;;  %v4139_v52 = vpop.f32.mrb[53].mxu1  ;;  %v4797_v44 = vmul.f32 %v7183_v23, %v4573_v14 }
 0x52d   : > { %v7187_v9 = vpop.eup %7186  ;;  %v4800_v30 = vmul.f32 %v7185_v26, %v4576_v7  ;;  %v4540_v47 = vmul.f32 %v9247_v20, %v4501_v51  ;;  %v4499_v62 = vsel %vm663_vm1, %v4139_v52, %v4424_v45  ;;  %v5965_v48 = vpop.f32.mrb[54].mxu1 }
 0x52e   : > { %v4798_v60 = vmul.f32 %v7187_v9, %v4574_v57  ;;  %v4538_v58 = vmul.f32 %v9247_v20, %v4499_v62  ;;  %v4502_v2 = vsel %vm663_vm1, %v5965_v48, %v4430_v3  ;;  %v4142_v39 = vpop.f32.mrb[55].mxu1  ;;  %v4442_v62 = vpop.permute.xlu1 %4441 }
 0x52f   : > { %v4579_v56 = vadd.f32 %v9252_v11, %v4540_v47  ;;  %v4541_v25 = vmul.f32 %v9247_v20, %v4502_v2  ;;  %v4500_v63 = vsel %vm663_vm1, %v4142_v39, %v4426_v36  ;;  %v4823_v42 = vpack.c.bf16 %v4800_v30, %v4799_v24  ;;  %v4440_v30 = vpop.permute.xlu0 %4439 }
 0x530   : > { %v4577_v16 = vadd.f32 %v9252_v11, %v4538_v58  ;;  %v4539_v0 = vmul.f32 %v9247_v20, %v4500_v63  ;;  %v4822_v32 = vpack.c.bf16 %v4798_v60, %v4797_v44 }
 0x531   : > { %v5666_v61 = vmul.f32 -1.442695, %v4579_v56  ;;  %v4580_v31 = vadd.f32 %v9252_v11, %v4541_v25 }
 0x532   : > { %v5664_v46 = vmul.f32 -1.442695, %v4577_v16  ;;  %v4578_v49 = vadd.f32 %v9252_v11, %v4539_v0  ;;  %6026 = vmatprep.mubr.msk.bf16.mxu1 %vm3143_vm3, %v4822_v32  ;;  %v4446_v63 = vpop.permute.xlu1 %4445 }
 0x533   : > { %7188 = vpow2.f32 %v5666_v61  ;;  %v5667_v21 = vmul.f32 -1.442695, %v4580_v31  ;;  %6027 = vmatmul.mubr.msk.bf16.gmra.mrb[80].mxu1 %vm3143_vm3, %v4823_v42  ;;  %v4444_v44 = vpop.permute.xlu0 %4443 }
 0x534   : > { %7190 = vpow2.f32 %v5664_v46  ;;  %v5665_v13 = vmul.f32 -1.442695, %v4578_v49 }
 0x535   : > { %7192 = vpow2.f32 %v5667_v21 }
 0x536   : > { %7194 = vpow2.f32 %v5665_v13 }
 0x53d   : > { %v7189_v40 = vpop.eup %7188 }
 0x53e   : > { %v7191_v29 = vpop.eup %7190  ;;  %v4707_v12 = vadd.f32 1.0, %v7189_v40 }
 0x53f   : > { %v7193_v28 = vpop.eup %7192  ;;  %v4705_v14 = vadd.f32 1.0, %v7191_v29 }
 0x540   : > { %v7195_v34 = vpop.eup %7194  ;;  %7196 = vrcp.f32 %v4707_v12  ;;  %v4708_v53 = vadd.f32 1.0, %v7193_v28 }
 0x541   : > { %7198 = vrcp.f32 %v4705_v14  ;;  %v4706_v10 = vadd.f32 1.0, %v7195_v34 }
 0x542   : > { %7200 = vrcp.f32 %v4708_v53 }
 0x543   : > { %7202 = vrcp.f32 %v4706_v10  ;;  %v5968_v7 = vpop.f32.mrb[56].mxu1 }
 0x544   : > { %v4505_v57 = vsel %vm663_vm1, %v5968_v7, %v4436_v55  ;;  %v4155_v17 = vpop.f32.mrb[57].mxu1 }
 0x545   : > { %v4544_v41 = vmul.f32 %v9247_v20, %v4505_v57  ;;  %v4503_v22 = vsel %vm663_vm1, %v4155_v17, %v4432_v50  ;;  %v5969_v38 = vpop.f32.mrb[58].mxu1 }
 0x546   : > { %v4542_v59 = vmul.f32 %v9247_v20, %v4503_v22  ;;  %v4506_v33 = vsel %vm663_vm1, %v5969_v38, %v4438_v15  ;;  %v4158_v1 = vpop.f32.mrb[59].mxu1 }
 0x547   : > { %v9408_v37 = vadd.f32 %v9252_v11, %v4544_v41  ;;  %v4545_v4 = vmul.f32 %v9247_v20, %v4506_v33  ;;  %v4504_v6 = vsel %vm663_vm1, %v4158_v1, %v4434_v5 }
 0x548   : > { %v9413_v18 = vadd.f32 %v9252_v11, %v4542_v59  ;;  %v4543_v35 = vmul.f32 %v9247_v20, %v4504_v6 }
 0x549   : > { %v5670_v19 = vmul.f32 -1.442695, %v9408_v37  ;;  %v9418_v54 = vadd.f32 %v9252_v11, %v4545_v4 }
 0x54a   : > { %v7197_v45 = vpop.eup %7196  ;;  %v5668_v36 = vmul.f32 -1.442695, %v9413_v18  ;;  %v9422_v8 = vadd.f32 %v9252_v11, %v4543_v35 }
 0x54b   : > { %v7199_v27 = vpop.eup %7198  ;;  %7204 = vpow2.f32 %v5670_v19  ;;  %v5671_v23 = vmul.f32 -1.442695, %v9418_v54  ;;  %v4803_v51 = vmul.f32 %v7197_v45, %v4579_v56 }
 0x54c   : > { %v7201_v43 = vpop.eup %7200  ;;  %7206 = vpow2.f32 %v5668_v36  ;;  %v5669_v3 = vmul.f32 -1.442695, %v9422_v8  ;;  %v4801_v9 = vmul.f32 %v7199_v27, %v4577_v16 }
 0x54d   : > { %v7203_v26 = vpop.eup %7202  ;;  %v4804_v52 = vmul.f32 %v7201_v43, %v4580_v31  ;;  %7208 = vpow2.f32 %v5671_v23 }
 0x54e   : > { %v4802_v24 = vmul.f32 %v7203_v26, %v4578_v49  ;;  %7210 = vpow2.f32 %v5669_v3 }
 0x54f   : > { %v4825_v47 = vpack.c.bf16 %v4804_v52, %v4803_v51 }
 0x550   : > { %v4824_v48 = vpack.c.bf16 %v4802_v24, %v4801_v9  ;;  %v9451_v9 = vld [vmem:[%s9674_s15] ss:$0 sm:$0xff] }
 0x552   : > { %6030 = vmatprep.mubr.msk.bf16.mxu1 %vm3143_vm3, %v4824_v48 }
 0x553   : > { %6031 = vmatmul.mubr.msk.bf16.gmra.mrb[84].mxu1 %vm3143_vm3, %v4825_v47 }
 0x554   : > { %v5972_v60 = vpop.f32.mrb[60].mxu1 }
 0x555   : > { %v7205_v58 = vpop.eup %7204  ;;  %v4509_v2 = vsel %vm663_vm1, %v5972_v60, %v4444_v44  ;;  %v4171_v39 = vpop.f32.mrb[61].mxu1 }
 0x556   : > { %v7207_v56 = vpop.eup %7206  ;;  %v4711_v25 = vadd.f32 1.0, %v7205_v58  ;;  %v4548_v42 = vmul.f32 %v9247_v20, %v4509_v2  ;;  %v4507_v16 = vsel %vm663_vm1, %v4171_v39, %v4440_v30  ;;  %v5973_v0 = vpop.f32.mrb[62].mxu1  ;;  %v9456_v30 = vld [vmem:[%s9675_s16] ss:$0 sm:$0xff] }
 0x557   : > { %v7209_v32 = vpop.eup %7208  ;;  %v4709_v61 = vadd.f32 1.0, %v7207_v56  ;;  %v4546_v31 = vmul.f32 %v9247_v20, %v4507_v16  ;;  %v4510_v46 = vsel %vm663_vm1, %v5973_v0, %v4446_v63  ;;  %v4174_v49 = vpop.f32.mrb[63].mxu1 }
 0x558   : > { %v7211_v21 = vpop.eup %7210  ;;  %7212 = vrcp.f32 %v4711_v25  ;;  %v4712_v13 = vadd.f32 1.0, %v7209_v32  ;;  %v4587_v50 = vadd.f32 %v9252_v11, %v4548_v42  ;;  %v4549_v40 = vmul.f32 %v9247_v20, %v4510_v46 }
 0x559   : > { %7214 = vrcp.f32 %v4709_v61  ;;  %v4710_v5 = vadd.f32 1.0, %v7211_v21  ;;  %v4585_v29 = vadd.f32 %v9252_v11, %v4546_v31  ;;  %v4508_v12 = vsel %vm663_vm1, %v4174_v49, %v4442_v62 }
 0x55a   : > { %7216 = vrcp.f32 %v4712_v13  ;;  %v5674_v28 = vmul.f32 -1.442695, %v4587_v50  ;;  %v4588_v14 = vadd.f32 %v9252_v11, %v4549_v40  ;;  %v4547_v34 = vmul.f32 %v9247_v20, %v4508_v12 }
 0x55b   : > { %7218 = vrcp.f32 %v4710_v5  ;;  %v5672_v53 = vmul.f32 -1.442695, %v4585_v29 }
 0x55c   : > { %7220 = vpow2.f32 %v5674_v28  ;;  %v5675_v10 = vmul.f32 -1.442695, %v4588_v14  ;;  %v4586_v55 = vadd.f32 %v9252_v11, %v4547_v34 }
 0x55d   : > { %7222 = vpow2.f32 %v5672_v53 }
 0x55e   : > { %7224 = vpow2.f32 %v5675_v10  ;;  %v5673_v7 = vmul.f32 -1.442695, %v4586_v55 }
 0x560   : > { %7226 = vpow2.f32 %v5673_v7 }
 0x562   : > { %v7213_v15 = vpop.eup %7212 }
 0x563   : > { %v7215_v57 = vpop.eup %7214  ;;  %v4807_v22 = vmul.f32 %v7213_v15, %v9408_v37 }
 0x564   : > { %v7217_v17 = vpop.eup %7216  ;;  %v4805_v20 = vmul.f32 %v7215_v57, %v9413_v18 }
 0x565   : > { %v7219_v41 = vpop.eup %7218  ;;  %v4808_v38 = vmul.f32 %v7217_v17, %v9418_v54 }
 0x566   : > { %v7221_v59 = vpop.eup %7220  ;;  %v4806_v33 = vmul.f32 %v7219_v41, %v9422_v8 }
 0x567   : > { %v7223_v1 = vpop.eup %7222  ;;  %v4715_v4 = vadd.f32 1.0, %v7221_v59  ;;  %v4827_v11 = vpack.c.bf16 %v4808_v38, %v4807_v22 }
 0x568   : > { %v7225_v6 = vpop.eup %7224  ;;  %v4713_v35 = vadd.f32 1.0, %v7223_v1  ;;  %v4826_v19 = vpack.c.bf16 %v4806_v33, %v4805_v20 }
 0x569   : > { %7228 = vrcp.f32 %v4715_v4  ;;  %v4716_v45 = vadd.f32 1.0, %v7225_v6 }
 0x56a   : > { %v7227_v36 = vpop.eup %7226  ;;  %7230 = vrcp.f32 %v4713_v35  ;;  %6034 = vmatprep.mubr.msk.bf16.mxu1 %vm3143_vm3, %v4826_v19 }
 0x56b   : > { %7232 = vrcp.f32 %v4716_v45  ;;  %v4714_v37 = vadd.f32 1.0, %v7227_v36  ;;  %6035 = vmatmul.mubr.msk.bf16.gmra.mrb[88].mxu1 %vm3143_vm3, %v4827_v11 }
 0x56d   : > { %7234 = vrcp.f32 %v4714_v37 }
 0x573   : > { %v7229_v18 = vpop.eup %7228 }
 0x574   : > { %v7231_v54 = vpop.eup %7230  ;;  %v4811_v27 = vmul.f32 %v7229_v18, %v4587_v50 }
 0x575   : > { %v7233_v8 = vpop.eup %7232  ;;  %v4809_v3 = vmul.f32 %v7231_v54, %v4585_v29 }
 0x576   : > { %v4812_v23 = vmul.f32 %v7233_v8, %v4588_v14 }
 0x577   : > { %v7235_v43 = vpop.eup %7234 }
 0x578   : > { %v4810_v26 = vmul.f32 %v7235_v43, %v4586_v55  ;;  %v4829_v51 = vpack.c.bf16 %v4812_v23, %v4811_v27 }
 0x57a   : > { %v4828_v52 = vpack.c.bf16 %v4810_v26, %v4809_v3 }
 0x57c   : > { %6038 = vmatprep.mubr.msk.bf16.mxu1 %vm3143_vm3, %v4828_v52 }
 0x57d   : > { %6039 = vmatmul.mubr.msk.bf16.gmra.mrb[92].mxu1 %vm3143_vm3, %v4829_v51 }
 0x5d1   : > { %v6012_v24 = vpop.f32.mrb[64].mxu1 }
 0x5d2   : > { %v5052_v47 = vmul.f32 %v6012_v24, %v9451_v9  ;;  %v4916_v62 = vpop.f32.mrb[65].mxu1 }
 0x5d3   : > { %v5050_v48 = vmul.f32 %v9451_v9, %v4916_v62  ;;  %v6013_v44 = vpop.f32.mrb[66].mxu1 }
 0x5d4   : > { %v9461_v60 = vadd.f32 %v9456_v30, %v5052_v47  ;;  %v5053_v58 = vmul.f32 %v6013_v44, %v9451_v9  ;;  %v4919_v2 = vpop.f32.mrb[67].mxu1 }
 0x5d5   : > { %v9465_v39 = vadd.f32 %v9456_v30, %v5050_v48  ;;  %v5051_v56 = vmul.f32 %v9451_v9, %v4919_v2 }
 0x5d6   : > { %v5696_v25 = vmul.f32 -1.442695, %v9461_v60  ;;  %v9470_v63 = vadd.f32 %v9456_v30, %v5053_v58 }
 0x5d7   : > { %v5694_v42 = vmul.f32 -1.442695, %v9465_v39  ;;  %v9474_v16 = vadd.f32 %v9456_v30, %v5051_v56 }
 0x5d8   : > { %7236 = vpow2.f32 %v5696_v25  ;;  %v5697_v0 = vmul.f32 -1.442695, %v9470_v63 }
 0x5d9   : > { %7238 = vpow2.f32 %v5694_v42  ;;  %v5695_v32 = vmul.f32 -1.442695, %v9474_v16 }
 0x5da   : > { %v6016_v61 = vpop.f32.mrb[68].mxu1  ;;  %7240 = vpow2.f32 %v5697_v0 }
 0x5db   : > { %v5056_v31 = vmul.f32 %v6016_v61, %v9451_v9  ;;  %v4932_v46 = vpop.f32.mrb[69].mxu1  ;;  %7242 = vpow2.f32 %v5695_v32 }
 0x5dc   : > { %v5054_v49 = vmul.f32 %v9451_v9, %v4932_v46  ;;  %v6017_v21 = vpop.f32.mrb[70].mxu1 }
 0x5dd   : > { %v9481_v13 = vadd.f32 %v9456_v30, %v5056_v31  ;;  %v5057_v50 = vmul.f32 %v6017_v21, %v9451_v9  ;;  %v4935_v40 = vpop.f32.mrb[71].mxu1 }
 0x5de   : > { %v9485_v5 = vadd.f32 %v9456_v30, %v5054_v49  ;;  %v5055_v29 = vmul.f32 %v9451_v9, %v4935_v40 }
 0x5df   : > { %v5700_v12 = vmul.f32 -1.442695, %v9481_v13  ;;  %v9490_v28 = vadd.f32 %v9456_v30, %v5057_v50 }
 0x5e0   : > { %v5698_v14 = vmul.f32 -1.442695, %v9485_v5  ;;  %v9494_v34 = vadd.f32 %v9456_v30, %v5055_v29 }
 0x5e1   : > { %7244 = vpow2.f32 %v5700_v12  ;;  %v5701_v53 = vmul.f32 -1.442695, %v9490_v28 }
 0x5e2   : > { %7246 = vpow2.f32 %v5698_v14  ;;  %v5699_v10 = vmul.f32 -1.442695, %v9494_v34  ;;  %v6020_v55 = vpop.f32.mrb[72].mxu1  ;;  %v7237_v7 = vpop.eup %7236 }
 0x5e3   : > { %7248 = vpow2.f32 %v5701_v53  ;;  %v5060_v15 = vmul.f32 %v6020_v55, %v9451_v9  ;;  %v4948_v57 = vpop.f32.mrb[73].mxu1  ;;  %v7239_v17 = vpop.eup %7238  ;;  %v5219_v41 = vadd.f32 1.0, %v7237_v7 }
 0x5e4   : > { %7250 = vpow2.f32 %v5699_v10  ;;  %v5058_v22 = vmul.f32 %v9451_v9, %v4948_v57  ;;  %v6021_v38 = vpop.f32.mrb[74].mxu1  ;;  %v7241_v59 = vpop.eup %7240  ;;  %v5217_v20 = vadd.f32 1.0, %v7239_v17 }
 0x5e5   : > { %v9501_v33 = vadd.f32 %v9456_v30, %v5060_v15  ;;  %v5061_v1 = vmul.f32 %v6021_v38, %v9451_v9  ;;  %v4951_v4 = vpop.f32.mrb[75].mxu1  ;;  %v7243_v11 = vpop.eup %7242  ;;  %7252 = vrcp.f32 %v5219_v41  ;;  %v5220_v6 = vadd.f32 1.0, %v7241_v59 }
 0x5e6   : > { %v9505_v35 = vadd.f32 %v9456_v30, %v5058_v22  ;;  %v5059_v19 = vmul.f32 %v9451_v9, %v4951_v4  ;;  %7254 = vrcp.f32 %v5217_v20  ;;  %v5218_v45 = vadd.f32 1.0, %v7243_v11 }
 0x5e7   : > { %v5704_v36 = vmul.f32 -1.442695, %v9501_v33  ;;  %v9510_v37 = vadd.f32 %v9456_v30, %v5061_v1  ;;  %7256 = vrcp.f32 %v5220_v6 }
 0x5e8   : > { %v5702_v18 = vmul.f32 -1.442695, %v9505_v35  ;;  %v9514_v54 = vadd.f32 %v9456_v30, %v5059_v19  ;;  %7258 = vrcp.f32 %v5218_v45 }
 0x5e9   : > { %v5705_v8 = vmul.f32 -1.442695, %v9510_v37  ;;  %7260 = vpow2.f32 %v5704_v36 }
 0x5ea   : > { %v5703_v27 = vmul.f32 -1.442695, %v9514_v54  ;;  %7262 = vpow2.f32 %v5702_v18 }
 0x5eb   : > { %v7245_v23 = vpop.eup %7244  ;;  %7264 = vpow2.f32 %v5705_v8  ;;  %v6024_v26 = vpop.f32.mrb[76].mxu1 }
 0x5ec   : > { %v7247_v43 = vpop.eup %7246  ;;  %v5223_v3 = vadd.f32 1.0, %v7245_v23  ;;  %7266 = vpow2.f32 %v5703_v27  ;;  %v5064_v24 = vmul.f32 %v6024_v26, %v9451_v9  ;;  %v4964_v47 = vpop.f32.mrb[77].mxu1 }
 0x5ed   : > { %v7249_v51 = vpop.eup %7248  ;;  %v5221_v52 = vadd.f32 1.0, %v7247_v43  ;;  %v5062_v44 = vmul.f32 %v9451_v9, %v4964_v47  ;;  %v6025_v58 = vpop.f32.mrb[78].mxu1 }
 0x5ee   : > { %v7251_v62 = vpop.eup %7250  ;;  %7268 = vrcp.f32 %v5223_v3  ;;  %v5224_v48 = vadd.f32 1.0, %v7249_v51  ;;  %v9522_v56 = vadd.f32 %v9456_v30, %v5064_v24  ;;  %v5065_v25 = vmul.f32 %v6025_v58, %v9451_v9  ;;  %v4967_v42 = vpop.f32.mrb[79].mxu1 }
 0x5ef   : > { %7270 = vrcp.f32 %v5221_v52  ;;  %v5222_v2 = vadd.f32 1.0, %v7251_v62  ;;  %v7253_v0 = vpop.eup %7252  ;;  %v9531_v32 = vadd.f32 %v9456_v30, %v5062_v44  ;;  %v5063_v61 = vmul.f32 %v9451_v9, %v4967_v42 }
 0x5f0   : > { %7272 = vrcp.f32 %v5224_v48  ;;  %v7255_v31 = vpop.eup %7254  ;;  %v5315_v46 = vmul.f32 %v7253_v0, %v9461_v60  ;;  %v5708_v49 = vmul.f32 -1.442695, %v9522_v56  ;;  %v9537_v21 = vadd.f32 %v9456_v30, %v5065_v25 }
 0x5f1   : > { %7274 = vrcp.f32 %v5222_v2  ;;  %v7257_v50 = vpop.eup %7256  ;;  %v5313_v40 = vmul.f32 %v7255_v31, %v9465_v39  ;;  %v5706_v29 = vmul.f32 -1.442695, %v9531_v32  ;;  %v9542_v12 = vadd.f32 %v9456_v30, %v5063_v61 }
 0x5f2   : > { %v7259_v14 = vpop.eup %7258  ;;  %5347 = vst.msk [vmem:[%s9528_s18 + $0x10] sm:$0xff] %vm3143_vm3, %v5315_v46  ;;  %v5316_v60 = vmul.f32 %v7257_v50, %v9470_v63  ;;  %7276 = vpow2.f32 %v5708_v49  ;;  %v5709_v53 = vmul.f32 -1.442695, %v9537_v21 }
 0x5f3   : > { %v7261_v10 = vpop.eup %7260  ;;  %5345 = vst.msk [vmem:[%s9528_s18] sm:$0xff] %vm3143_vm3, %v5313_v40  ;;  %v5314_v55 = vmul.f32 %v7259_v14, %v9474_v16  ;;  %7278 = vpow2.f32 %v5706_v29  ;;  %v5707_v39 = vmul.f32 -1.442695, %v9542_v12 }
 0x5f4   : > { %v7263_v7 = vpop.eup %7262  ;;  %5348 = vst.msk [vmem:[%s9528_s18 + $0x18] sm:$0xff] %vm3143_vm3, %v5316_v60  ;;  %v5227_v15 = vadd.f32 1.0, %v7261_v10  ;;  %7280 = vpow2.f32 %v5709_v53 }
 0x5f5   : > { %v7265_v57 = vpop.eup %7264  ;;  %5346 = vst.msk [vmem:[%s9528_s18 + $0x8] sm:$0xff] %vm3143_vm3, %v5314_v55  ;;  %v5225_v63 = vadd.f32 1.0, %v7263_v7  ;;  %7282 = vpow2.f32 %v5707_v39 }
 0x5f6   : > { %v7267_v17 = vpop.eup %7266  ;;  %7284 = vrcp.f32 %v5227_v15  ;;  %v5228_v41 = vadd.f32 1.0, %v7265_v57 }
 0x5f7   : > { %7286 = vrcp.f32 %v5225_v63  ;;  %v5226_v22 = vadd.f32 1.0, %v7267_v17 }
 0x5f8   : > { %v7269_v16 = vpop.eup %7268  ;;  %7288 = vrcp.f32 %v5228_v41 }
 0x5f9   : > { %v7271_v38 = vpop.eup %7270  ;;  %v5319_v59 = vmul.f32 %v7269_v16, %v9481_v13  ;;  %7290 = vrcp.f32 %v5226_v22 }
 0x5fa   : > { %v7273_v20 = vpop.eup %7272  ;;  %v5317_v1 = vmul.f32 %v7271_v38, %v9485_v5 }
 0x5fb   : > { %v7275_v4 = vpop.eup %7274  ;;  %5351 = vst.msk [vmem:[%s9528_s18 + $0x30] sm:$0xff] %vm3143_vm3, %v5319_v59  ;;  %v5320_v11 = vmul.f32 %v7273_v20, %v9490_v28 }
 0x5fc   : > { %5349 = vst.msk [vmem:[%s9528_s18 + $0x20] sm:$0xff] %vm3143_vm3, %v5317_v1  ;;  %v5318_v6 = vmul.f32 %v7275_v4, %v9494_v34  ;;  %v7277_v19 = vpop.eup %7276 }
 0x5fd   : > { %5352 = vst.msk [vmem:[%s9528_s18 + $0x38] sm:$0xff] %vm3143_vm3, %v5320_v11  ;;  %v7279_v45 = vpop.eup %7278  ;;  %v5231_v13 = vadd.f32 1.0, %v7277_v19 }
 0x5fe   : > { %5350 = vst.msk [vmem:[%s9528_s18 + $0x28] sm:$0xff] %vm3143_vm3, %v5318_v6  ;;  %v7281_v36 = vpop.eup %7280  ;;  %v5229_v5 = vadd.f32 1.0, %v7279_v45 }
 0x5ff   : > { %v7283_v18 = vpop.eup %7282  ;;  %7292 = vrcp.f32 %v5231_v13  ;;  %v5232_v8 = vadd.f32 1.0, %v7281_v36 }
 0x600   : > { %v7285_v28 = vpop.eup %7284  ;;  %7294 = vrcp.f32 %v5229_v5  ;;  %v5230_v27 = vadd.f32 1.0, %v7283_v18 }
 0x601   : > { %v7287_v34 = vpop.eup %7286  ;;  %v5323_v23 = vmul.f32 %v7285_v28, %v9501_v33  ;;  %7296 = vrcp.f32 %v5232_v8 }
 0x602   : > { %v7289_v43 = vpop.eup %7288  ;;  %v5321_v3 = vmul.f32 %v7287_v34, %v9505_v35  ;;  %7298 = vrcp.f32 %v5230_v27 }
 0x603   : > { %v7291_v26 = vpop.eup %7290  ;;  %5355 = vst.msk [vmem:[%s9528_s18 + $0x50] sm:$0xff] %vm3143_vm3, %v5323_v23  ;;  %v5324_v51 = vmul.f32 %v7289_v43, %v9510_v37 }
 0x604   : > { %5353 = vst.msk [vmem:[%s9528_s18 + $0x40] sm:$0xff] %vm3143_vm3, %v5321_v3  ;;  %v5322_v52 = vmul.f32 %v7291_v26, %v9514_v54 }
 0x605   : > { %5356 = vst.msk [vmem:[%s9528_s18 + $0x58] sm:$0xff] %vm3143_vm3, %v5324_v51 }
 0x606   : > { %5354 = vst.msk [vmem:[%s9528_s18 + $0x48] sm:$0xff] %vm3143_vm3, %v5322_v52  ;;  %v6028_v24 = vpop.f32.mrb[80].mxu1 }
 0x607   : > { %v5068_v33 = vmul.f32 %v6028_v24, %v9451_v9  ;;  %v4980_v47 = vpop.f32.mrb[81].mxu1 }
 0x608   : > { %v5066_v35 = vmul.f32 %v9451_v9, %v4980_v47  ;;  %v6029_v62 = vpop.f32.mrb[82].mxu1 }
 0x609   : > { %v7293_v48 = vpop.eup %7292  ;;  %v5107_v44 = vadd.f32 %v9456_v30, %v5068_v33  ;;  %v5069_v37 = vmul.f32 %v6029_v62, %v9451_v9  ;;  %v4983_v58 = vpop.f32.mrb[83].mxu1 }
 0x60a   : > { %v7295_v54 = vpop.eup %7294  ;;  %v5327_v2 = vmul.f32 %v7293_v48, %v9522_v56  ;;  %v5105_v25 = vadd.f32 %v9456_v30, %v5066_v35  ;;  %v5067_v42 = vmul.f32 %v9451_v9, %v4983_v58 }
 0x60b   : > { %v7297_v0 = vpop.eup %7296  ;;  %v5325_v61 = vmul.f32 %v7295_v54, %v9531_v32  ;;  %v5712_v31 = vmul.f32 -1.442695, %v5107_v44  ;;  %v5108_v46 = vadd.f32 %v9456_v30, %v5069_v37 }
 0x60c   : > { %v7299_v49 = vpop.eup %7298  ;;  %5359 = vst.msk [vmem:[%s9528_s18 + $0x70] sm:$0xff] %vm3143_vm3, %v5327_v2  ;;  %v5328_v50 = vmul.f32 %v7297_v0, %v9537_v21  ;;  %v5710_v40 = vmul.f32 -1.442695, %v5105_v25  ;;  %v5106_v56 = vadd.f32 %v9456_v30, %v5067_v42 }
 0x60d   : > { %5357 = vst.msk [vmem:[%s9528_s18 + $0x60] sm:$0xff] %vm3143_vm3, %v5325_v61  ;;  %v5326_v29 = vmul.f32 %v7299_v49, %v9542_v12  ;;  %7300 = vpow2.f32 %v5712_v31  ;;  %v5713_v14 = vmul.f32 -1.442695, %v5108_v46 }
 0x60e   : > { %5360 = vst.msk [vmem:[%s9528_s18 + $0x78] sm:$0xff] %vm3143_vm3, %v5328_v50  ;;  %7302 = vpow2.f32 %v5710_v40  ;;  %v5711_v32 = vmul.f32 -1.442695, %v5106_v56 }
 0x60f   : > { %5358 = vst.msk [vmem:[%s9528_s18 + $0x68] sm:$0xff] %vm3143_vm3, %v5326_v29  ;;  %7304 = vpow2.f32 %v5713_v14 }
 0x610   : > { %7306 = vpow2.f32 %v5711_v32 }
 0x617   : > { %v7301_v60 = vpop.eup %7300 }
 0x618   : > { %v7303_v53 = vpop.eup %7302  ;;  %v5235_v21 = vadd.f32 1.0, %v7301_v60 }
 0x619   : > { %v7305_v10 = vpop.eup %7304  ;;  %v5233_v55 = vadd.f32 1.0, %v7303_v53 }
 0x61a   : > { %v7307_v39 = vpop.eup %7306  ;;  %7308 = vrcp.f32 %v5235_v21  ;;  %v5236_v7 = vadd.f32 1.0, %v7305_v10 }
 0x61b   : > { %7310 = vrcp.f32 %v5233_v55  ;;  %v5234_v12 = vadd.f32 1.0, %v7307_v39 }
 0x61c   : > { %7312 = vrcp.f32 %v5236_v7 }
 0x61d   : > { %7314 = vrcp.f32 %v5234_v12 }
 0x624   : > { %v7309_v15 = vpop.eup %7308 }
 0x625   : > { %v7311_v57 = vpop.eup %7310  ;;  %v5331_v63 = vmul.f32 %v7309_v15, %v5107_v44 }
 0x626   : > { %v7313_v17 = vpop.eup %7312  ;;  %v5329_v41 = vmul.f32 %v7311_v57, %v5105_v25  ;;  %v6032_v16 = vpop.f32.mrb[84].mxu1 }
 0x627   : > { %v7315_v22 = vpop.eup %7314  ;;  %5363 = vst.msk [vmem:[%s9528_s18 + $0x90] sm:$0xff] %vm3143_vm3, %v5331_v63  ;;  %v5332_v38 = vmul.f32 %v7313_v17, %v5108_v46  ;;  %v5072_v59 = vmul.f32 %v6032_v16, %v9451_v9  ;;  %v4996_v20 = vpop.f32.mrb[85].mxu1 }
 0x628   : > { %5361 = vst.msk [vmem:[%s9528_s18 + $0x80] sm:$0xff] %vm3143_vm3, %v5329_v41  ;;  %v5330_v1 = vmul.f32 %v7315_v22, %v5106_v56  ;;  %v5070_v4 = vmul.f32 %v9451_v9, %v4996_v20  ;;  %v6033_v11 = vpop.f32.mrb[86].mxu1 }
 0x629   : > { %5364 = vst.msk [vmem:[%s9528_s18 + $0x98] sm:$0xff] %vm3143_vm3, %v5332_v38  ;;  %v5111_v6 = vadd.f32 %v9456_v30, %v5072_v59  ;;  %v5073_v19 = vmul.f32 %v6033_v11, %v9451_v9  ;;  %v4999_v45 = vpop.f32.mrb[87].mxu1 }
 0x62a   : > { %5362 = vst.msk [vmem:[%s9528_s18 + $0x88] sm:$0xff] %vm3143_vm3, %v5330_v1  ;;  %v5109_v13 = vadd.f32 %v9456_v30, %v5070_v4  ;;  %v5071_v36 = vmul.f32 %v9451_v9, %v4999_v45 }
 0x62b   : > { %v5716_v5 = vmul.f32 -1.442695, %v5111_v6  ;;  %v5112_v18 = vadd.f32 %v9456_v30, %v5073_v19 }
 0x62c   : > { %v5714_v8 = vmul.f32 -1.442695, %v5109_v13  ;;  %v5110_v28 = vadd.f32 %v9456_v30, %v5071_v36 }
 0x62d   : > { %7316 = vpow2.f32 %v5716_v5  ;;  %v5717_v27 = vmul.f32 -1.442695, %v5112_v18 }
 0x62e   : > { %7318 = vpow2.f32 %v5714_v8  ;;  %v5715_v34 = vmul.f32 -1.442695, %v5110_v28 }
 0x62f   : > { %7320 = vpow2.f32 %v5717_v27 }
 0x630   : > { %7322 = vpow2.f32 %v5715_v34 }
 0x637   : > { %v7317_v23 = vpop.eup %7316 }
 0x638   : > { %v7319_v43 = vpop.eup %7318  ;;  %v5239_v3 = vadd.f32 1.0, %v7317_v23 }
 0x639   : > { %v7321_v26 = vpop.eup %7320  ;;  %v5237_v51 = vadd.f32 1.0, %v7319_v43 }
 0x63a   : > { %v7323_v52 = vpop.eup %7322  ;;  %7324 = vrcp.f32 %v5239_v3  ;;  %v5240_v24 = vadd.f32 1.0, %v7321_v26 }
 0x63b   : > { %7326 = vrcp.f32 %v5237_v51  ;;  %v5238_v33 = vadd.f32 1.0, %v7323_v52 }
 0x63c   : > { %7328 = vrcp.f32 %v5240_v24 }
 0x63d   : > { %7330 = vrcp.f32 %v5238_v33 }
 0x63e   : > { %v6036_v47 = vpop.f32.mrb[88].mxu1 }
 0x63f   : > { %v5076_v35 = vmul.f32 %v6036_v47, %v9451_v9  ;;  %v5012_v62 = vpop.f32.mrb[89].mxu1 }
 0x640   : > { %v5074_v48 = vmul.f32 %v9451_v9, %v5012_v62  ;;  %v6037_v44 = vpop.f32.mrb[90].mxu1 }
 0x641   : > { %v5115_v37 = vadd.f32 %v9456_v30, %v5076_v35  ;;  %v5077_v58 = vmul.f32 %v6037_v44, %v9451_v9  ;;  %v5015_v54 = vpop.f32.mrb[91].mxu1 }
 0x642   : > { %v5113_v2 = vadd.f32 %v9456_v30, %v5074_v48  ;;  %v5075_v25 = vmul.f32 %v9451_v9, %v5015_v54 }
 0x643   : > { %v5720_v42 = vmul.f32 -1.442695, %v5115_v37  ;;  %v5116_v0 = vadd.f32 %v9456_v30, %v5077_v58 }
 0x644   : > { %v7325_v61 = vpop.eup %7324  ;;  %v5718_v31 = vmul.f32 -1.442695, %v5113_v2  ;;  %v5114_v46 = vadd.f32 %v9456_v30, %v5075_v25 }
 0x645   : > { %v7327_v49 = vpop.eup %7326  ;;  %v5335_v50 = vmul.f32 %v7325_v61, %v5111_v6  ;;  %7332 = vpow2.f32 %v5720_v42  ;;  %v5721_v40 = vmul.f32 -1.442695, %v5116_v0 }
 0x646   : > { %v7329_v56 = vpop.eup %7328  ;;  %v5333_v29 = vmul.f32 %v7327_v49, %v5109_v13  ;;  %7334 = vpow2.f32 %v5718_v31  ;;  %v5719_v14 = vmul.f32 -1.442695, %v5114_v46 }
 0x647   : > { %v7331_v32 = vpop.eup %7330  ;;  %5367 = vst.msk [vmem:[%s9528_s18 + $0xb0] sm:$0xff] %vm3143_vm3, %v5335_v50  ;;  %v5336_v60 = vmul.f32 %v7329_v56, %v5112_v18  ;;  %7336 = vpow2.f32 %v5721_v40 }
 0x648   : > { %5365 = vst.msk [vmem:[%s9528_s18 + $0xa0] sm:$0xff] %vm3143_vm3, %v5333_v29  ;;  %v5334_v53 = vmul.f32 %v7331_v32, %v5110_v28  ;;  %7338 = vpow2.f32 %v5719_v14 }
 0x649   : > { %5368 = vst.msk [vmem:[%s9528_s18 + $0xb8] sm:$0xff] %vm3143_vm3, %v5336_v60 }
 0x64a   : > { %5366 = vst.msk [vmem:[%s9528_s18 + $0xa8] sm:$0xff] %vm3143_vm3, %v5334_v53 }
 0x64f   : > { %v7333_v21 = vpop.eup %7332 }
 0x650   : > { %v7335_v10 = vpop.eup %7334  ;;  %v5243_v55 = vadd.f32 1.0, %v7333_v21  ;;  %v6040_v39 = vpop.f32.mrb[92].mxu1 }
 0x651   : > { %v7337_v7 = vpop.eup %7336  ;;  %v5241_v12 = vadd.f32 1.0, %v7335_v10  ;;  %v5080_v15 = vmul.f32 %v6040_v39, %v9451_v9  ;;  %v5028_v57 = vpop.f32.mrb[93].mxu1 }
 0x652   : > { %v7339_v63 = vpop.eup %7338  ;;  %7340 = vrcp.f32 %v5243_v55  ;;  %v5244_v17 = vadd.f32 1.0, %v7337_v7  ;;  %v5078_v41 = vmul.f32 %v9451_v9, %v5028_v57  ;;  %v6041_v16 = vpop.f32.mrb[94].mxu1 }
 0x653   : > { %7342 = vrcp.f32 %v5241_v12  ;;  %v5242_v22 = vadd.f32 1.0, %v7339_v63  ;;  %v5119_v38 = vadd.f32 %v9456_v30, %v5080_v15  ;;  %v5081_v59 = vmul.f32 %v6041_v16, %v9451_v9  ;;  %v5031_v20 = vpop.f32.mrb[95].mxu1 }
 0x654   : > { %7344 = vrcp.f32 %v5244_v17  ;;  %v5117_v1 = vadd.f32 %v9456_v30, %v5078_v41  ;;  %v5079_v4 = vmul.f32 %v9451_v9, %v5031_v20 }
 0x655   : > { %7346 = vrcp.f32 %v5242_v22  ;;  %v5724_v11 = vmul.f32 -1.442695, %v5119_v38  ;;  %v5120_v6 = vadd.f32 %v9456_v30, %v5081_v59 }
 0x656   : > { %v5722_v19 = vmul.f32 -1.442695, %v5117_v1  ;;  %v5118_v45 = vadd.f32 %v9456_v30, %v5079_v4 }
 0x657   : > { %7348 = vpow2.f32 %v5724_v11  ;;  %v5725_v13 = vmul.f32 -1.442695, %v5120_v6 }
 0x658   : > { %7350 = vpow2.f32 %v5722_v19  ;;  %v5723_v36 = vmul.f32 -1.442695, %v5118_v45 }
 0x659   : > { %7352 = vpow2.f32 %v5725_v13 }
 0x65a   : > { %7354 = vpow2.f32 %v5723_v36 }
 0x65c   : > { %v7341_v5 = vpop.eup %7340 }
 0x65d   : > { %v7343_v18 = vpop.eup %7342  ;;  %v5339_v9 = vmul.f32 %v7341_v5, %v5115_v37 }
 0x65e   : > { %v7345_v8 = vpop.eup %7344  ;;  %v5337_v28 = vmul.f32 %v7343_v18, %v5113_v2 }
 0x65f   : > { %v7347_v27 = vpop.eup %7346  ;;  %5371 = vst.msk [vmem:[%s9528_s18 + $0xd0] sm:$0xff] %vm3143_vm3, %v5339_v9  ;;  %v5340_v34 = vmul.f32 %v7345_v8, %v5116_v0 }
 0x660   : > { %5369 = vst.msk [vmem:[%s9528_s18 + $0xc0] sm:$0xff] %vm3143_vm3, %v5337_v28  ;;  %v5338_v30 = vmul.f32 %v7347_v27, %v5114_v46 }
 0x661   : > { %v7349_v23 = vpop.eup %7348  ;;  %5372 = vst.msk [vmem:[%s9528_s18 + $0xd8] sm:$0xff] %vm3143_vm3, %v5340_v34 }
 0x662   : > { %v7351_v43 = vpop.eup %7350  ;;  %5370 = vst.msk [vmem:[%s9528_s18 + $0xc8] sm:$0xff] %vm3143_vm3, %v5338_v30  ;;  %v5247_v3 = vadd.f32 1.0, %v7349_v23 }
 0x663   : > { %v7353_v26 = vpop.eup %7352  ;;  %v5245_v51 = vadd.f32 1.0, %v7351_v43 }
 0x664   : > { %v7355_v52 = vpop.eup %7354  ;;  %7356 = vrcp.f32 %v5247_v3  ;;  %v5248_v24 = vadd.f32 1.0, %v7353_v26 }
 0x665   : > { %7358 = vrcp.f32 %v5245_v51  ;;  %v5246_v33 = vadd.f32 1.0, %v7355_v52 }
 0x666   : > { %7360 = vrcp.f32 %v5248_v24 }
 0x667   : > { %7362 = vrcp.f32 %v5246_v33 }
 0x66e   : > { %v7357_v47 = vpop.eup %7356 }
 0x66f   : > { %v7359_v35 = vpop.eup %7358  ;;  %v5343_v62 = vmul.f32 %v7357_v47, %v5119_v38 }
 0x670   : > { %v7361_v48 = vpop.eup %7360  ;;  %v5341_v44 = vmul.f32 %v7359_v35, %v5117_v1 }
 0x671   : > { %v7363_v37 = vpop.eup %7362  ;;  %5375 = vst.msk [vmem:[%s9528_s18 + $0xf0] sm:$0xff] %vm3143_vm3, %v5343_v62  ;;  %v5344_v58 = vmul.f32 %v7361_v48, %v5120_v6 }
 0x672   : > { %5373 = vst.msk [vmem:[%s9528_s18 + $0xe0] sm:$0xff] %vm3143_vm3, %v5341_v44  ;;  %v5342_v54 = vmul.f32 %v7363_v37, %v5118_v45 }
 0x673   : > { %5376 = vst.msk [vmem:[%s9528_s18 + $0xf8] sm:$0xff] %vm3143_vm3, %v5344_v58 }
 0x674   : > { %5374 = vst.msk [vmem:[%s9528_s18 + $0xe8] sm:$0xff] %vm3143_vm3, %v5342_v54 }
 0x675 PF: > { %s27_s24 = sadd.s32 1, %s7394_s24  }
 0x676   : > { %p24_p4 = scmp.ge.s32.totalorder %s27_s24, 4  }
 0x678   :  { %26 = sbr.rel (!%p24_p4) target bundleno = 3 (0x3), region = 120 }

</bundles_post_ra>
